<compile_context>
chip_gen: v5e
topology: v5e:2x2
jax: 0.10.0
libtpu: 0.0.40
codegen_flags: <defaults>
</compile_context>

<pallas_src>
import numpy as np
import jax
import jax.numpy as jnp
from jax.experimental import pallas as pl
from jax.experimental.pallas import tpu as pltpu

LANE = 128


def _round_up(x, m):
    return (x + m - 1) // m * m


def _conv_out(size, k, stride, pad):
    return (size + 2 * pad - k) // stride + 1


def _build_tap_selection(N, H, W, k, stride, pad):
    """0/1 gather matrices: Sel[t] @ X_flat == rows of tap t of im2col(X).

    X_flat is the (N*H*W, C) row-major NHWC activation; output rows are the
    (N*OH*OW) row-major conv output positions.  All-zero rows realize zero padding.
    """
    OH, OW = _conv_out(H, k, stride, pad), _conv_out(W, k, stride, pad)
    M = N * OH * OW
    sel = np.zeros((k * k, M, N * H * W), np.float32)
    for kh in range(k):
        for kw in range(k):
            t = kh * k + kw
            for n in range(N):
                for oh in range(OH):
                    ih = oh * stride + kh - pad
                    if not (0 <= ih < H):
                        continue
                    for ow in range(OW):
                        iw = ow * stride + kw - pad
                        if not (0 <= iw < W):
                            continue
                        sel[t, (n * OH + oh) * OW + ow, (n * H + ih) * W + iw] = 1.0
    return sel, OH, OW


def prepare_encoder(input_shape_nchw, conv_params, bn_params, kernels, strides, paddings):
    """One-time (host side) fold/pad of all kernel operands + static metadata."""
    N, C, H, W = input_shape_nchw
    cin_pad = _round_up(C, LANE)
    operands = []
    meta = {"N": N, "Cin": C, "H": H, "W": W, "cin_pad": cin_pad, "layers": []}

    h, w, c_prev, c_prev_pad = H, W, C, cin_pad
    for i, (wt, b) in enumerate(conv_params):
        cout, cin, k, _ = wt.shape
        assert cin == c_prev and k == kernels[i + 1]
        stride, pad = strides[i + 1], paddings[i + 1]
        scale, shift = bn_params[i]

        sel, oh, ow = _build_tap_selection(N, h, w, k, stride, pad)

        cout_pad = _round_up(cout, LANE)
        w_np = np.asarray(wt, np.float32)                       # (cout, cin, kh, kw)
        sc = np.asarray(scale, np.float32)
        w_taps = np.zeros((k * k, c_prev_pad, cout_pad), np.float32)
        for kh in range(k):
            for kw in range(k):
                # per-tap (cin, cout) matrix with eval-BN scale folded into the columns
                w_taps[kh * k + kw, :cin, :cout] = w_np[:, :, kh, kw].T * sc[None, :]
        sh = np.zeros((1, cout_pad), np.float32)
        sh[0, :cout] = np.asarray(b, np.float32) * sc + np.asarray(shift, np.float32)

        operands += [jnp.asarray(sel, jnp.bfloat16),            # (k*k, M_out, M_in) gather
                     jnp.asarray(w_taps, jnp.bfloat16),         # (k*k, Cin_p, Cout_p) folded W
                     jnp.asarray(sh, jnp.float32)]              # (1, Cout_p) folded bias+BN shift
        meta["layers"].append({"k": k, "OH": oh, "OW": ow, "cout": cout,
                               "cout_pad": cout_pad, "M": N * oh * ow})
        h, w, c_prev, c_prev_pad = oh, ow, cout, cout_pad

    return tuple(operands), meta


def _make_encoder_kernel(n_layers):
    """Fused multi-layer conv(+BN eval)+ReLU kernel; intermediate activations stay in VMEM."""
    def kernel(*refs):
        x_ref, layer_refs, o_ref = refs[0], refs[1:-1], refs[-1]
        a = x_ref[...]                                          # bf16 (M0, C0p) activation
        for li in range(n_layers):
            sel_ref, w_ref, s_ref = layer_refs[3 * li:3 * li + 3]
            taps = sel_ref.shape[0]
            acc = jnp.zeros((sel_ref.shape[1], w_ref.shape[2]), jnp.float32)
            for t in range(taps):                               # unrolled k*k per-tap matmuls
                # exact 0/1 row gather (in-kernel im2col) on the MXU ...
                g = jnp.dot(sel_ref[t], a, preferred_element_type=jnp.float32)
                # ... then the tap's (Cin_p, Cout_p) weight matmul, f32 accumulation
                acc = acc + jnp.dot(g.astype(jnp.bfloat16), w_ref[t],
                                    preferred_element_type=jnp.float32)
            act = jnp.maximum(acc + s_ref[...], 0.0)            # folded bias/BN shift + ReLU
            a = act.astype(jnp.bfloat16) if li + 1 < n_layers else act
        o_ref[...] = a.astype(o_ref.dtype)
    return kernel


def encoder_forward(x_nchw, operands, meta):
    """Pallas-backed equivalent of Encoder.forward (NCHW in, NCHW out); ONE pallas_call."""
    N, C, H, W = x_nchw.shape
    assert (N, C, H, W) == (meta["N"], meta["Cin"], meta["H"], meta["W"])
    cin_pad = meta["cin_pad"]
    last = meta["layers"][-1]
    m_out, cout_pad = last["M"], last["cout_pad"]

    # NCHW -> flat NHWC rows, bf16, lane-padded channels (single small fused XLA op).
    x = jnp.transpose(x_nchw, (0, 2, 3, 1)).reshape(N * H * W, C).astype(jnp.bfloat16)
    if cin_pad > C:
        x = jnp.pad(x, ((0, 0), (0, cin_pad - C)))

    def full_spec(shape):
        nd = len(shape)
        return pl.BlockSpec(shape, lambda i, _nd=nd: (0,) * _nd)

    in_specs = [full_spec(x.shape)] + [full_spec(op.shape) for op in operands]
    out_spec = full_spec((m_out, cout_pad))

    # Advisory cost model: per tap, one gather matmul + one weight matmul.
    flops = 0
    bytes_accessed = x.size * x.dtype.itemsize + sum(op.size * op.dtype.itemsize for op in operands)
    m_prev, c_prev_pad = N * H * W, cin_pad
    for lyr in meta["layers"]:
        taps, m, cp = lyr["k"] ** 2, lyr["M"], lyr["cout_pad"]
        flops += taps * (2 * m * m_prev * c_prev_pad + 2 * m * c_prev_pad * cp)
        m_prev, c_prev_pad = m, cp
    bytes_accessed += m_out * cout_pad * 4

    # Everything is VMEM-resident (grid=(1,)); modest explicit budget, safe on v5e/v6e/v7x.
    vmem_bytes = int(min(max(2 * bytes_accessed + (4 << 20), 16 << 20), 32 << 20))

    out = pl.pallas_call(
        _make_encoder_kernel(len(meta["layers"])),
        out_shape=jax.ShapeDtypeStruct((m_out, cout_pad), jnp.float32),
        grid=(1,),
        in_specs=in_specs,
        out_specs=out_spec,
        compiler_params=pltpu.CompilerParams(
            dimension_semantics=("arbitrary",),     # no forced split: trivial per-call work
            vmem_limit_bytes=vmem_bytes,
        ),
        cost_estimate=pl.CostEstimate(flops=flops, transcendentals=0,
                                      bytes_accessed=bytes_accessed),
    )(x, *operands)

    out = out[:, :last["cout"]].reshape(N, last["OH"], last["OW"], last["cout"])
    return jnp.transpose(out, (0, 3, 1, 2))                     # NHWC -> NCHW


def reference_forward(x_nchw, conv_params, bn_params, strides, paddings):
    """Pure-JAX f32 reference (lax conv) for validation."""
    x = x_nchw
    for i, (w, b) in enumerate(conv_params):
        s, p = strides[i + 1], paddings[i + 1]
        x = jax.lax.conv_general_dilated(
            x, w, window_strides=(s, s), padding=[(p, p), (p, p)],
            dimension_numbers=("NCHW", "OIHW", "NCHW"))
        x = x + b[None, :, None, None]
        scale, shift = bn_params[i]
        x = x * scale[None, :, None, None] + shift[None, :, None, None]
        x = jnp.maximum(x, 0.0)
    return x


def make_params(key, channels, kernels, batch_norm):
    """Deterministic parameter init (PyTorch-style uniform fan-in bounds)."""
    conv_params, bn_params = [], []
    for i in range(1, len(channels)):
        cin, cout, k = channels[i - 1], channels[i], kernels[i]
        key, kw, kb = jax.random.split(key, 3)
        bound = float(cin * k * k) ** -0.5
        w = jax.random.uniform(kw, (cout, cin, k, k), jnp.float32, -bound, bound)
        b = jax.random.uniform(kb, (cout,), jnp.float32, -bound, bound)
        conv_params.append((w, b))

        if batch_norm and i < len(channels) - 1:
            # eval-mode BN with deterministic (non-trivial) gamma/beta/mean/var
            gamma = 1.0 + 0.1 * jnp.arange(cout, dtype=jnp.float32)
            beta = 0.05 * jnp.arange(cout, dtype=jnp.float32)
            running_mean = 0.01 * jnp.arange(cout, dtype=jnp.float32)
            running_var = 1.0 + 0.02 * jnp.arange(cout, dtype=jnp.float32)
            eps = 1e-5
            scale = gamma * jax.lax.rsqrt(running_var + eps)
            shift = beta - running_mean * scale
        else:
            scale = jnp.ones((cout,), jnp.float32)
            shift = jnp.zeros((cout,), jnp.float32)
        bn_params.append((scale, shift))
    return conv_params, bn_params


if __name__ == "__main__":
    # Module config: channels=[4, 8, 16], kernels/strides/paddings indexed from 1,
    # activation_func=ReLU, batch_norm=True (applied after every conv except the last).
    channels = [4, 8, 16]
    kernels = [None, 3, 3]
    strides = [None, 2, 2]
    paddings = [None, 1, 1]
    batch_norm = True

    key = jax.random.PRNGKey(0)
    key, kx = jax.random.split(key)
    x = jax.random.normal(kx, (2, 4, 16, 16), jnp.float32)      # NCHW, like PyTorch

    conv_params, bn_params = make_params(key, channels, kernels, batch_norm)

    # One-time fold/pad of weights, shifts and tap-gather matrices (hoisted out of forward).
    operands, meta = prepare_encoder(x.shape, conv_params, bn_params, kernels, strides, paddings)

    fwd = jax.jit(lambda xx, ops: encoder_forward(xx, ops, meta))
    out = jax.block_until_ready(fwd(x, operands))

    ref = jax.block_until_ready(reference_forward(x, conv_params, bn_params, strides, paddings))

    assert out.shape == (2, 16, 4, 4), out.shape
    # bf16 MXU operands (f32 accumulation) -> compare against the f32 reference at bf16 tolerance.
    assert jnp.allclose(out, ref, atol=5e-2, rtol=5e-2), float(jnp.max(jnp.abs(out - ref)))
    print("KERNEL_OK")
</pallas_src>

<mosaic_0001>
module attributes {stable_mosaic.version = 11 : i64} {
  func.func @kernel(%arg0: i32, %arg1: memref<512x128xbf16, #tpu.memory_space<vmem>>, %arg2: memref<9x128x512xbf16, #tpu.memory_space<vmem>>, %arg3: memref<9x128x128xbf16, #tpu.memory_space<vmem>>, %arg4: memref<1x128xf32, #tpu.memory_space<vmem>>, %arg5: memref<9x32x128xbf16, #tpu.memory_space<vmem>>, %arg6: memref<9x128x128xbf16, #tpu.memory_space<vmem>>, %arg7: memref<1x128xf32, #tpu.memory_space<vmem>>, %arg8: memref<32x128xf32, #tpu.memory_space<vmem>>) attributes {dimension_semantics = [#tpu.dimension_semantics<arbitrary>], iteration_bounds = array<i64: 1>, scalar_prefetch = 0 : i64, scratch_operands = 0 : i64, tpu.core_type = #tpu.core_type<tc>, window_params = [{pipeline_mode = #tpu.pipeline_mode<synchronous>, transform_indices = @transform_0, window_bounds = array<i64: 512, 128>}, {pipeline_mode = #tpu.pipeline_mode<synchronous>, transform_indices = @transform_1, window_bounds = array<i64: 9, 128, 512>}, {pipeline_mode = #tpu.pipeline_mode<synchronous>, transform_indices = @transform_2, window_bounds = array<i64: 9, 128, 128>}, {pipeline_mode = #tpu.pipeline_mode<synchronous>, transform_indices = @transform_3, window_bounds = array<i64: 1, 128>}, {pipeline_mode = #tpu.pipeline_mode<synchronous>, transform_indices = @transform_4, window_bounds = array<i64: 9, 32, 128>}, {pipeline_mode = #tpu.pipeline_mode<synchronous>, transform_indices = @transform_5, window_bounds = array<i64: 9, 128, 128>}, {pipeline_mode = #tpu.pipeline_mode<synchronous>, transform_indices = @transform_6, window_bounds = array<i64: 1, 128>}, {pipeline_mode = #tpu.pipeline_mode<synchronous>, transform_indices = @transform_7, window_bounds = array<i64: 32, 128>}]} {
    %c0 = arith.constant 0 : index
    %c0_0 = arith.constant 0 : index
    %0 = vector.load %arg1[%c0, %c0_0] : memref<512x128xbf16, #tpu.memory_space<vmem>>, vector<512x128xbf16>
    %cst = arith.constant 0.000000e+00 : f32
    %1 = vector.broadcast %cst : f32 to vector<128x128xf32>
    %c0_1 = arith.constant 0 : index
    %c0_2 = arith.constant 0 : index
    %c0_3 = arith.constant 0 : index
    %2 = vector.load %arg2[%c0_1, %c0_2, %c0_3] : memref<9x128x512xbf16, #tpu.memory_space<vmem>>, vector<1x128x512xbf16>
    %3 = vector.shape_cast %2 : vector<1x128x512xbf16> to vector<128x512xbf16>
    %cst_4 = arith.constant dense<0.000000e+00> : vector<128x128xf32>
    %4 = tpu.matmul %3, %0, %cst_4 {dimension_numbers = #tpu.dot_dimension_numbers<[1], [0], [0], [1], [0, 0, 1, 1], [], []>} : vector<128x512xbf16>, vector<512x128xbf16>, vector<128x128xf32> -> vector<128x128xf32>
    %5 = arith.truncf %4 : vector<128x128xf32> to vector<128x128xbf16>
    %c0_5 = arith.constant 0 : index
    %c0_6 = arith.constant 0 : index
    %c0_7 = arith.constant 0 : index
    %6 = vector.load %arg3[%c0_5, %c0_6, %c0_7] : memref<9x128x128xbf16, #tpu.memory_space<vmem>>, vector<1x128x128xbf16>
    %7 = vector.shape_cast %6 : vector<1x128x128xbf16> to vector<128x128xbf16>
    %cst_8 = arith.constant dense<0.000000e+00> : vector<128x128xf32>
    %8 = tpu.matmul %5, %7, %cst_8 {dimension_numbers = #tpu.dot_dimension_numbers<[1], [0], [0], [1], [0, 0, 1, 1], [], []>} : vector<128x128xbf16>, vector<128x128xbf16>, vector<128x128xf32> -> vector<128x128xf32>
    %9 = arith.addf %1, %8 : vector<128x128xf32>
    %c1 = arith.constant 1 : index
    %c0_9 = arith.constant 0 : index
    %c0_10 = arith.constant 0 : index
    %10 = vector.load %arg2[%c1, %c0_9, %c0_10] : memref<9x128x512xbf16, #tpu.memory_space<vmem>>, vector<1x128x512xbf16>
    %11 = vector.shape_cast %10 : vector<1x128x512xbf16> to vector<128x512xbf16>
    %cst_11 = arith.constant dense<0.000000e+00> : vector<128x128xf32>
    %12 = tpu.matmul %11, %0, %cst_11 {dimension_numbers = #tpu.dot_dimension_numbers<[1], [0], [0], [1], [0, 0, 1, 1], [], []>} : vector<128x512xbf16>, vector<512x128xbf16>, vector<128x128xf32> -> vector<128x128xf32>
    %13 = arith.truncf %12 : vector<128x128xf32> to vector<128x128xbf16>
    %c1_12 = arith.constant 1 : index
    %c0_13 = arith.constant 0 : index
    %c0_14 = arith.constant 0 : index
    %14 = vector.load %arg3[%c1_12, %c0_13, %c0_14] : memref<9x128x128xbf16, #tpu.memory_space<vmem>>, vector<1x128x128xbf16>
    %15 = vector.shape_cast %14 : vector<1x128x128xbf16> to vector<128x128xbf16>
    %cst_15 = arith.constant dense<0.000000e+00> : vector<128x128xf32>
    %16 = tpu.matmul %13, %15, %cst_15 {dimension_numbers = #tpu.dot_dimension_numbers<[1], [0], [0], [1], [0, 0, 1, 1], [], []>} : vector<128x128xbf16>, vector<128x128xbf16>, vector<128x128xf32> -> vector<128x128xf32>
    %17 = arith.addf %9, %16 : vector<128x128xf32>
    %c2 = arith.constant 2 : index
    %c0_16 = arith.constant 0 : index
    %c0_17 = arith.constant 0 : index
    %18 = vector.load %arg2[%c2, %c0_16, %c0_17] : memref<9x128x512xbf16, #tpu.memory_space<vmem>>, vector<1x128x512xbf16>
    %19 = vector.shape_cast %18 : vector<1x128x512xbf16> to vector<128x512xbf16>
    %cst_18 = arith.constant dense<0.000000e+00> : vector<128x128xf32>
    %20 = tpu.matmul %19, %0, %cst_18 {dimension_numbers = #tpu.dot_dimension_numbers<[1], [0], [0], [1], [0, 0, 1, 1], [], []>} : vector<128x512xbf16>, vector<512x128xbf16>, vector<128x128xf32> -> vector<128x128xf32>
    %21 = arith.truncf %20 : vector<128x128xf32> to vector<128x128xbf16>
    %c2_19 = arith.constant 2 : index
    %c0_20 = arith.constant 0 : index
    %c0_21 = arith.constant 0 : index
    %22 = vector.load %arg3[%c2_19, %c0_20, %c0_21] : memref<9x128x128xbf16, #tpu.memory_space<vmem>>, vector<1x128x128xbf16>
    %23 = vector.shape_cast %22 : vector<1x128x128xbf16> to vector<128x128xbf16>
    %cst_22 = arith.constant dense<0.000000e+00> : vector<128x128xf32>
    %24 = tpu.matmul %21, %23, %cst_22 {dimension_numbers = #tpu.dot_dimension_numbers<[1], [0], [0], [1], [0, 0, 1, 1], [], []>} : vector<128x128xbf16>, vector<128x128xbf16>, vector<128x128xf32> -> vector<128x128xf32>
    %25 = arith.addf %17, %24 : vector<128x128xf32>
    %c3 = arith.constant 3 : index
    %c0_23 = arith.constant 0 : index
    %c0_24 = arith.constant 0 : index
    %26 = vector.load %arg2[%c3, %c0_23, %c0_24] : memref<9x128x512xbf16, #tpu.memory_space<vmem>>, vector<1x128x512xbf16>
    %27 = vector.shape_cast %26 : vector<1x128x512xbf16> to vector<128x512xbf16>
    %cst_25 = arith.constant dense<0.000000e+00> : vector<128x128xf32>
    %28 = tpu.matmul %27, %0, %cst_25 {dimension_numbers = #tpu.dot_dimension_numbers<[1], [0], [0], [1], [0, 0, 1, 1], [], []>} : vector<128x512xbf16>, vector<512x128xbf16>, vector<128x128xf32> -> vector<128x128xf32>
    %29 = arith.truncf %28 : vector<128x128xf32> to vector<128x128xbf16>
    %c3_26 = arith.constant 3 : index
    %c0_27 = arith.constant 0 : index
    %c0_28 = arith.constant 0 : index
    %30 = vector.load %arg3[%c3_26, %c0_27, %c0_28] : memref<9x128x128xbf16, #tpu.memory_space<vmem>>, vector<1x128x128xbf16>
    %31 = vector.shape_cast %30 : vector<1x128x128xbf16> to vector<128x128xbf16>
    %cst_29 = arith.constant dense<0.000000e+00> : vector<128x128xf32>
    %32 = tpu.matmul %29, %31, %cst_29 {dimension_numbers = #tpu.dot_dimension_numbers<[1], [0], [0], [1], [0, 0, 1, 1], [], []>} : vector<128x128xbf16>, vector<128x128xbf16>, vector<128x128xf32> -> vector<128x128xf32>
    %33 = arith.addf %25, %32 : vector<128x128xf32>
    %c4 = arith.constant 4 : index
    %c0_30 = arith.constant 0 : index
    %c0_31 = arith.constant 0 : index
    %34 = vector.load %arg2[%c4, %c0_30, %c0_31] : memref<9x128x512xbf16, #tpu.memory_space<vmem>>, vector<1x128x512xbf16>
    %35 = vector.shape_cast %34 : vector<1x128x512xbf16> to vector<128x512xbf16>
    %cst_32 = arith.constant dense<0.000000e+00> : vector<128x128xf32>
    %36 = tpu.matmul %35, %0, %cst_32 {dimension_numbers = #tpu.dot_dimension_numbers<[1], [0], [0], [1], [0, 0, 1, 1], [], []>} : vector<128x512xbf16>, vector<512x128xbf16>, vector<128x128xf32> -> vector<128x128xf32>
    %37 = arith.truncf %36 : vector<128x128xf32> to vector<128x128xbf16>
    %c4_33 = arith.constant 4 : index
    %c0_34 = arith.constant 0 : index
    %c0_35 = arith.constant 0 : index
    %38 = vector.load %arg3[%c4_33, %c0_34, %c0_35] : memref<9x128x128xbf16, #tpu.memory_space<vmem>>, vector<1x128x128xbf16>
    %39 = vector.shape_cast %38 : vector<1x128x128xbf16> to vector<128x128xbf16>
    %cst_36 = arith.constant dense<0.000000e+00> : vector<128x128xf32>
    %40 = tpu.matmul %37, %39, %cst_36 {dimension_numbers = #tpu.dot_dimension_numbers<[1], [0], [0], [1], [0, 0, 1, 1], [], []>} : vector<128x128xbf16>, vector<128x128xbf16>, vector<128x128xf32> -> vector<128x128xf32>
    %41 = arith.addf %33, %40 : vector<128x128xf32>
    %c5 = arith.constant 5 : index
    %c0_37 = arith.constant 0 : index
    %c0_38 = arith.constant 0 : index
    %42 = vector.load %arg2[%c5, %c0_37, %c0_38] : memref<9x128x512xbf16, #tpu.memory_space<vmem>>, vector<1x128x512xbf16>
    %43 = vector.shape_cast %42 : vector<1x128x512xbf16> to vector<128x512xbf16>
    %cst_39 = arith.constant dense<0.000000e+00> : vector<128x128xf32>
    %44 = tpu.matmul %43, %0, %cst_39 {dimension_numbers = #tpu.dot_dimension_numbers<[1], [0], [0], [1], [0, 0, 1, 1], [], []>} : vector<128x512xbf16>, vector<512x128xbf16>, vector<128x128xf32> -> vector<128x128xf32>
    %45 = arith.truncf %44 : vector<128x128xf32> to vector<128x128xbf16>
    %c5_40 = arith.constant 5 : index
    %c0_41 = arith.constant 0 : index
    %c0_42 = arith.constant 0 : index
    %46 = vector.load %arg3[%c5_40, %c0_41, %c0_42] : memref<9x128x128xbf16, #tpu.memory_space<vmem>>, vector<1x128x128xbf16>
    %47 = vector.shape_cast %46 : vector<1x128x128xbf16> to vector<128x128xbf16>
    %cst_43 = arith.constant dense<0.000000e+00> : vector<128x128xf32>
    %48 = tpu.matmul %45, %47, %cst_43 {dimension_numbers = #tpu.dot_dimension_numbers<[1], [0], [0], [1], [0, 0, 1, 1], [], []>} : vector<128x128xbf16>, vector<128x128xbf16>, vector<128x128xf32> -> vector<128x128xf32>
    %49 = arith.addf %41, %48 : vector<128x128xf32>
    %c6 = arith.constant 6 : index
    %c0_44 = arith.constant 0 : index
    %c0_45 = arith.constant 0 : index
    %50 = vector.load %arg2[%c6, %c0_44, %c0_45] : memref<9x128x512xbf16, #tpu.memory_space<vmem>>, vector<1x128x512xbf16>
    %51 = vector.shape_cast %50 : vector<1x128x512xbf16> to vector<128x512xbf16>
    %cst_46 = arith.constant dense<0.000000e+00> : vector<128x128xf32>
    %52 = tpu.matmul %51, %0, %cst_46 {dimension_numbers = #tpu.dot_dimension_numbers<[1], [0], [0], [1], [0, 0, 1, 1], [], []>} : vector<128x512xbf16>, vector<512x128xbf16>, vector<128x128xf32> -> vector<128x128xf32>
    %53 = arith.truncf %52 : vector<128x128xf32> to vector<128x128xbf16>
    %c6_47 = arith.constant 6 : index
    %c0_48 = arith.constant 0 : index
    %c0_49 = arith.constant 0 : index
    %54 = vector.load %arg3[%c6_47, %c0_48, %c0_49] : memref<9x128x128xbf16, #tpu.memory_space<vmem>>, vector<1x128x128xbf16>
    %55 = vector.shape_cast %54 : vector<1x128x128xbf16> to vector<128x128xbf16>
    %cst_50 = arith.constant dense<0.000000e+00> : vector<128x128xf32>
    %56 = tpu.matmul %53, %55, %cst_50 {dimension_numbers = #tpu.dot_dimension_numbers<[1], [0], [0], [1], [0, 0, 1, 1], [], []>} : vector<128x128xbf16>, vector<128x128xbf16>, vector<128x128xf32> -> vector<128x128xf32>
    %57 = arith.addf %49, %56 : vector<128x128xf32>
    %c7 = arith.constant 7 : index
    %c0_51 = arith.constant 0 : index
    %c0_52 = arith.constant 0 : index
    %58 = vector.load %arg2[%c7, %c0_51, %c0_52] : memref<9x128x512xbf16, #tpu.memory_space<vmem>>, vector<1x128x512xbf16>
    %59 = vector.shape_cast %58 : vector<1x128x512xbf16> to vector<128x512xbf16>
    %cst_53 = arith.constant dense<0.000000e+00> : vector<128x128xf32>
    %60 = tpu.matmul %59, %0, %cst_53 {dimension_numbers = #tpu.dot_dimension_numbers<[1], [0], [0], [1], [0, 0, 1, 1], [], []>} : vector<128x512xbf16>, vector<512x128xbf16>, vector<128x128xf32> -> vector<128x128xf32>
    %61 = arith.truncf %60 : vector<128x128xf32> to vector<128x128xbf16>
    %c7_54 = arith.constant 7 : index
    %c0_55 = arith.constant 0 : index
    %c0_56 = arith.constant 0 : index
    %62 = vector.load %arg3[%c7_54, %c0_55, %c0_56] : memref<9x128x128xbf16, #tpu.memory_space<vmem>>, vector<1x128x128xbf16>
    %63 = vector.shape_cast %62 : vector<1x128x128xbf16> to vector<128x128xbf16>
    %cst_57 = arith.constant dense<0.000000e+00> : vector<128x128xf32>
    %64 = tpu.matmul %61, %63, %cst_57 {dimension_numbers = #tpu.dot_dimension_numbers<[1], [0], [0], [1], [0, 0, 1, 1], [], []>} : vector<128x128xbf16>, vector<128x128xbf16>, vector<128x128xf32> -> vector<128x128xf32>
    %65 = arith.addf %57, %64 : vector<128x128xf32>
    %c8 = arith.constant 8 : index
    %c0_58 = arith.constant 0 : index
    %c0_59 = arith.constant 0 : index
    %66 = vector.load %arg2[%c8, %c0_58, %c0_59] : memref<9x128x512xbf16, #tpu.memory_space<vmem>>, vector<1x128x512xbf16>
    %67 = vector.shape_cast %66 : vector<1x128x512xbf16> to vector<128x512xbf16>
    %cst_60 = arith.constant dense<0.000000e+00> : vector<128x128xf32>
    %68 = tpu.matmul %67, %0, %cst_60 {dimension_numbers = #tpu.dot_dimension_numbers<[1], [0], [0], [1], [0, 0, 1, 1], [], []>} : vector<128x512xbf16>, vector<512x128xbf16>, vector<128x128xf32> -> vector<128x128xf32>
    %69 = arith.truncf %68 : vector<128x128xf32> to vector<128x128xbf16>
    %c8_61 = arith.constant 8 : index
    %c0_62 = arith.constant 0 : index
    %c0_63 = arith.constant 0 : index
    %70 = vector.load %arg3[%c8_61, %c0_62, %c0_63] : memref<9x128x128xbf16, #tpu.memory_space<vmem>>, vector<1x128x128xbf16>
    %71 = vector.shape_cast %70 : vector<1x128x128xbf16> to vector<128x128xbf16>
    %cst_64 = arith.constant dense<0.000000e+00> : vector<128x128xf32>
    %72 = tpu.matmul %69, %71, %cst_64 {dimension_numbers = #tpu.dot_dimension_numbers<[1], [0], [0], [1], [0, 0, 1, 1], [], []>} : vector<128x128xbf16>, vector<128x128xbf16>, vector<128x128xf32> -> vector<128x128xf32>
    %73 = arith.addf %65, %72 : vector<128x128xf32>
    %c0_65 = arith.constant 0 : index
    %c0_66 = arith.constant 0 : index
    %74 = vector.load %arg4[%c0_65, %c0_66] : memref<1x128xf32, #tpu.memory_space<vmem>>, vector<1x128xf32>
    %75 = vector.broadcast %74 : vector<1x128xf32> to vector<128x128xf32>
    %76 = arith.addf %73, %75 : vector<128x128xf32>
    %cst_67 = arith.constant 0.000000e+00 : f32
    %77 = vector.broadcast %cst_67 : f32 to vector<128x128xf32>
    %78 = arith.maximumf %76, %77 : vector<128x128xf32>
    %79 = arith.truncf %78 : vector<128x128xf32> to vector<128x128xbf16>
    %cst_68 = arith.constant 0.000000e+00 : f32
    %80 = vector.broadcast %cst_68 : f32 to vector<32x128xf32>
    %c0_69 = arith.constant 0 : index
    %c0_70 = arith.constant 0 : index
    %c0_71 = arith.constant 0 : index
    %81 = vector.load %arg5[%c0_69, %c0_70, %c0_71] : memref<9x32x128xbf16, #tpu.memory_space<vmem>>, vector<1x32x128xbf16>
    %82 = vector.shape_cast %81 : vector<1x32x128xbf16> to vector<32x128xbf16>
    %cst_72 = arith.constant dense<0.000000e+00> : vector<32x128xf32>
    %83 = tpu.matmul %82, %79, %cst_72 {dimension_numbers = #tpu.dot_dimension_numbers<[1], [0], [0], [1], [0, 0, 1, 1], [], []>} : vector<32x128xbf16>, vector<128x128xbf16>, vector<32x128xf32> -> vector<32x128xf32>
    %84 = arith.truncf %83 : vector<32x128xf32> to vector<32x128xbf16>
    %c0_73 = arith.constant 0 : index
    %c0_74 = arith.constant 0 : index
    %c0_75 = arith.constant 0 : index
    %85 = vector.load %arg6[%c0_73, %c0_74, %c0_75] : memref<9x128x128xbf16, #tpu.memory_space<vmem>>, vector<1x128x128xbf16>
    %86 = vector.shape_cast %85 : vector<1x128x128xbf16> to vector<128x128xbf16>
    %cst_76 = arith.constant dense<0.000000e+00> : vector<32x128xf32>
    %87 = tpu.matmul %84, %86, %cst_76 {dimension_numbers = #tpu.dot_dimension_numbers<[1], [0], [0], [1], [0, 0, 1, 1], [], []>} : vector<32x128xbf16>, vector<128x128xbf16>, vector<32x128xf32> -> vector<32x128xf32>
    %88 = arith.addf %80, %87 : vector<32x128xf32>
    %c1_77 = arith.constant 1 : index
    %c0_78 = arith.constant 0 : index
    %c0_79 = arith.constant 0 : index
    %89 = vector.load %arg5[%c1_77, %c0_78, %c0_79] : memref<9x32x128xbf16, #tpu.memory_space<vmem>>, vector<1x32x128xbf16>
    %90 = vector.shape_cast %89 : vector<1x32x128xbf16> to vector<32x128xbf16>
    %cst_80 = arith.constant dense<0.000000e+00> : vector<32x128xf32>
    %91 = tpu.matmul %90, %79, %cst_80 {dimension_numbers = #tpu.dot_dimension_numbers<[1], [0], [0], [1], [0, 0, 1, 1], [], []>} : vector<32x128xbf16>, vector<128x128xbf16>, vector<32x128xf32> -> vector<32x128xf32>
    %92 = arith.truncf %91 : vector<32x128xf32> to vector<32x128xbf16>
    %c1_81 = arith.constant 1 : index
    %c0_82 = arith.constant 0 : index
    %c0_83 = arith.constant 0 : index
    %93 = vector.load %arg6[%c1_81, %c0_82, %c0_83] : memref<9x128x128xbf16, #tpu.memory_space<vmem>>, vector<1x128x128xbf16>
    %94 = vector.shape_cast %93 : vector<1x128x128xbf16> to vector<128x128xbf16>
    %cst_84 = arith.constant dense<0.000000e+00> : vector<32x128xf32>
    %95 = tpu.matmul %92, %94, %cst_84 {dimension_numbers = #tpu.dot_dimension_numbers<[1], [0], [0], [1], [0, 0, 1, 1], [], []>} : vector<32x128xbf16>, vector<128x128xbf16>, vector<32x128xf32> -> vector<32x128xf32>
    %96 = arith.addf %88, %95 : vector<32x128xf32>
    %c2_85 = arith.constant 2 : index
    %c0_86 = arith.constant 0 : index
    %c0_87 = arith.constant 0 : index
    %97 = vector.load %arg5[%c2_85, %c0_86, %c0_87] : memref<9x32x128xbf16, #tpu.memory_space<vmem>>, vector<1x32x128xbf16>
    %98 = vector.shape_cast %97 : vector<1x32x128xbf16> to vector<32x128xbf16>
    %cst_88 = arith.constant dense<0.000000e+00> : vector<32x128xf32>
    %99 = tpu.matmul %98, %79, %cst_88 {dimension_numbers = #tpu.dot_dimension_numbers<[1], [0], [0], [1], [0, 0, 1, 1], [], []>} : vector<32x128xbf16>, vector<128x128xbf16>, vector<32x128xf32> -> vector<32x128xf32>
    %100 = arith.truncf %99 : vector<32x128xf32> to vector<32x128xbf16>
    %c2_89 = arith.constant 2 : index
    %c0_90 = arith.constant 0 : index
    %c0_91 = arith.constant 0 : index
    %101 = vector.load %arg6[%c2_89, %c0_90, %c0_91] : memref<9x128x128xbf16, #tpu.memory_space<vmem>>, vector<1x128x128xbf16>
    %102 = vector.shape_cast %101 : vector<1x128x128xbf16> to vector<128x128xbf16>
    %cst_92 = arith.constant dense<0.000000e+00> : vector<32x128xf32>
    %103 = tpu.matmul %100, %102, %cst_92 {dimension_numbers = #tpu.dot_dimension_numbers<[1], [0], [0], [1], [0, 0, 1, 1], [], []>} : vector<32x128xbf16>, vector<128x128xbf16>, vector<32x128xf32> -> vector<32x128xf32>
    %104 = arith.addf %96, %103 : vector<32x128xf32>
    %c3_93 = arith.constant 3 : index
    %c0_94 = arith.constant 0 : index
    %c0_95 = arith.constant 0 : index
    %105 = vector.load %arg5[%c3_93, %c0_94, %c0_95] : memref<9x32x128xbf16, #tpu.memory_space<vmem>>, vector<1x32x128xbf16>
    %106 = vector.shape_cast %105 : vector<1x32x128xbf16> to vector<32x128xbf16>
    %cst_96 = arith.constant dense<0.000000e+00> : vector<32x128xf32>
    %107 = tpu.matmul %106, %79, %cst_96 {dimension_numbers = #tpu.dot_dimension_numbers<[1], [0], [0], [1], [0, 0, 1, 1], [], []>} : vector<32x128xbf16>, vector<128x128xbf16>, vector<32x128xf32> -> vector<32x128xf32>
    %108 = arith.truncf %107 : vector<32x128xf32> to vector<32x128xbf16>
    %c3_97 = arith.constant 3 : index
    %c0_98 = arith.constant 0 : index
    %c0_99 = arith.constant 0 : index
    %109 = vector.load %arg6[%c3_97, %c0_98, %c0_99] : memref<9x128x128xbf16, #tpu.memory_space<vmem>>, vector<1x128x128xbf16>
    %110 = vector.shape_cast %109 : vector<1x128x128xbf16> to vector<128x128xbf16>
    %cst_100 = arith.constant dense<0.000000e+00> : vector<32x128xf32>
    %111 = tpu.matmul %108, %110, %cst_100 {dimension_numbers = #tpu.dot_dimension_numbers<[1], [0], [0], [1], [0, 0, 1, 1], [], []>} : vector<32x128xbf16>, vector<128x128xbf16>, vector<32x128xf32> -> vector<32x128xf32>
    %112 = arith.addf %104, %111 : vector<32x128xf32>
    %c4_101 = arith.constant 4 : index
    %c0_102 = arith.constant 0 : index
    %c0_103 = arith.constant 0 : index
    %113 = vector.load %arg5[%c4_101, %c0_102, %c0_103] : memref<9x32x128xbf16, #tpu.memory_space<vmem>>, vector<1x32x128xbf16>
    %114 = vector.shape_cast %113 : vector<1x32x128xbf16> to vector<32x128xbf16>
    %cst_104 = arith.constant dense<0.000000e+00> : vector<32x128xf32>
    %115 = tpu.matmul %114, %79, %cst_104 {dimension_numbers = #tpu.dot_dimension_numbers<[1], [0], [0], [1], [0, 0, 1, 1], [], []>} : vector<32x128xbf16>, vector<128x128xbf16>, vector<32x128xf32> -> vector<32x128xf32>
    %116 = arith.truncf %115 : vector<32x128xf32> to vector<32x128xbf16>
    %c4_105 = arith.constant 4 : index
    %c0_106 = arith.constant 0 : index
    %c0_107 = arith.constant 0 : index
    %117 = vector.load %arg6[%c4_105, %c0_106, %c0_107] : memref<9x128x128xbf16, #tpu.memory_space<vmem>>, vector<1x128x128xbf16>
    %118 = vector.shape_cast %117 : vector<1x128x128xbf16> to vector<128x128xbf16>
    %cst_108 = arith.constant dense<0.000000e+00> : vector<32x128xf32>
    %119 = tpu.matmul %116, %118, %cst_108 {dimension_numbers = #tpu.dot_dimension_numbers<[1], [0], [0], [1], [0, 0, 1, 1], [], []>} : vector<32x128xbf16>, vector<128x128xbf16>, vector<32x128xf32> -> vector<32x128xf32>
    %120 = arith.addf %112, %119 : vector<32x128xf32>
    %c5_109 = arith.constant 5 : index
    %c0_110 = arith.constant 0 : index
    %c0_111 = arith.constant 0 : index
    %121 = vector.load %arg5[%c5_109, %c0_110, %c0_111] : memref<9x32x128xbf16, #tpu.memory_space<vmem>>, vector<1x32x128xbf16>
    %122 = vector.shape_cast %121 : vector<1x32x128xbf16> to vector<32x128xbf16>
    %cst_112 = arith.constant dense<0.000000e+00> : vector<32x128xf32>
    %123 = tpu.matmul %122, %79, %cst_112 {dimension_numbers = #tpu.dot_dimension_numbers<[1], [0], [0], [1], [0, 0, 1, 1], [], []>} : vector<32x128xbf16>, vector<128x128xbf16>, vector<32x128xf32> -> vector<32x128xf32>
    %124 = arith.truncf %123 : vector<32x128xf32> to vector<32x128xbf16>
    %c5_113 = arith.constant 5 : index
    %c0_114 = arith.constant 0 : index
    %c0_115 = arith.constant 0 : index
    %125 = vector.load %arg6[%c5_113, %c0_114, %c0_115] : memref<9x128x128xbf16, #tpu.memory_space<vmem>>, vector<1x128x128xbf16>
    %126 = vector.shape_cast %125 : vector<1x128x128xbf16> to vector<128x128xbf16>
    %cst_116 = arith.constant dense<0.000000e+00> : vector<32x128xf32>
    %127 = tpu.matmul %124, %126, %cst_116 {dimension_numbers = #tpu.dot_dimension_numbers<[1], [0], [0], [1], [0, 0, 1, 1], [], []>} : vector<32x128xbf16>, vector<128x128xbf16>, vector<32x128xf32> -> vector<32x128xf32>
    %128 = arith.addf %120, %127 : vector<32x128xf32>
    %c6_117 = arith.constant 6 : index
    %c0_118 = arith.constant 0 : index
    %c0_119 = arith.constant 0 : index
    %129 = vector.load %arg5[%c6_117, %c0_118, %c0_119] : memref<9x32x128xbf16, #tpu.memory_space<vmem>>, vector<1x32x128xbf16>
    %130 = vector.shape_cast %129 : vector<1x32x128xbf16> to vector<32x128xbf16>
    %cst_120 = arith.constant dense<0.000000e+00> : vector<32x128xf32>
    %131 = tpu.matmul %130, %79, %cst_120 {dimension_numbers = #tpu.dot_dimension_numbers<[1], [0], [0], [1], [0, 0, 1, 1], [], []>} : vector<32x128xbf16>, vector<128x128xbf16>, vector<32x128xf32> -> vector<32x128xf32>
    %132 = arith.truncf %131 : vector<32x128xf32> to vector<32x128xbf16>
    %c6_121 = arith.constant 6 : index
    %c0_122 = arith.constant 0 : index
    %c0_123 = arith.constant 0 : index
    %133 = vector.load %arg6[%c6_121, %c0_122, %c0_123] : memref<9x128x128xbf16, #tpu.memory_space<vmem>>, vector<1x128x128xbf16>
    %134 = vector.shape_cast %133 : vector<1x128x128xbf16> to vector<128x128xbf16>
    %cst_124 = arith.constant dense<0.000000e+00> : vector<32x128xf32>
    %135 = tpu.matmul %132, %134, %cst_124 {dimension_numbers = #tpu.dot_dimension_numbers<[1], [0], [0], [1], [0, 0, 1, 1], [], []>} : vector<32x128xbf16>, vector<128x128xbf16>, vector<32x128xf32> -> vector<32x128xf32>
    %136 = arith.addf %128, %135 : vector<32x128xf32>
    %c7_125 = arith.constant 7 : index
    %c0_126 = arith.constant 0 : index
    %c0_127 = arith.constant 0 : index
    %137 = vector.load %arg5[%c7_125, %c0_126, %c0_127] : memref<9x32x128xbf16, #tpu.memory_space<vmem>>, vector<1x32x128xbf16>
    %138 = vector.shape_cast %137 : vector<1x32x128xbf16> to vector<32x128xbf16>
    %cst_128 = arith.constant dense<0.000000e+00> : vector<32x128xf32>
    %139 = tpu.matmul %138, %79, %cst_128 {dimension_numbers = #tpu.dot_dimension_numbers<[1], [0], [0], [1], [0, 0, 1, 1], [], []>} : vector<32x128xbf16>, vector<128x128xbf16>, vector<32x128xf32> -> vector<32x128xf32>
    %140 = arith.truncf %139 : vector<32x128xf32> to vector<32x128xbf16>
    %c7_129 = arith.constant 7 : index
    %c0_130 = arith.constant 0 : index
    %c0_131 = arith.constant 0 : index
    %141 = vector.load %arg6[%c7_129, %c0_130, %c0_131] : memref<9x128x128xbf16, #tpu.memory_space<vmem>>, vector<1x128x128xbf16>
    %142 = vector.shape_cast %141 : vector<1x128x128xbf16> to vector<128x128xbf16>
    %cst_132 = arith.constant dense<0.000000e+00> : vector<32x128xf32>
    %143 = tpu.matmul %140, %142, %cst_132 {dimension_numbers = #tpu.dot_dimension_numbers<[1], [0], [0], [1], [0, 0, 1, 1], [], []>} : vector<32x128xbf16>, vector<128x128xbf16>, vector<32x128xf32> -> vector<32x128xf32>
    %144 = arith.addf %136, %143 : vector<32x128xf32>
    %c8_133 = arith.constant 8 : index
    %c0_134 = arith.constant 0 : index
    %c0_135 = arith.constant 0 : index
    %145 = vector.load %arg5[%c8_133, %c0_134, %c0_135] : memref<9x32x128xbf16, #tpu.memory_space<vmem>>, vector<1x32x128xbf16>
    %146 = vector.shape_cast %145 : vector<1x32x128xbf16> to vector<32x128xbf16>
    %cst_136 = arith.constant dense<0.000000e+00> : vector<32x128xf32>
    %147 = tpu.matmul %146, %79, %cst_136 {dimension_numbers = #tpu.dot_dimension_numbers<[1], [0], [0], [1], [0, 0, 1, 1], [], []>} : vector<32x128xbf16>, vector<128x128xbf16>, vector<32x128xf32> -> vector<32x128xf32>
    %148 = arith.truncf %147 : vector<32x128xf32> to vector<32x128xbf16>
    %c8_137 = arith.constant 8 : index
    %c0_138 = arith.constant 0 : index
    %c0_139 = arith.constant 0 : index
    %149 = vector.load %arg6[%c8_137, %c0_138, %c0_139] : memref<9x128x128xbf16, #tpu.memory_space<vmem>>, vector<1x128x128xbf16>
    %150 = vector.shape_cast %149 : vector<1x128x128xbf16> to vector<128x128xbf16>
    %cst_140 = arith.constant dense<0.000000e+00> : vector<32x128xf32>
    %151 = tpu.matmul %148, %150, %cst_140 {dimension_numbers = #tpu.dot_dimension_numbers<[1], [0], [0], [1], [0, 0, 1, 1], [], []>} : vector<32x128xbf16>, vector<128x128xbf16>, vector<32x128xf32> -> vector<32x128xf32>
    %152 = arith.addf %144, %151 : vector<32x128xf32>
    %c0_141 = arith.constant 0 : index
    %c0_142 = arith.constant 0 : index
    %153 = vector.load %arg7[%c0_141, %c0_142] : memref<1x128xf32, #tpu.memory_space<vmem>>, vector<1x128xf32>
    %154 = vector.broadcast %153 : vector<1x128xf32> to vector<32x128xf32>
    %155 = arith.addf %152, %154 : vector<32x128xf32>
    %cst_143 = arith.constant 0.000000e+00 : f32
    %156 = vector.broadcast %cst_143 : f32 to vector<32x128xf32>
    %157 = arith.maximumf %155, %156 : vector<32x128xf32>
    %c0_144 = arith.constant 0 : index
    %c0_145 = arith.constant 0 : index
    %158 = vector.load %arg8[%c0_144, %c0_145] : memref<32x128xf32, #tpu.memory_space<vmem>>, vector<32x128xf32>
    tpu.vector_store %arg8[%c0_144, %c0_145], %157 {strides = array<i32>} : memref<32x128xf32, #tpu.memory_space<vmem>>, vector<32x128xf32>,
    return
  }
  func.func @transform_0(%arg0: i32) -> (i32, i32) {
    %c0_i32 = arith.constant 0 : i32
    %c0_i32_0 = arith.constant 0 : i32
    %c0_i32_1 = arith.constant 0 : i32
    return %c0_i32, %c0_i32_0 : i32, i32
  }
  func.func @transform_1(%arg0: i32) -> (i32, i32, i32) {
    %c0_i32 = arith.constant 0 : i32
    %c0_i32_0 = arith.constant 0 : i32
    %c0_i32_1 = arith.constant 0 : i32
    %c0_i32_2 = arith.constant 0 : i32
    return %c0_i32, %c0_i32_0, %c0_i32_1 : i32, i32, i32
  }
  func.func @transform_2(%arg0: i32) -> (i32, i32, i32) {
    %c0_i32 = arith.constant 0 : i32
    %c0_i32_0 = arith.constant 0 : i32
    %c0_i32_1 = arith.constant 0 : i32
    %c0_i32_2 = arith.constant 0 : i32
    return %c0_i32, %c0_i32_0, %c0_i32_1 : i32, i32, i32
  }
  func.func @transform_3(%arg0: i32) -> (i32, i32) {
    %c0_i32 = arith.constant 0 : i32
    %c0_i32_0 = arith.constant 0 : i32
    %c0_i32_1 = arith.constant 0 : i32
    return %c0_i32, %c0_i32_0 : i32, i32
  }
  func.func @transform_4(%arg0: i32) -> (i32, i32, i32) {
    %c0_i32 = arith.constant 0 : i32
    %c0_i32_0 = arith.constant 0 : i32
    %c0_i32_1 = arith.constant 0 : i32
    %c0_i32_2 = arith.constant 0 : i32
    return %c0_i32, %c0_i32_0, %c0_i32_1 : i32, i32, i32
  }
  func.func @transform_5(%arg0: i32) -> (i32, i32, i32) {
    %c0_i32 = arith.constant 0 : i32
    %c0_i32_0 = arith.constant 0 : i32
    %c0_i32_1 = arith.constant 0 : i32
    %c0_i32_2 = arith.constant 0 : i32
    return %c0_i32, %c0_i32_0, %c0_i32_1 : i32, i32, i32
  }
  func.func @transform_6(%arg0: i32) -> (i32, i32) {
    %c0_i32 = arith.constant 0 : i32
    %c0_i32_0 = arith.constant 0 : i32
    %c0_i32_1 = arith.constant 0 : i32
    return %c0_i32, %c0_i32_0 : i32, i32
  }
  func.func @transform_7(%arg0: i32) -> (i32, i32) {
    %c0_i32 = arith.constant 0 : i32
    %c0_i32_0 = arith.constant 0 : i32
    %c0_i32_1 = arith.constant 0 : i32
    return %c0_i32, %c0_i32_0 : i32, i32
  }
}

</mosaic_0001>

<bundles_post_ra>
// kernel: _lambda_.1
= control target key start
LH: loop header
LB: loop body
LE: loop exit
PB: predicated region body
PF: predicated region fallthrough
CT: control target
= control target key end

     0   :  { %12 = vsyncpa [#allocation3], 0  ;;  %s10542_s0 = inlined_call_operand.vmem [shape: bf16[512,128], index: 0, kind: input, shape index: {}]   ;;  %s10543_s1 = inlined_call_operand.hbm [shape: bf16[9,128,512], index: 1, kind: input, shape index: {}]   ;;  %s10544_s2 = inlined_call_operand.hbm [shape: bf16[9,128,128], index: 2, kind: input, shape index: {}]   ;;  %s10545_s3 = inlined_call_operand.hbm [shape: f32[1,128], index: 3, kind: input, shape index: {}]   ;;  %s10546_s4 = inlined_call_operand.hbm [shape: bf16[9,32,128], index: 4, kind: input, shape index: {}]   ;;  %s10547_s5 = inlined_call_operand.hbm [shape: bf16[9,128,128], index: 5, kind: input, shape index: {}]   ;;  %s10548_s6 = inlined_call_operand.hbm [shape: f32[1,128], index: 6, kind: input, shape index: {}]   ;;  %s10549_s7 = inlined_call_operand.hbm [shape: f32[32,128], index: 7, kind: output, shape index: {}]  }
   0x1   :  { %13 = vsyncpa [#allocation6], 0 }
   0x2   :  { %14 = vsyncpa [#allocation9], 0 }
   0x3   :  { %15 = vsyncpa [#allocation12], 0  ;;  %s36_s26 = sshll.u32 %s10544_s2, 4  ;;  %s37_s26 = int_to_ptr.hbm [resolvable:$true] %s36_s26 }
   0x4   :  { %16 = vsyncpa [#allocation4], 0  ;;  %s9003_s27 = smov [#allocation5]   ;;  %s60_s8 = sshll.u32 %s10546_s4, 4  ;;  %s61_s8 = int_to_ptr.hbm [resolvable:$true] %s60_s8 }
   0x5   :  { %s38_s28 = sshll.u32 %s9003_s27, 4  ;;  %s9004_s9 = smov 64   ;;  %s39_s28 = int_to_ptr.vmem [resolvable:$true] %s38_s28 }
   0x6   :  { %s9005_s10 = smov 4   ;;  %s9006_s11 = smov [#allocation8]  }
   0x7   :  { %44 = dma.hbm_to_vmem [thread:$0]  %s37_s26, 9216, %s39_s28, [#allocation6], %s9004_s9, %s9004_s9, %s9005_s10  }
   0x8   :  { %s62_s12 = sshll.u32 %s9006_s11, 4  ;;  %s23_s14 = sshll.u32 %s10543_s1, 4  ;;  %s63_s12 = int_to_ptr.vmem [resolvable:$true] %s62_s12  ;;  %s24_s14 = int_to_ptr.hbm [resolvable:$true] %s23_s14 }
   0x9   :  { %68 = dma.hbm_to_vmem [thread:$0]  %s61_s8, 2304, %s63_s12, [#allocation9], %s9004_s9, %s9004_s9, %s9005_s10  }
   0xa   :  { %s9007_s4 = smov [#allocation2]   ;;  %s50_s18 = sshll.u32 %s10545_s3, 4  ;;  %s51_s18 = int_to_ptr.hbm [resolvable:$true] %s50_s18 }
   0xb   :  { %s25_s15 = sshll.u32 %s9007_s4, 4  ;;  %s9008_s19 = smov 256   ;;  %s26_s15 = int_to_ptr.vmem [resolvable:$true] %s25_s15 }
   0xc   :  { %s9009_s20 = smov 16   ;;  %s9010_s21 = smov [#allocation7]  }
   0xd   :  { %31 = dma.hbm_to_vmem [thread:$0]  %s24_s14, 36864, %s26_s15, [#allocation3], %s9008_s19, %s9008_s19, %s9009_s20  }
   0xe   :  { %s52_s22 = sshll.u32 %s9010_s21, 4  ;;  %s73_s24 = sshll.u32 %s10547_s5, 4  ;;  %s53_s22 = int_to_ptr.vmem [resolvable:$true] %s52_s22  ;;  %s74_s24 = int_to_ptr.hbm [resolvable:$true] %s73_s24 }
   0xf   :  { %55 = dma.hbm_to_vmem [thread:$0]  %s51_s18, 16, %s53_s22, [#allocation6]  }
  0x10   :  { %s87_s27 = sshll.u32 %s10548_s6, 4  ;;  %s9011_s28 = smov [#allocation10]   ;;  %s88_s27 = int_to_ptr.hbm [resolvable:$true] %s87_s27 }
  0x11   :  { %s75_s29 = sshll.u32 %s9011_s28, 4  ;;  %s9012_s3 = smov [#allocation11]   ;;  %s76_s29 = int_to_ptr.vmem [resolvable:$true] %s75_s29 }
  0x12   :  { %81 = dma.hbm_to_vmem [thread:$0]  %s74_s24, 9216, %s76_s29, [#allocation9], %s9004_s9, %s9004_s9, %s9005_s10  }
  0x13   :  { %s89_s30 = sshll.u32 %s9012_s3, 4  ;;  %s90_s30 = int_to_ptr.vmem [resolvable:$true] %s89_s30 }
  0x14   :  { %92 = dma.hbm_to_vmem [thread:$0]  %s88_s27, 16, %s90_s30, [#allocation12]  }
  0x15   :  { %8993 = dma.done.wait [#allocation3], 36864  }
  0x16   :  { %8994 = vsyncadd [#allocation3], 4294930432 }
  0x17   :  { %8995 = dma.done.wait [#allocation6], 9232  }
  0x18   :  { %8996 = vsyncadd [#allocation6], 4294958064 }
  0x19   :  { %8997 = dma.done.wait [#allocation9], 11520  }
  0x1a   :  { %8998 = vsyncadd [#allocation9], 4294955776 }
  0x1b   :  { %8999 = dma.done.wait [#allocation12], 16  }
  0x1c   :  { %9000 = vsyncadd [#allocation12], 4294967280  ;;  %v9086_v0 = vld [vmem:[%s10542_s0 + $0x38] sm:$0xff]  ;;  %v9108_v4 = vld [vmem:[%s10542_s0 + $0x30] sm:$0xff]  ;;  %s6272_s3 = sshll.u32 %s10549_s7, 4  ;;  %s9014_s30 = smov 128   ;;  %s6273_s3 = int_to_ptr.hbm [resolvable:$true] %s6272_s3 }
  0x1d   :  { %v9091_v1 = vld [vmem:[%s10542_s0 + $0x78] sm:$0xff]  ;;  %565 = vmatpush.bf16.msra.mxu0 %v9086_v0  ;;  %v9113_v5 = vld [vmem:[%s10542_s0 + $0x70] sm:$0xff]  ;;  %v9132_v8 = vld [vmem:[%s10542_s0 + $0x28] sm:$0xff]  ;;  %s9015_s5 = smov 8  }
  0x1e   :  { %v9096_v2 = vld [vmem:[%s10542_s0 + $0xb8] sm:$0xff]  ;;  %614 = vmatpush.bf16.msra.mxu1 %v9091_v1  ;;  %v9120_v6 = vld [vmem:[%s10542_s0 + $0xb0] sm:$0xff]  ;;  %v9137_v9 = vld [vmem:[%s10542_s0 + $0x68] sm:$0xff] }
  0x1f   :  { %v9101_v3 = vld [vmem:[%s10542_s0 + $0xf8] sm:$0xff]  ;;  %663 = vmatpush.bf16.msra.mxu2 %v9096_v2  ;;  %v9125_v7 = vld [vmem:[%s10542_s0 + $0xf0] sm:$0xff]  ;;  %v9144_v10 = vld [vmem:[%s10542_s0 + $0xa8] sm:$0xff] }
  0x20   :  { %712 = vmatpush.bf16.msra.mxu3 %v9101_v3  ;;  %v9149_v11 = vld [vmem:[%s10542_s0 + $0xe8] sm:$0xff]  ;;  %v9156_v12 = vld [vmem:[%s10542_s0 + $0x20] sm:$0xff]  ;;  %v9178_v16 = vld [vmem:[%s10542_s0 + $0x18] sm:$0xff] }
  0x21   :  { %566 = vmatpush.bf16.msra.mxu0 %v9108_v4  ;;  %v9161_v13 = vld [vmem:[%s10542_s0 + $0x60] sm:$0xff]  ;;  %v9185_v17 = vld [vmem:[%s10542_s0 + $0x58] sm:$0xff]  ;;  %v9204_v20 = vld [vmem:[%s10542_s0 + $0x10] sm:$0xff] }
  0x22   :  { %615 = vmatpush.bf16.msra.mxu1 %v9113_v5  ;;  %v9168_v14 = vld [vmem:[%s10542_s0 + $0xa0] sm:$0xff]  ;;  %v9192_v18 = vld [vmem:[%s10542_s0 + $0x98] sm:$0xff]  ;;  %v9209_v21 = vld [vmem:[%s10542_s0 + $0x50] sm:$0xff] }
  0x23   :  { %664 = vmatpush.bf16.msra.mxu2 %v9120_v6  ;;  %v9173_v15 = vld [vmem:[%s10542_s0 + $0xe0] sm:$0xff]  ;;  %v9197_v19 = vld [vmem:[%s10542_s0 + $0xd8] sm:$0xff]  ;;  %v9216_v22 = vld [vmem:[%s10542_s0 + $0x90] sm:$0xff] }
  0x24   :  { %713 = vmatpush.bf16.msra.mxu3 %v9125_v7  ;;  %v9221_v23 = vld [vmem:[%s10542_s0 + $0xd0] sm:$0xff]  ;;  %v9228_v24 = vld [vmem:[%s10542_s0 + $0x8] sm:$0xff]  ;;  %v9250_v28 = vld [vmem:[%s10542_s0] sm:$0xff] }
  0x25   :  { %567 = vmatpush.bf16.msra.mxu0 %v9132_v8  ;;  %v9233_v25 = vld [vmem:[%s10542_s0 + $0x48] sm:$0xff]  ;;  %v9255_v29 = vld [vmem:[%s10542_s0 + $0x40] sm:$0xff]  ;;  %v8250_v33 = vld [vmem:[#allocation2 + $0xc] sm:$0xf0] }
  0x26   :  { %616 = vmatpush.bf16.msra.mxu1 %v9137_v9  ;;  %v9240_v26 = vld [vmem:[%s10542_s0 + $0x88] sm:$0xff]  ;;  %v9260_v30 = vld [vmem:[%s10542_s0 + $0x80] sm:$0xff]  ;;  %v6292_v35 = vld [vmem:[#allocation2 + $0x10] sm:$0xf0] }
  0x27   :  { %665 = vmatpush.bf16.msra.mxu2 %v9144_v10  ;;  %v9245_v27 = vld [vmem:[%s10542_s0 + $0xc8] sm:$0xff]  ;;  %v9265_v31 = vld [vmem:[%s10542_s0 + $0xc0] sm:$0xff]  ;;  %v8251_v37 = vld [vmem:[#allocation2 + $0x14] sm:$0xf0] }
  0x28   :  { %714 = vmatpush.bf16.msra.mxu3 %v9149_v11  ;;  %v6290_v32 = vld [vmem:[#allocation2] sm:$0xf]  ;;  %v8248_v34 = vld [vmem:[#allocation2 + $0x4] sm:$0xf]  ;;  %v6298_v36 = vld [vmem:[#allocation2 + $0x8] sm:$0xf] }
  0x29   :  { %568 = vmatpush.bf16.msra.mxu0 %v9156_v12  ;;  %v8249_v38 = vld [vmem:[#allocation2 + $0xc] sm:$0xf]  ;;  %v6300_v39 = vld [vmem:[#allocation2 + $0x18] sm:$0xf0]  ;;  %v6291_v40 = vor.u32 %v8250_v33, %v6290_v32  ;;  %v6295_v41 = vor.u32 %v8248_v34, %v6292_v35  ;;  %v6299_v42 = vor.u32 %v8251_v37, %v6298_v36  ;;  %v6306_v44 = vld [vmem:[#allocation2 + $0x20] sm:$0xf] }
  0x2a   :  { %617 = vmatpush.bf16.msra.mxu1 %v9161_v13  ;;  %v6303_v43 = vor.u32 %v8249_v38, %v6300_v39  ;;  %v8254_v45 = vld [vmem:[#allocation2 + $0x2c] sm:$0xf0]  ;;  %v8252_v46 = vld [vmem:[#allocation2 + $0x24] sm:$0xf]  ;;  %v6308_v47 = vld [vmem:[#allocation2 + $0x30] sm:$0xf0] }
  0x2b   :  { %666 = vmatpush.bf16.msra.mxu2 %v9168_v14  ;;  %v6314_v48 = vld [vmem:[#allocation2 + $0x28] sm:$0xf]  ;;  %v8255_v49 = vld [vmem:[#allocation2 + $0x34] sm:$0xf0]  ;;  %v8253_v50 = vld [vmem:[#allocation2 + $0x2c] sm:$0xf]  ;;  %v6307_v52 = vor.u32 %v8254_v45, %v6306_v44  ;;  %v6311_v53 = vor.u32 %v8252_v46, %v6308_v47 }
  0x2c   :  { %715 = vmatpush.bf16.msra.mxu3 %v9173_v15  ;;  %v6316_v51 = vld [vmem:[#allocation2 + $0x38] sm:$0xf0]  ;;  %v6315_v54 = vor.u32 %v8255_v49, %v6314_v48  ;;  %v6322_v56 = vld [vmem:[#allocation2 + $0x40] sm:$0xf]  ;;  %v8258_v57 = vld [vmem:[#allocation2 + $0x4c] sm:$0xf0] }
  0x2d   :  { %569 = vmatpush.bf16.msra.mxu0 %v9178_v16  ;;  %v6319_v55 = vor.u32 %v8253_v50, %v6316_v51  ;;  %v8256_v58 = vld [vmem:[#allocation2 + $0x44] sm:$0xf]  ;;  %v6324_v59 = vld [vmem:[#allocation2 + $0x50] sm:$0xf0]  ;;  %v6330_v60 = vld [vmem:[#allocation2 + $0x48] sm:$0xf] }
  0x2e   :  { %618 = vmatpush.bf16.msra.mxu1 %v9185_v17  ;;  %v8259_v61 = vld [vmem:[#allocation2 + $0x54] sm:$0xf0]  ;;  %v8257_v62 = vld [vmem:[#allocation2 + $0x4c] sm:$0xf]  ;;  %v6332_v63 = vld [vmem:[#allocation2 + $0x58] sm:$0xf0] }
  0x2f   :  { %667 = vmatpush.bf16.msra.mxu2 %v9192_v18  ;;  %v6338_v32 = vld [vmem:[#allocation2 + $0x60] sm:$0xf]  ;;  %v8262_v33 = vld [vmem:[#allocation2 + $0x6c] sm:$0xf0]  ;;  %v8260_v34 = vld [vmem:[#allocation2 + $0x64] sm:$0xf] }
  0x30   :  { %716 = vmatpush.bf16.msra.mxu3 %v9197_v19  ;;  %v6340_v35 = vld [vmem:[#allocation2 + $0x70] sm:$0xf0]  ;;  %v6346_v36 = vld [vmem:[#allocation2 + $0x68] sm:$0xf]  ;;  %v8263_v37 = vld [vmem:[#allocation2 + $0x74] sm:$0xf0]  ;;  %v6339_v39 = vor.u32 %v8262_v33, %v6338_v32 }
  0x31   :  { %570 = vmatpush.bf16.msra.mxu0 %v9204_v20  ;;  %v8261_v38 = vld [vmem:[#allocation2 + $0x6c] sm:$0xf]  ;;  %v6362_v44 = vld [vmem:[#allocation2 + $0x88] sm:$0xf]  ;;  %v8267_v45 = vld [vmem:[#allocation2 + $0x94] sm:$0xf0] }
  0x32   :  { %619 = vmatpush.bf16.msra.mxu1 %v9209_v21  ;;  %v8265_v46 = vld [vmem:[#allocation2 + $0x8c] sm:$0xf]  ;;  %v6363_v49 = vor.u32 %v8267_v45, %v6362_v44  ;;  %v8270_v50 = vld [vmem:[#allocation2 + $0xac] sm:$0xf0]  ;;  %v8268_v51 = vld [vmem:[#allocation2 + $0xa4] sm:$0xf] }
  0x33   :  { %668 = vmatpush.bf16.msra.mxu2 %v9216_v22  ;;  %v6546_v44 = vld [vmem:[#allocation2 + $0x100] sm:$0xf]  ;;  %v8290_v45 = vld [vmem:[#allocation2 + $0x10c] sm:$0xf0] }
  0x34   :  { %717 = vmatpush.bf16.msra.mxu3 %v9221_v23 }
  0x35   :  { %571 = vmatpush.bf16.msra.mxu0 %v9228_v24 }
  0x36   :  { %620 = vmatpush.bf16.msra.mxu1 %v9233_v25 }
  0x37   :  { %669 = vmatpush.bf16.msra.mxu2 %v9240_v26 }
  0x38   :  { %718 = vmatpush.bf16.msra.mxu3 %v9245_v27 }
  0x39   :  { %572 = vmatpush.bf16.msra.mxu0 %v9250_v28 }
  0x3a   :  { %621 = vmatpush.bf16.msra.mxu1 %v9255_v29 }
  0x3b   :  { %670 = vmatpush.bf16.msra.mxu2 %v9260_v30 }
  0x3c   :  { %719 = vmatpush.bf16.msra.mxu3 %v9265_v31  ;;  %573 = vmatmul.bf16.vlgmr.msra.gmra.mxu0 %v6291_v40  ;;  %v6343_v40 = vor.u32 %v8260_v34, %v6340_v35 }
  0x3d   :  { %978 = vmatpush.bf16.msrb.mxu0 %v9086_v0  ;;  %622 = vmatmul.bf16.vlgmr.msra.gmra.mxu1 %v6295_v41  ;;  %v6347_v41 = vor.u32 %v8263_v37, %v6346_v36  ;;  %v6402_v36 = vld [vmem:[#allocation2 + $0xe0] sm:$0xf]  ;;  %v8278_v37 = vld [vmem:[#allocation2 + $0xec] sm:$0xf0] }
  0x3e   :  { %1027 = vmatpush.bf16.msrb.mxu1 %v9091_v1  ;;  %671 = vmatmul.bf16.vlgmr.msra.gmra.mxu2 %v6299_v42  ;;  %v8264_v42 = vld [vmem:[#allocation2 + $0x84] sm:$0xf] }
  0x3f   :  { %720 = vmatmul.bf16.vlgmr.msra.gmra.mxu3 %v6303_v43  ;;  %1076 = vmatpush.bf16.msrb.mxu2 %v9096_v2  ;;  %v6323_v2 = vor.u32 %v8258_v57, %v6322_v56  ;;  %v6356_v43 = vld [vmem:[#allocation2 + $0x90] sm:$0xf0]  ;;  %v6380_v56 = vld [vmem:[#allocation2 + $0xb8] sm:$0xf0] }
  0x40   :  { %1125 = vmatpush.bf16.msrb.mxu3 %v9101_v3  ;;  %v6359_v48 = vor.u32 %v8264_v42, %v6356_v43 }
  0x41   :  { %979 = vmatpush.bf16.msrb.mxu0 %v9108_v4 }
  0x42   :  { %1028 = vmatpush.bf16.msrb.mxu1 %v9113_v5 }
  0x43   :  { %1077 = vmatpush.bf16.msrb.mxu2 %v9120_v6  ;;  %v6327_v6 = vor.u32 %v8256_v58, %v6324_v59 }
  0x44   :  { %1126 = vmatpush.bf16.msrb.mxu3 %v9125_v7 }
  0x45   :  { %980 = vmatpush.bf16.msrb.mxu0 %v9132_v8 }
  0x46   :  { %1029 = vmatpush.bf16.msrb.mxu1 %v9137_v9 }
  0x47   :  { %1078 = vmatpush.bf16.msrb.mxu2 %v9144_v10  ;;  %v6331_v10 = vor.u32 %v8259_v61, %v6330_v60  ;;  %v6386_v60 = vld [vmem:[#allocation2 + $0xc0] sm:$0xf]  ;;  %v8274_v61 = vld [vmem:[#allocation2 + $0xcc] sm:$0xf0] }
  0x48   :  { %1127 = vmatpush.bf16.msrb.mxu3 %v9149_v11  ;;  %v6387_v32 = vor.u32 %v8274_v61, %v6386_v60 }
  0x49   :  { %981 = vmatpush.bf16.msrb.mxu0 %v9156_v12 }
  0x4a   :  { %1030 = vmatpush.bf16.msrb.mxu1 %v9161_v13 }
  0x4b   :  { %1079 = vmatpush.bf16.msrb.mxu2 %v9168_v14  ;;  %v6335_v14 = vor.u32 %v8257_v62, %v6332_v63  ;;  %v8272_v62 = vld [vmem:[#allocation2 + $0xc4] sm:$0xf]  ;;  %v6388_v63 = vld [vmem:[#allocation2 + $0xd0] sm:$0xf0] }
  0x4c   :  { %1128 = vmatpush.bf16.msrb.mxu3 %v9173_v15  ;;  %578 = vmatmul.bf16.gmra.mxu0 %v6307_v52  ;;  %v6372_v52 = vld [vmem:[#allocation2 + $0xb0] sm:$0xf0]  ;;  %v6391_v33 = vor.u32 %v8272_v62, %v6388_v63  ;;  %v6562_v62 = vld [vmem:[#allocation2 + $0x120] sm:$0xf]  ;;  %v8294_v63 = vld [vmem:[#allocation2 + $0x12c] sm:$0xf0] }
  0x4d   :  { %982 = vmatpush.bf16.msrb.mxu0 %v9178_v16  ;;  %627 = vmatmul.bf16.gmra.mxu1 %v6311_v53  ;;  %v6378_v53 = vld [vmem:[#allocation2 + $0xa8] sm:$0xf]  ;;  %v6375_v58 = vor.u32 %v8268_v51, %v6372_v52 }
  0x4e   :  { %1031 = vmatpush.bf16.msrb.mxu1 %v9185_v17  ;;  %676 = vmatmul.bf16.gmra.mxu2 %v6315_v54  ;;  %v8271_v54 = vld [vmem:[#allocation2 + $0xb4] sm:$0xf0] }
  0x4f   :  { %725 = vmatmul.bf16.gmra.mxu3 %v6319_v55  ;;  %1080 = vmatpush.bf16.msrb.mxu2 %v9192_v18  ;;  %v8269_v55 = vld [vmem:[#allocation2 + $0xac] sm:$0xf]  ;;  %v6379_v59 = vor.u32 %v8271_v54, %v6378_v53 }
  0x50   :  { %1129 = vmatpush.bf16.msrb.mxu3 %v9197_v19 }
  0x51   :  { %983 = vmatpush.bf16.msrb.mxu0 %v9204_v20 }
  0x52   :  { %1032 = vmatpush.bf16.msrb.mxu1 %v9209_v21 }
  0x53   :  { %1081 = vmatpush.bf16.msrb.mxu2 %v9216_v22 }
  0x54   :  { %1130 = vmatpush.bf16.msrb.mxu3 %v9221_v23 }
  0x55   :  { %984 = vmatpush.bf16.msrb.mxu0 %v9228_v24 }
  0x56   :  { %1033 = vmatpush.bf16.msrb.mxu1 %v9233_v25 }
  0x57   :  { %1082 = vmatpush.bf16.msrb.mxu2 %v9240_v26 }
  0x58   :  { %1131 = vmatpush.bf16.msrb.mxu3 %v9245_v27 }
  0x59   :  { %985 = vmatpush.bf16.msrb.mxu0 %v9250_v28 }
  0x5a   :  { %1034 = vmatpush.bf16.msrb.mxu1 %v9255_v29 }
  0x5b   :  { %1083 = vmatpush.bf16.msrb.mxu2 %v9260_v30 }
  0x5c   :  { %1132 = vmatpush.bf16.msrb.mxu3 %v9265_v31  ;;  %583 = vmatmul.bf16.gmra.mxu0 %v6323_v2  ;;  %v6394_v2 = vld [vmem:[#allocation2 + $0xc8] sm:$0xf] }
  0x5d   :  { %632 = vmatmul.bf16.gmra.mxu1 %v6327_v6  ;;  %v8275_v6 = vld [vmem:[#allocation2 + $0xd4] sm:$0xf0] }
  0x5e   :  { %681 = vmatmul.bf16.gmra.mxu2 %v6331_v10  ;;  %v8273_v10 = vld [vmem:[#allocation2 + $0xcc] sm:$0xf]  ;;  %v6395_v34 = vor.u32 %v8275_v6, %v6394_v2  ;;  %v8292_v2 = vld [vmem:[#allocation2 + $0x124] sm:$0xf]  ;;  %v6564_v6 = vld [vmem:[#allocation2 + $0x130] sm:$0xf0] }
  0x5f   :  { %1586 = vmatpush.bf16.msra.mxu2 %v9086_v0  ;;  %730 = vmatmul.bf16.gmra.mxu3 %v6335_v14  ;;  %v6396_v14 = vld [vmem:[#allocation2 + $0xd8] sm:$0xf0] }
  0x60   :  { %1635 = vmatpush.bf16.msra.mxu3 %v9091_v1  ;;  %v6348_v1 = vld [vmem:[#allocation2 + $0x78] sm:$0xf0]  ;;  %v6399_v35 = vor.u32 %v8273_v10, %v6396_v14  ;;  %v6570_v10 = vld [vmem:[#allocation2 + $0x128] sm:$0xf]  ;;  %v8295_v14 = vld [vmem:[#allocation2 + $0x134] sm:$0xf0] }
  0x63   :  { %1587 = vmatpush.bf16.msra.mxu2 %v9108_v4 }
  0x64   :  { %1636 = vmatpush.bf16.msra.mxu3 %v9113_v5  ;;  %v6351_v5 = vor.u32 %v8261_v38, %v6348_v1  ;;  %v8276_v38 = vld [vmem:[#allocation2 + $0xe4] sm:$0xf]  ;;  %v6404_v1 = vld [vmem:[#allocation2 + $0xf0] sm:$0xf0] }
  0x67   :  { %1588 = vmatpush.bf16.msra.mxu2 %v9132_v8 }
  0x68   :  { %1637 = vmatpush.bf16.msra.mxu3 %v9137_v9  ;;  %v6354_v9 = vld [vmem:[#allocation2 + $0x80] sm:$0xf] }
  0x6b   :  { %1589 = vmatpush.bf16.msra.mxu2 %v9156_v12 }
  0x6c   :  { %1638 = vmatpush.bf16.msra.mxu3 %v9161_v13  ;;  %588 = vmatmul.bf16.gmra.mxu0 %v6339_v39  ;;  %v8266_v13 = vld [vmem:[#allocation2 + $0x8c] sm:$0xf0]  ;;  %v6410_v39 = vld [vmem:[#allocation2 + $0xe8] sm:$0xf] }
  0x6d   :  { %637 = vmatmul.bf16.gmra.mxu1 %v6343_v40  ;;  %v6355_v47 = vor.u32 %v8266_v13, %v6354_v9  ;;  %v8279_v40 = vld [vmem:[#allocation2 + $0xf4] sm:$0xf0]  ;;  %v6403_v9 = vor.u32 %v8278_v37, %v6402_v36  ;;  %v6407_v13 = vor.u32 %v8276_v38, %v6404_v1  ;;  %v6567_v36 = vor.u32 %v8292_v2, %v6564_v6 }
  0x6e   :  { %686 = vmatmul.bf16.gmra.mxu2 %v6347_v41  ;;  %v8277_v41 = vld [vmem:[#allocation2 + $0xec] sm:$0xf]  ;;  %v6411_v42 = vor.u32 %v8279_v40, %v6410_v39 }
  0x6f   :  { %1590 = vmatpush.bf16.msra.mxu2 %v9178_v16  ;;  %735 = vmatmul.bf16.gmra.mxu3 %v6351_v5  ;;  %v6412_v5 = vld [vmem:[#allocation2 + $0xf8] sm:$0xf0] }
  0x70   :  { %1639 = vmatpush.bf16.msra.mxu3 %v9185_v17  ;;  %v6364_v17 = vld [vmem:[#allocation2 + $0x98] sm:$0xf0]  ;;  %v6415_v43 = vor.u32 %v8277_v41, %v6412_v5 }
  0x73   :  { %1591 = vmatpush.bf16.msra.mxu2 %v9204_v20 }
  0x74   :  { %1640 = vmatpush.bf16.msra.mxu3 %v9209_v21  ;;  %v6367_v21 = vor.u32 %v8265_v46, %v6364_v17  ;;  %v8288_v46 = vld [vmem:[#allocation2 + $0x104] sm:$0xf]  ;;  %v6548_v17 = vld [vmem:[#allocation2 + $0x110] sm:$0xf0] }
  0x77   :  { %1592 = vmatpush.bf16.msra.mxu2 %v9228_v24 }
  0x78   :  { %1641 = vmatpush.bf16.msra.mxu3 %v9233_v25  ;;  %v6370_v25 = vld [vmem:[#allocation2 + $0xa0] sm:$0xf] }
  0x79   :  { %v6371_v57 = vor.u32 %v8270_v50, %v6370_v25  ;;  %v6547_v25 = vor.u32 %v8290_v45, %v6546_v44  ;;  %v6551_v50 = vor.u32 %v8288_v46, %v6548_v17  ;;  %v6578_v45 = vld [vmem:[#allocation2 + $0x140] sm:$0xf]  ;;  %v8298_v46 = vld [vmem:[#allocation2 + $0x14c] sm:$0xf0]  ;;  %v8296_v17 = vld [vmem:[#allocation2 + $0x144] sm:$0xf] }
  0x7b   :  { %1593 = vmatpush.bf16.msra.mxu2 %v9250_v28 }
  0x7c   :  { %1642 = vmatpush.bf16.msra.mxu3 %v9255_v29  ;;  %593 = vmatmul.bf16.gmra.mxu0 %v6355_v47  ;;  %v6383_v29 = vor.u32 %v8269_v55, %v6380_v56  ;;  %v6554_v47 = vld [vmem:[#allocation2 + $0x108] sm:$0xf] }
  0x7d   :  { %642 = vmatmul.bf16.gmra.mxu1 %v6359_v48  ;;  %v8291_v48 = vld [vmem:[#allocation2 + $0x114] sm:$0xf0] }
  0x7e   :  { %691 = vmatmul.bf16.gmra.mxu2 %v6363_v49  ;;  %v8289_v49 = vld [vmem:[#allocation2 + $0x10c] sm:$0xf]  ;;  %v6555_v53 = vor.u32 %v8291_v48, %v6554_v47  ;;  %v6580_v47 = vld [vmem:[#allocation2 + $0x150] sm:$0xf0]  ;;  %v6586_v48 = vld [vmem:[#allocation2 + $0x148] sm:$0xf] }
  0x7f   :  { %740 = vmatmul.bf16.gmra.mxu3 %v6367_v21  ;;  %v6556_v21 = vld [vmem:[#allocation2 + $0x118] sm:$0xf0] }
  0x80   :  { %v6559_v54 = vor.u32 %v8289_v49, %v6556_v21  ;;  %v8299_v49 = vld [vmem:[#allocation2 + $0x154] sm:$0xf0]  ;;  %v8297_v21 = vld [vmem:[#allocation2 + $0x14c] sm:$0xf] }
  0x8c   :  { %598 = vmatmul.bf16.gmra.mxu0 %v6371_v57 }
  0x8d   :  { %647 = vmatmul.bf16.gmra.mxu1 %v6375_v58 }
  0x8e   :  { %696 = vmatmul.bf16.gmra.mxu2 %v6379_v59 }
  0x8f   :  { %745 = vmatmul.bf16.gmra.mxu3 %v6383_v29 }
  0x9c   :  { %603 = vmatmul.bf16.gmra.mxu0 %v6387_v32  ;;  %v8293_v32 = vld [vmem:[#allocation2 + $0x12c] sm:$0xf] }
  0x9d   :  { %652 = vmatmul.bf16.gmra.mxu1 %v6391_v33  ;;  %v6572_v33 = vld [vmem:[#allocation2 + $0x138] sm:$0xf0] }
  0x9e   :  { %701 = vmatmul.bf16.gmra.mxu2 %v6395_v34  ;;  %v6575_v39 = vor.u32 %v8293_v32, %v6572_v33  ;;  %v6596_v32 = vld [vmem:[#allocation2 + $0x170] sm:$0xf0]  ;;  %v6602_v33 = vld [vmem:[#allocation2 + $0x168] sm:$0xf] }
  0x9f   :  { %750 = vmatmul.bf16.gmra.mxu3 %v6399_v35  ;;  %v6563_v35 = vor.u32 %v8294_v63, %v6562_v62 }
  0xac   :  { %608 = vmatmul.bf16.gmra.mxu0 %v6403_v9 }
  0xad   :  { %657 = vmatmul.bf16.gmra.mxu1 %v6407_v13 }
  0xae   :  { %706 = vmatmul.bf16.gmra.mxu2 %v6411_v42 }
  0xaf   :  { %755 = vmatmul.bf16.gmra.mxu3 %v6415_v43 }
  0xb9   :  { %v574_v51 = vpop.f32.mrf.mxu0 }
  0xba   :  { %v623_v52 = vpop.f32.mrf.mxu1 }
  0xbb   :  { %v624_v55 = vadd.f32 %v623_v52, %v574_v51  ;;  %v6579_v51 = vor.u32 %v8298_v46, %v6578_v45  ;;  %v6583_v52 = vor.u32 %v8296_v17, %v6580_v47 }
  0xbc   :  { %986 = vmatmul.bf16.vlgmr.msrb.gmra.mxu0 %v6547_v25  ;;  %v6588_v25 = vld [vmem:[#allocation2 + $0x158] sm:$0xf0] }
  0xbd   :  { %1035 = vmatmul.bf16.vlgmr.msrb.gmra.mxu1 %v6551_v50 }
  0xbe   :  { %1084 = vmatmul.bf16.vlgmr.msrb.gmra.mxu2 %v6555_v53 }
  0xbf   :  { %1133 = vmatmul.bf16.vlgmr.msrb.gmra.mxu3 %v6559_v54 }
  0xc0   :  { %2113 = vmatpush.bf16.msrb.mxu3 %v9086_v0 }
  0xc1   :  { %v672_v56 = vpop.f32.mrf.mxu2  ;;  %v576_v59 = vpop.f32.mrf.mxu0 }
  0xc2   :  { %v721_v57 = vpop.f32.mrf.mxu3  ;;  %v673_v58 = vadd.f32 %v672_v56, %v624_v55  ;;  %v625_v29 = vpop.f32.mrf.mxu1  ;;  %v6591_v56 = vor.u32 %v8297_v21, %v6588_v25  ;;  %v6610_v21 = vld [vmem:[#allocation2 + $0x180] sm:$0xf]  ;;  %v8306_v25 = vld [vmem:[#allocation2 + $0x18c] sm:$0xf0] }
  0xc3   :  { %v626_v60 = vadd.f32 %v625_v29, %v576_v59 }
  0xc4   :  { %2114 = vmatpush.bf16.msrb.mxu3 %v9108_v4  ;;  %v9325_v61 = vadd.f32 %v721_v57, %v673_v58  ;;  %v6571_v4 = vor.u32 %v8295_v14, %v6570_v10  ;;  %v6594_v10 = vld [vmem:[#allocation2 + $0x160] sm:$0xf]  ;;  %v8302_v14 = vld [vmem:[#allocation2 + $0x16c] sm:$0xf0] }
  0xc8   :  { %2115 = vmatpush.bf16.msrb.mxu3 %v9132_v8 }
  0xc9   :  { %v674_v0 = vpop.f32.mrf.mxu2  ;;  %v579_v38 = vpop.f32.mrf.mxu0 }
  0xca   :  { %v723_v34 = vpop.f32.mrf.mxu3  ;;  %v675_v37 = vadd.f32 %v674_v0, %v626_v60  ;;  %v628_v1 = vpop.f32.mrf.mxu1  ;;  %v8303_v0 = vld [vmem:[#allocation2 + $0x174] sm:$0xf0] }
  0xcb   :  { %v629_v40 = vadd.f32 %v628_v1, %v579_v38  ;;  %v6595_v38 = vor.u32 %v8302_v14, %v6594_v10  ;;  %v8287_v14 = vld [vmem:[#allocation5 + $0x38] sm:$0xff] }
  0xcc   :  { %2116 = vmatpush.bf16.msrb.mxu3 %v9156_v12  ;;  %v9329_v41 = vadd.f32 %v723_v34, %v675_v37  ;;  %991 = vmatmul.bf16.gmra.mxu0 %v6563_v35  ;;  %v8301_v34 = vld [vmem:[#allocation2 + $0x16c] sm:$0xf]  ;;  %v6604_v35 = vld [vmem:[#allocation2 + $0x178] sm:$0xf0] }
  0xcd   :  { %1040 = vmatmul.bf16.gmra.mxu1 %v6567_v36 }
  0xce   :  { %v761_v5 = vpack.c.bf16 %v9329_v41, %v9325_v61  ;;  %1089 = vmatmul.bf16.gmra.mxu2 %v6571_v4  ;;  %1344 = vmatpush.bf16.msra.mxu1 %v8287_v14 }
  0xcf   :  { %1138 = vmatmul.bf16.gmra.mxu3 %v6575_v39 }
  0xd0   :  { %2117 = vmatpush.bf16.msrb.mxu3 %v9178_v16 }
  0xd1   :  { %v677_v8 = vpop.f32.mrf.mxu2  ;;  %v581_v42 = vpop.f32.mrf.mxu0 }
  0xd2   :  { %v726_v9 = vpop.f32.mrf.mxu3  ;;  %v678_v13 = vadd.f32 %v677_v8, %v629_v40  ;;  %v630_v43 = vpop.f32.mrf.mxu1  ;;  %v6603_v8 = vor.u32 %v8303_v0, %v6602_v33  ;;  %v8286_v0 = vld [vmem:[#allocation5 + $0x30] sm:$0xff] }
  0xd3   :  { %v631_v44 = vadd.f32 %v630_v43, %v581_v42  ;;  %1345 = vmatpush.bf16.msra.mxu1 %v8286_v0  ;;  %v8314_v0 = vld [vmem:[#allocation2 + $0x1cc] sm:$0xf0] }
  0xd4   :  { %2118 = vmatpush.bf16.msrb.mxu3 %v9204_v20  ;;  %v9335_v12 = vadd.f32 %v726_v9, %v678_v13  ;;  %v6587_v20 = vor.u32 %v8299_v49, %v6586_v48  ;;  %v6607_v9 = vor.u32 %v8301_v34, %v6604_v35 }
  0xd8   :  { %2119 = vmatpush.bf16.msrb.mxu3 %v9228_v24 }
  0xd9   :  { %v679_v16 = vpop.f32.mrf.mxu2  ;;  %v584_v54 = vpop.f32.mrf.mxu0 }
  0xda   :  { %v728_v50 = vpop.f32.mrf.mxu3  ;;  %v680_v53 = vadd.f32 %v679_v16, %v631_v44  ;;  %v633_v55 = vpop.f32.mrf.mxu1  ;;  %v8304_v16 = vld [vmem:[#allocation2 + $0x184] sm:$0xf] }
  0xdb   :  { %v634_v57 = vadd.f32 %v633_v55, %v584_v54  ;;  %v6620_v54 = vld [vmem:[#allocation2 + $0x198] sm:$0xf0] }
  0xdc   :  { %2120 = vmatpush.bf16.msrb.mxu3 %v9250_v28  ;;  %v9339_v58 = vadd.f32 %v728_v50, %v680_v53  ;;  %996 = vmatmul.bf16.gmra.mxu0 %v6579_v51  ;;  %v8300_v28 = vld [vmem:[#allocation2 + $0x164] sm:$0xf]  ;;  %v6612_v50 = vld [vmem:[#allocation2 + $0x190] sm:$0xf0]  ;;  %v6618_v51 = vld [vmem:[#allocation2 + $0x188] sm:$0xf] }
  0xdd   :  { %1045 = vmatmul.bf16.gmra.mxu1 %v6583_v52  ;;  %v6599_v1 = vor.u32 %v8300_v28, %v6596_v32  ;;  %v8307_v52 = vld [vmem:[#allocation2 + $0x194] sm:$0xf0]  ;;  %v8305_v53 = vld [vmem:[#allocation2 + $0x18c] sm:$0xf] }
  0xde   :  { %v762_v59 = vpack.c.bf16 %v9339_v58, %v9335_v12  ;;  %1094 = vmatmul.bf16.gmra.mxu2 %v6587_v20  ;;  %v9440_v58 = vld [vmem:[%s10542_s0 + $0x90] sm:$0xff] }
  0xdf   :  { %1143 = vmatmul.bf16.gmra.mxu3 %v6591_v56  ;;  %v6611_v56 = vor.u32 %v8306_v25, %v6610_v21  ;;  %v8284_v21 = vld [vmem:[#allocation5 + $0x20] sm:$0xff] }
  0xe1   :  { %v682_v24 = vpop.f32.mrf.mxu2  ;;  %v586_v62 = vpop.f32.mrf.mxu0 }
  0xe2   :  { %v731_v29 = vpop.f32.mrf.mxu3  ;;  %v683_v60 = vadd.f32 %v682_v24, %v634_v57  ;;  %v635_v63 = vpop.f32.mrf.mxu1  ;;  %v6615_v57 = vor.u32 %v8304_v16, %v6612_v50 }
  0xe3   :  { %v636_v2 = vadd.f32 %v635_v63, %v586_v62  ;;  %v6619_v62 = vor.u32 %v8307_v52, %v6618_v51  ;;  %v6623_v63 = vor.u32 %v8305_v53, %v6620_v54 }
  0xe4   :  { %v9343_v6 = vadd.f32 %v731_v29, %v683_v60 }
  0xe9   :  { %v684_v36 = vpop.f32.mrf.mxu2  ;;  %v589_v39 = vpop.f32.mrf.mxu0 }
  0xea   :  { %v733_v37 = vpop.f32.mrf.mxu3  ;;  %v685_v4 = vadd.f32 %v684_v36, %v636_v2  ;;  %v638_v40 = vpop.f32.mrf.mxu1 }
  0xeb   :  { %v639_v13 = vadd.f32 %v638_v40, %v589_v39  ;;  %v8308_v39 = vld [vmem:[#allocation2 + $0x1a4] sm:$0xf]  ;;  %v6628_v40 = vld [vmem:[#allocation2 + $0x1b0] sm:$0xf0] }
  0xec   :  { %v9345_v42 = vadd.f32 %v733_v37, %v685_v4  ;;  %1001 = vmatmul.bf16.gmra.mxu0 %v6595_v38  ;;  %v8285_v38 = vld [vmem:[#allocation5 + $0x28] sm:$0xff]  ;;  %v8310_v4 = vld [vmem:[#allocation2 + $0x1ac] sm:$0xf0] }
  0xed   :  { %1050 = vmatmul.bf16.gmra.mxu1 %v6599_v1  ;;  %v6626_v1 = vld [vmem:[#allocation2 + $0x1a0] sm:$0xf] }
  0xee   :  { %v763_v43 = vpack.c.bf16 %v9345_v42, %v9343_v6  ;;  %1099 = vmatmul.bf16.gmra.mxu2 %v6603_v8  ;;  %v6634_v8 = vld [vmem:[#allocation2 + $0x1a8] sm:$0xf]  ;;  %1346 = vmatpush.bf16.msra.mxu1 %v8285_v38  ;;  %v8315_v38 = vld [vmem:[#allocation2 + $0x1d4] sm:$0xf0] }
  0xef   :  { %1148 = vmatmul.bf16.gmra.mxu3 %v6607_v9  ;;  %v8311_v9 = vld [vmem:[#allocation2 + $0x1b4] sm:$0xf0] }
  0xf0   :  { %v6635_v51 = vor.u32 %v8311_v9, %v6634_v8 }
  0xf1   :  { %v687_v44 = vpop.f32.mrf.mxu2  ;;  %v591_v17 = vpop.f32.mrf.mxu0 }
  0xf2   :  { %v736_v45 = vpop.f32.mrf.mxu3  ;;  %v688_v46 = vadd.f32 %v687_v44, %v639_v13  ;;  %v640_v47 = vpop.f32.mrf.mxu1  ;;  %v8309_v13 = vld [vmem:[#allocation2 + $0x1ac] sm:$0xf]  ;;  %v6636_v44 = vld [vmem:[#allocation2 + $0x1b8] sm:$0xf0]  ;;  %1347 = vmatpush.bf16.msra.mxu1 %v8284_v21 }
  0xf3   :  { %v641_v48 = vadd.f32 %v640_v47, %v591_v17  ;;  %v6627_v47 = vor.u32 %v8310_v4, %v6626_v1  ;;  %v6639_v52 = vor.u32 %v8309_v13, %v6636_v44  ;;  %v8313_v1 = vld [vmem:[#allocation2 + $0x1cc] sm:$0xf]  ;;  %v6652_v4 = vld [vmem:[#allocation2 + $0x1d8] sm:$0xf0] }
  0xf4   :  { %v9349_v49 = vadd.f32 %v736_v45, %v688_v46  ;;  %v6655_v21 = vor.u32 %v8313_v1, %v6652_v4 }
  0xf9   :  { %v689_v55 = vpop.f32.mrf.mxu2  ;;  %v594_v29 = vpop.f32.mrf.mxu0 }
  0xfa   :  { %v738_v20 = vpop.f32.mrf.mxu3  ;;  %v690_v24 = vadd.f32 %v689_v55, %v641_v48  ;;  %v643_v60 = vpop.f32.mrf.mxu1  ;;  %v6631_v48 = vor.u32 %v8308_v39, %v6628_v40  ;;  %v8283_v55 = vld [vmem:[#allocation5 + $0x18] sm:$0xff]  ;;  %v8325_v39 = vld [vmem:[#allocation5 + $0x68] sm:$0xff] }
  0xfb   :  { %v644_v2 = vadd.f32 %v643_v60, %v594_v29  ;;  %1348 = vmatpush.bf16.msra.mxu1 %v8283_v55  ;;  %v8282_v29 = vld [vmem:[#allocation5 + $0x10] sm:$0xff] }
  0xfc   :  { %v9351_v10 = vadd.f32 %v738_v20, %v690_v24  ;;  %1006 = vmatmul.bf16.gmra.mxu0 %v6611_v56  ;;  %v8327_v56 = vld [vmem:[#allocation5 + $0x78] sm:$0xff] }
  0xfd   :  { %1055 = vmatmul.bf16.gmra.mxu1 %v6615_v57  ;;  %1247 = vmatpush.bf16.msra.mxu0 %v8327_v56 }
  0xfe   :  { %v764_v28 = vpack.c.bf16 %v9351_v10, %v9349_v49  ;;  %1104 = vmatmul.bf16.gmra.mxu2 %v6619_v62 }
  0xff   :  { %1153 = vmatmul.bf16.gmra.mxu3 %v6623_v63  ;;  %1349 = vmatpush.bf16.msra.mxu1 %v8282_v29  ;;  %v8322_v29 = vld [vmem:[#allocation5 + $0x50] sm:$0xff] }
 0x101   :  { %v692_v32 = vpop.f32.mrf.mxu2  ;;  %v596_v35 = vpop.f32.mrf.mxu0 }
 0x102   :  { %v741_v33 = vpop.f32.mrf.mxu3  ;;  %v693_v34 = vadd.f32 %v692_v32, %v644_v2  ;;  %v645_v36 = vpop.f32.mrf.mxu1  ;;  %v8326_v2 = vld [vmem:[#allocation5 + $0x70] sm:$0xff]  ;;  %v8281_v32 = vld [vmem:[#allocation5 + $0x8] sm:$0xff] }
 0x103   :  { %v646_v45 = vadd.f32 %v645_v36, %v596_v35  ;;  %1248 = vmatpush.bf16.msra.mxu0 %v8326_v2  ;;  %v6644_v35 = vld [vmem:[#allocation2 + $0x1d0] sm:$0xf0]  ;;  %v6650_v36 = vld [vmem:[#allocation2 + $0x1c8] sm:$0xf]  ;;  %1350 = vmatpush.bf16.msra.mxu1 %v8281_v32 }
 0x104   :  { %v9355_v37 = vadd.f32 %v741_v33, %v693_v34  ;;  %v6642_v33 = vld [vmem:[#allocation2 + $0x1c0] sm:$0xf]  ;;  %v8312_v34 = vld [vmem:[#allocation2 + $0x1c4] sm:$0xf]  ;;  %v6660_v2 = vld [vmem:[#allocation2 + $0x1f0] sm:$0xf0] }
 0x105   :  { %v6643_v13 = vor.u32 %v8314_v0, %v6642_v33  ;;  %v6647_v44 = vor.u32 %v8312_v34, %v6644_v35  ;;  %v6666_v32 = vld [vmem:[#allocation2 + $0x1e8] sm:$0xf]  ;;  %v8319_v33 = vld [vmem:[#allocation2 + $0x1f4] sm:$0xf0]  ;;  %v8317_v0 = vld [vmem:[#allocation2 + $0x1ec] sm:$0xf] }
 0x106   :  { %v6668_v34 = vld [vmem:[#allocation2 + $0x1f8] sm:$0xf0] }
 0x107   :  { %1249 = vmatpush.bf16.msra.mxu0 %v8325_v39 }
 0x109   :  { %v694_v46 = vpop.f32.mrf.mxu2  ;;  %v599_v16 = vpop.f32.mrf.mxu0 }
 0x10a   :  { %v743_v17 = vpop.f32.mrf.mxu3  ;;  %v695_v25 = vadd.f32 %v694_v46, %v646_v45  ;;  %v648_v50 = vpop.f32.mrf.mxu1  ;;  %v8280_v45 = vld [vmem:[#allocation5] sm:$0xff] }
 0x10b   :  { %v649_v53 = vadd.f32 %v648_v50, %v599_v16  ;;  %1351 = vmatpush.bf16.msra.mxu1 %v8280_v45  ;;  %v8324_v16 = vld [vmem:[#allocation5 + $0x60] sm:$0xff] }
 0x10c   :  { %v9357_v54 = vadd.f32 %v743_v17, %v695_v25  ;;  %1011 = vmatmul.bf16.gmra.mxu0 %v6627_v47 }
 0x10d   :  { %1060 = vmatmul.bf16.gmra.mxu1 %v6631_v48  ;;  %v6651_v48 = vor.u32 %v8315_v38, %v6650_v36  ;;  %1250 = vmatpush.bf16.msra.mxu0 %v8324_v16  ;;  %v9390_v16 = vld [vmem:[%s10542_s0 + $0xb0] sm:$0xff] }
 0x10e   :  { %v765_v20 = vpack.c.bf16 %v9357_v54, %v9355_v37  ;;  %1109 = vmatmul.bf16.gmra.mxu2 %v6635_v51 }
 0x10f   :  { %1158 = vmatmul.bf16.gmra.mxu3 %v6639_v52  ;;  %1733 = vmatpush.bf16.msrb.mxu1 %v9101_v3  ;;  %v8323_v52 = vld [vmem:[#allocation5 + $0x58] sm:$0xff]  ;;  %v6658_v3 = vld [vmem:[#allocation2 + $0x1e0] sm:$0xf] }
 0x111   :  { %v697_v57 = vpop.f32.mrf.mxu2  ;;  %v601_v62 = vpop.f32.mrf.mxu0  ;;  %1251 = vmatpush.bf16.msra.mxu0 %v8323_v52 }
 0x112   :  { %v746_v24 = vpop.f32.mrf.mxu3  ;;  %v698_v60 = vadd.f32 %v697_v57, %v649_v53  ;;  %v650_v63 = vpop.f32.mrf.mxu1 }
 0x113   :  { %v651_v40 = vadd.f32 %v650_v63, %v601_v62  ;;  %1734 = vmatpush.bf16.msrb.mxu1 %v9125_v7  ;;  %v8318_v62 = vld [vmem:[#allocation2 + $0x1ec] sm:$0xf0]  ;;  %v8316_v63 = vld [vmem:[#allocation2 + $0x1e4] sm:$0xf]  ;;  %v8321_v7 = vld [vmem:[#allocation5 + $0x48] sm:$0xff] }
 0x114   :  { %v9361_v14 = vadd.f32 %v746_v24, %v698_v60  ;;  %v6659_v1 = vor.u32 %v8318_v62, %v6658_v3  ;;  %v6663_v4 = vor.u32 %v8316_v63, %v6660_v2 }
 0x115   :  { %1252 = vmatpush.bf16.msra.mxu0 %v8322_v29 }
 0x117   :  { %1735 = vmatpush.bf16.msrb.mxu1 %v9149_v11 }
 0x119   :  { %v699_v8 = vpop.f32.mrf.mxu2  ;;  %v604_v17 = vpop.f32.mrf.mxu0  ;;  %1253 = vmatpush.bf16.msra.mxu0 %v8321_v7 }
 0x11a   :  { %v748_v9 = vpop.f32.mrf.mxu3  ;;  %v700_v46 = vadd.f32 %v699_v8, %v651_v40  ;;  %v653_v47 = vpop.f32.mrf.mxu1  ;;  %v6667_v8 = vor.u32 %v8319_v33, %v6666_v32 }
 0x11b   :  { %v654_v25 = vadd.f32 %v653_v47, %v604_v17  ;;  %1736 = vmatpush.bf16.msrb.mxu1 %v9173_v15 }
 0x11c   :  { %v9363_v50 = vadd.f32 %v748_v9, %v700_v46  ;;  %1016 = vmatmul.bf16.gmra.mxu0 %v6643_v13  ;;  %v6671_v9 = vor.u32 %v8317_v0, %v6668_v34  ;;  %v9381_v46 = vld [vmem:[%s10542_s0 + $0xb8] sm:$0xff] }
 0x11d   :  { %1065 = vmatmul.bf16.gmra.mxu1 %v6647_v44  ;;  %v8320_v44 = vld [vmem:[#allocation5 + $0x40] sm:$0xff] }
 0x11e   :  { %v766_v51 = vpack.c.bf16 %v9363_v50, %v9361_v14  ;;  %1114 = vmatmul.bf16.gmra.mxu2 %v6651_v48  ;;  %1254 = vmatpush.bf16.msra.mxu0 %v8320_v44  ;;  %v6738_v14 = vld [vmem:[#allocation2 + $0x200] sm:$0xf]  ;;  %v8330_v50 = vld [vmem:[#allocation2 + $0x20c] sm:$0xf0] }
 0x11f   :  { %1163 = vmatmul.bf16.gmra.mxu3 %v6655_v21  ;;  %1737 = vmatpush.bf16.msrb.mxu1 %v9197_v19 }
 0x121   :  { %v702_v53 = vpop.f32.mrf.mxu2  ;;  %v606_v57 = vpop.f32.mrf.mxu0 }
 0x122   :  { %v751_v55 = vpop.f32.mrf.mxu3  ;;  %v703_v56 = vadd.f32 %v702_v53, %v654_v25  ;;  %v655_v24 = vpop.f32.mrf.mxu1  ;;  %1684 = vmatpush.bf16.msrb.mxu0 %v9381_v46 }
 0x123   :  { %v656_v35 = vadd.f32 %v655_v24, %v606_v57  ;;  %1738 = vmatpush.bf16.msrb.mxu1 %v9221_v23  ;;  %v9397_v23 = vld [vmem:[%s10542_s0 + $0xa8] sm:$0xff] }
 0x124   :  { %v9369_v60 = vadd.f32 %v751_v55, %v703_v56 }
 0x126   :  { %1685 = vmatpush.bf16.msrb.mxu0 %v9390_v16 }
 0x127   :  { %1739 = vmatpush.bf16.msrb.mxu1 %v9245_v27  ;;  %v9406_v27 = vld [vmem:[%s10542_s0 + $0xa0] sm:$0xff] }
 0x129   :  { %v704_v36 = vpop.f32.mrf.mxu2  ;;  %v609_v40 = vpop.f32.mrf.mxu0 }
 0x12a   :  { %v753_v38 = vpop.f32.mrf.mxu3  ;;  %v705_v39 = vadd.f32 %v704_v36, %v656_v35  ;;  %v658_v11 = vpop.f32.mrf.mxu1  ;;  %1686 = vmatpush.bf16.msrb.mxu0 %v9397_v23 }
 0x12b   :  { %v659_v13 = vadd.f32 %v658_v11, %v609_v40  ;;  %1740 = vmatpush.bf16.msrb.mxu1 %v9265_v31 }
 0x12c   :  { %v9373_v45 = vadd.f32 %v753_v38, %v705_v39  ;;  %1021 = vmatmul.bf16.gmra.mxu0 %v6659_v1  ;;  %v9434_v1 = vld [vmem:[%s10542_s0 + $0x78] sm:$0xff]  ;;  %v9452_v39 = vld [vmem:[%s10542_s0 + $0x88] sm:$0xff] }
 0x12d   :  { %1070 = vmatmul.bf16.gmra.mxu1 %v6663_v4  ;;  %v9446_v4 = vld [vmem:[%s10542_s0 + $0x70] sm:$0xff] }
 0x12e   :  { %v767_v15 = vpack.c.bf16 %v9373_v45, %v9369_v60  ;;  %1119 = vmatmul.bf16.gmra.mxu2 %v6667_v8  ;;  %1687 = vmatpush.bf16.msrb.mxu0 %v9406_v27 }
 0x12f   :  { %1168 = vmatmul.bf16.gmra.mxu3 %v6671_v9 }
 0x131   :  { %v707_v17 = vpop.f32.mrf.mxu2  ;;  %v611_v48 = vpop.f32.mrf.mxu0 }
 0x132   :  { %v756_v47 = vpop.f32.mrf.mxu3  ;;  %v708_v19 = vadd.f32 %v707_v17, %v659_v13  ;;  %v660_v21 = vpop.f32.mrf.mxu1  ;;  %1688 = vmatpush.bf16.msrb.mxu0 %v9192_v18  ;;  %v9458_v13 = vld [vmem:[%s10542_s0 + $0x68] sm:$0xff] }
 0x133   :  { %v661_v52 = vadd.f32 %v660_v21, %v611_v48 }
 0x134   :  { %v9385_v25 = vadd.f32 %v756_v47, %v708_v19  ;;  %v9464_v19 = vld [vmem:[%s10542_s0 + $0x80] sm:$0xff] }
 0x136   :  { %1689 = vmatpush.bf16.msrb.mxu0 %v9216_v22 }
 0x139   :  { %v709_v53 = vpop.f32.mrf.mxu2  ;;  %v987_v57 = vpop.f32.mrf.mxu0 }
 0x13a   :  { %v758_v55 = vpop.f32.mrf.mxu3  ;;  %v710_v56 = vadd.f32 %v709_v53, %v661_v52  ;;  %v1036_v24 = vpop.f32.mrf.mxu1  ;;  %1690 = vmatpush.bf16.msrb.mxu0 %v9240_v26  ;;  %v9428_v26 = vld [vmem:[%s10542_s0 + $0x98] sm:$0xff]  ;;  %v9473_v52 = vld [vmem:[%s10542_s0 + $0x60] sm:$0xff] }
 0x13b   :  { %v1037_v32 = vadd.f32 %v1036_v24, %v987_v57  ;;  %v9479_v57 = vld [vmem:[%s10542_s0 + $0x58] sm:$0xff]  ;;  %v9485_v24 = vld [vmem:[%s10542_s0 + $0x50] sm:$0xff] }
 0x13c   :  { %v9401_v29 = vadd.f32 %v758_v55, %v710_v56 }
 0x13d   :  { %1352 = vmatmul.bf16.vlgmr.msra.gmra.mxu1 %v761_v5 }
 0x13e   :  { %v768_v31 = vpack.c.bf16 %v9401_v29, %v9385_v25  ;;  %2211 = vmatpush.bf16.msra.mxu1 %v9381_v46  ;;  %1691 = vmatpush.bf16.msrb.mxu0 %v9260_v30 }
 0x141   :  { %v1085_v3 = vpop.f32.mrf.mxu2  ;;  %v989_v63 = vpop.f32.mrf.mxu0 }
 0x142   :  { %v1134_v62 = vpop.f32.mrf.mxu3  ;;  %v1038_v2 = vpop.f32.mrf.mxu1  ;;  %2212 = vmatpush.bf16.msra.mxu1 %v9390_v16  ;;  %v1086_v61 = vadd.f32 %v1085_v3, %v1037_v32  ;;  %v9491_v32 = vld [vmem:[%s10542_s0 + $0x48] sm:$0xff] }
 0x143   :  { %v1039_v41 = vadd.f32 %v1038_v2, %v989_v63 }
 0x144   :  { %v1135_v7 = vadd.f32 %v1134_v62, %v1086_v61 }
 0x146   :  { %2213 = vmatpush.bf16.msra.mxu1 %v9397_v23 }
 0x149   :  { %v1087_v5 = vpop.f32.mrf.mxu2  ;;  %v992_v34 = vpop.f32.mrf.mxu0 }
 0x14a   :  { %v1136_v33 = vpop.f32.mrf.mxu3  ;;  %v1088_v0 = vadd.f32 %v1087_v5, %v1039_v41  ;;  %v1041_v18 = vpop.f32.mrf.mxu1  ;;  %2214 = vmatpush.bf16.msra.mxu1 %v9406_v27 }
 0x14c   :  { %v1137_v35 = vadd.f32 %v1136_v33, %v1088_v0 }
 0x14d   :  { %1357 = vmatmul.bf16.gmra.mxu1 %v762_v59  ;;  %v1042_v59 = vadd.f32 %v1041_v18, %v992_v34  ;;  %v9500_v34 = vld [vmem:[%s10542_s0 + $0x40] sm:$0xff] }
 0x14e   :  { %v1174_v22 = vpack.c.bf16 %v1137_v35, %v1135_v7  ;;  %2215 = vmatpush.bf16.msra.mxu1 %v9428_v26 }
 0x150   :  { %1255 = vmatmul.bf16.vlgmr.msra.gmra.mxu0 %v1174_v22 }
 0x151   :  { %v1090_v36 = vpop.f32.mrf.mxu2  ;;  %2162 = vmatpush.bf16.msra.mxu0 %v9434_v1  ;;  %v994_v30 = vpop.f32.mrf.mxu0 }
 0x152   :  { %v1139_v38 = vpop.f32.mrf.mxu3  ;;  %v1043_v12 = vpop.f32.mrf.mxu1  ;;  %2216 = vmatpush.bf16.msra.mxu1 %v9440_v58  ;;  %v1091_v40 = vadd.f32 %v1090_v36, %v1042_v59 }
 0x153   :  { %v1044_v11 = vadd.f32 %v1043_v12, %v994_v30 }
 0x154   :  { %v1140_v48 = vadd.f32 %v1139_v38, %v1091_v40 }
 0x155   :  { %2163 = vmatpush.bf16.msra.mxu0 %v9446_v4 }
 0x156   :  { %2217 = vmatpush.bf16.msra.mxu1 %v9452_v39 }
 0x159   :  { %v1092_v8 = vpop.f32.mrf.mxu2  ;;  %2164 = vmatpush.bf16.msra.mxu0 %v9458_v13  ;;  %v997_v17 = vpop.f32.mrf.mxu0 }
 0x15a   :  { %v1141_v9 = vpop.f32.mrf.mxu3  ;;  %v1093_v44 = vadd.f32 %v1092_v8, %v1044_v11  ;;  %v1046_v47 = vpop.f32.mrf.mxu1  ;;  %2218 = vmatpush.bf16.msra.mxu1 %v9464_v19 }
 0x15c   :  { %v1142_v21 = vadd.f32 %v1141_v9, %v1093_v44 }
 0x15d   :  { %1362 = vmatmul.bf16.gmra.mxu1 %v763_v43  ;;  %2165 = vmatpush.bf16.msra.mxu0 %v9473_v52  ;;  %v1047_v43 = vadd.f32 %v1046_v47, %v997_v17 }
 0x15e   :  { %v1175_v53 = vpack.c.bf16 %v1142_v21, %v1140_v48 }
 0x160   :  { %1260 = vmatmul.bf16.gmra.mxu0 %v1175_v53 }
 0x161   :  { %v1095_v55 = vpop.f32.mrf.mxu2  ;;  %2166 = vmatpush.bf16.msra.mxu0 %v9479_v57  ;;  %v999_v6 = vpop.f32.mrf.mxu0 }
 0x162   :  { %v1144_v56 = vpop.f32.mrf.mxu3  ;;  %v1048_v42 = vpop.f32.mrf.mxu1  ;;  %v1096_v3 = vadd.f32 %v1095_v55, %v1047_v43 }
 0x163   :  { %v1049_v62 = vadd.f32 %v1048_v42, %v999_v6 }
 0x164   :  { %v1145_v33 = vadd.f32 %v1144_v56, %v1096_v3 }
 0x165   :  { %2167 = vmatpush.bf16.msra.mxu0 %v9485_v24 }
 0x169   :  { %v1097_v63 = vpop.f32.mrf.mxu2  ;;  %2168 = vmatpush.bf16.msra.mxu0 %v9491_v32  ;;  %v1002_v41 = vpop.f32.mrf.mxu0 }
 0x16a   :  { %v1146_v2 = vpop.f32.mrf.mxu3  ;;  %v1098_v61 = vadd.f32 %v1097_v63, %v1049_v62  ;;  %v1051_v5 = vpop.f32.mrf.mxu1 }
 0x16b   :  { %v1052_v38 = vadd.f32 %v1051_v5, %v1002_v41 }
 0x16c   :  { %v1147_v0 = vadd.f32 %v1146_v2, %v1098_v61 }
 0x16d   :  { %1367 = vmatmul.bf16.gmra.mxu1 %v764_v28  ;;  %2169 = vmatpush.bf16.msra.mxu0 %v9500_v34 }
 0x16e   :  { %v1176_v18 = vpack.c.bf16 %v1147_v0, %v1145_v33 }
 0x170   :  { %1265 = vmatmul.bf16.gmra.mxu0 %v1176_v18 }
 0x171   :  { %v1100_v7 = vpop.f32.mrf.mxu2  ;;  %v1004_v22 = vpop.f32.mrf.mxu0 }
 0x172   :  { %v1149_v35 = vpop.f32.mrf.mxu3  ;;  %v1053_v36 = vpop.f32.mrf.mxu1  ;;  %v1101_v30 = vadd.f32 %v1100_v7, %v1052_v38 }
 0x173   :  { %v1054_v12 = vadd.f32 %v1053_v36, %v1004_v22 }
 0x174   :  { %v1150_v11 = vadd.f32 %v1149_v35, %v1101_v30 }
 0x179   :  { %v1102_v59 = vpop.f32.mrf.mxu2  ;;  %v1007_v10 = vpop.f32.mrf.mxu0 }
 0x17a   :  { %v1151_v40 = vpop.f32.mrf.mxu3  ;;  %v1103_v49 = vadd.f32 %v1102_v59, %v1054_v12  ;;  %v1056_v28 = vpop.f32.mrf.mxu1  ;;  %v6739_v12 = vor.u32 %v8330_v50, %v6738_v14  ;;  %v6740_v59 = vld [vmem:[#allocation2 + $0x210] sm:$0xf0] }
 0x17b   :  { %v1057_v21 = vadd.f32 %v1056_v28, %v1007_v10  ;;  %v6772_v50 = vld [vmem:[#allocation2 + $0x250] sm:$0xf0] }
 0x17c   :  { %v1152_v8 = vadd.f32 %v1151_v40, %v1103_v49  ;;  %1594 = vmatmul.bf16.vlgmr.msra.gmra.mxu2 %v6739_v12  ;;  %v8333_v12 = vld [vmem:[#allocation2 + $0x22c] sm:$0xf] }
 0x17d   :  { %1372 = vmatmul.bf16.gmra.mxu1 %v765_v20 }
 0x17e   :  { %v1177_v9 = vpack.c.bf16 %v1152_v8, %v1150_v11 }
 0x180   :  { %1270 = vmatmul.bf16.gmra.mxu0 %v1177_v9 }
 0x181   :  { %v1105_v44 = vpop.f32.mrf.mxu2  ;;  %v1009_v47 = vpop.f32.mrf.mxu0 }
 0x182   :  { %v1154_v17 = vpop.f32.mrf.mxu3  ;;  %v1058_v48 = vpop.f32.mrf.mxu1  ;;  %v1106_v53 = vadd.f32 %v1105_v44, %v1057_v21 }
 0x183   :  { %v1059_v55 = vadd.f32 %v1058_v48, %v1009_v47 }
 0x184   :  { %v1155_v62 = vadd.f32 %v1154_v17, %v1106_v53  ;;  %v6754_v53 = vld [vmem:[#allocation2 + $0x220] sm:$0xf] }
 0x189   :  { %v1107_v56 = vpop.f32.mrf.mxu2  ;;  %v1012_v43 = vpop.f32.mrf.mxu0 }
 0x18a   :  { %v1156_v6 = vpop.f32.mrf.mxu3  ;;  %v1108_v42 = vadd.f32 %v1107_v56, %v1059_v55  ;;  %v1061_v3 = vpop.f32.mrf.mxu1  ;;  %v8334_v55 = vld [vmem:[#allocation2 + $0x22c] sm:$0xf0]  ;;  %v8332_v56 = vld [vmem:[#allocation2 + $0x224] sm:$0xf] }
 0x18b   :  { %v1062_v41 = vadd.f32 %v1061_v3, %v1012_v43  ;;  %v6756_v43 = vld [vmem:[#allocation2 + $0x230] sm:$0xf0] }
 0x18c   :  { %v1157_v63 = vadd.f32 %v1156_v6, %v1108_v42  ;;  %v6755_v42 = vor.u32 %v8334_v55, %v6754_v53  ;;  %v6759_v3 = vor.u32 %v8332_v56, %v6756_v43  ;;  %v6762_v53 = vld [vmem:[#allocation2 + $0x228] sm:$0xf]  ;;  %v8335_v55 = vld [vmem:[#allocation2 + $0x234] sm:$0xf0] }
 0x18d   :  { %1377 = vmatmul.bf16.gmra.mxu1 %v766_v51  ;;  %v8328_v51 = vld [vmem:[#allocation2 + $0x204] sm:$0xf] }
 0x18e   :  { %v1178_v37 = vpack.c.bf16 %v1157_v63, %v1155_v62  ;;  %v6743_v40 = vor.u32 %v8328_v51, %v6740_v59  ;;  %1599 = vmatmul.bf16.gmra.mxu2 %v6755_v42  ;;  %v6764_v59 = vld [vmem:[#allocation2 + $0x238] sm:$0xf0]  ;;  %v6763_v42 = vor.u32 %v8335_v55, %v6762_v53  ;;  %v6836_v55 = vld [vmem:[#allocation2 + $0x2d0] sm:$0xf0] }
 0x190   :  { %1275 = vmatmul.bf16.gmra.mxu0 %v1178_v37  ;;  %1643 = vmatmul.bf16.vlgmr.msra.gmra.mxu3 %v6743_v40  ;;  %v6746_v40 = vld [vmem:[#allocation2 + $0x208] sm:$0xf] }
 0x191   :  { %v1110_v54 = vpop.f32.mrf.mxu2  ;;  %v1014_v2 = vpop.f32.mrf.mxu0 }
 0x192   :  { %v1159_v20 = vpop.f32.mrf.mxu3  ;;  %v1063_v61 = vpop.f32.mrf.mxu1  ;;  %v1111_v5 = vadd.f32 %v1110_v54, %v1062_v41 }
 0x193   :  { %v1064_v33 = vadd.f32 %v1063_v61, %v1014_v2  ;;  %v8329_v2 = vld [vmem:[#allocation2 + $0x20c] sm:$0xf]  ;;  %v6748_v61 = vld [vmem:[#allocation2 + $0x218] sm:$0xf0] }
 0x194   :  { %v1160_v36 = vadd.f32 %v1159_v20, %v1111_v5 }
 0x199   :  { %v1112_v0 = vpop.f32.mrf.mxu2  ;;  %v1017_v35 = vpop.f32.mrf.mxu0 }
 0x19a   :  { %v1161_v18 = vpop.f32.mrf.mxu3  ;;  %v1113_v7 = vadd.f32 %v1112_v0, %v1064_v33  ;;  %v1066_v22 = vpop.f32.mrf.mxu1 }
 0x19b   :  { %v1067_v8 = vadd.f32 %v1066_v22, %v1017_v35  ;;  %v6770_v35 = vld [vmem:[#allocation2 + $0x240] sm:$0xf]  ;;  %v8338_v22 = vld [vmem:[#allocation2 + $0x24c] sm:$0xf0] }
 0x19c   :  { %v1162_v38 = vadd.f32 %v1161_v18, %v1113_v7  ;;  %v6771_v14 = vor.u32 %v8338_v22, %v6770_v35 }
 0x19d   :  { %1382 = vmatmul.bf16.gmra.mxu1 %v767_v15 }
 0x19e   :  { %v1179_v30 = vpack.c.bf16 %v1162_v38, %v1160_v36  ;;  %v8336_v36 = vld [vmem:[#allocation2 + $0x244] sm:$0xf]  ;;  %1604 = vmatmul.bf16.gmra.mxu2 %v6771_v14  ;;  %v8350_v14 = vld [vmem:[#allocation2 + $0x2ac] sm:$0xf0] }
 0x19f   :  { %v6775_v51 = vor.u32 %v8336_v36, %v6772_v50  ;;  %v8348_v50 = vld [vmem:[#allocation2 + $0x2a4] sm:$0xf] }
 0x1a0   :  { %1280 = vmatmul.bf16.gmra.mxu0 %v1179_v30  ;;  %1648 = vmatmul.bf16.gmra.mxu3 %v6759_v3  ;;  %v6802_v3 = vld [vmem:[#allocation2 + $0x280] sm:$0xf] }
 0x1a1   :  { %v1115_v49 = vpop.f32.mrf.mxu2  ;;  %v1019_v28 = vpop.f32.mrf.mxu0 }
 0x1a2   :  { %v1164_v10 = vpop.f32.mrf.mxu3  ;;  %v1068_v11 = vpop.f32.mrf.mxu1  ;;  %v1116_v9 = vadd.f32 %v1115_v49, %v1067_v8  ;;  %v8331_v49 = vld [vmem:[#allocation2 + $0x214] sm:$0xf0] }
 0x1a3   :  { %v1069_v44 = vadd.f32 %v1068_v11, %v1019_v28  ;;  %v6747_v11 = vor.u32 %v8331_v49, %v6746_v40 }
 0x1a4   :  { %v1165_v48 = vadd.f32 %v1164_v10, %v1116_v9  ;;  %v6767_v10 = vor.u32 %v8333_v12, %v6764_v59  ;;  %v8342_v9 = vld [vmem:[#allocation2 + $0x26c] sm:$0xf0]  ;;  %v6820_v59 = vld [vmem:[#allocation2 + $0x2b0] sm:$0xf0] }
 0x1a5   :  { %v6823_v40 = vor.u32 %v8348_v50, %v6820_v59  ;;  %v6844_v50 = vld [vmem:[#allocation2 + $0x2d8] sm:$0xf0]  ;;  %v8351_v59 = vld [vmem:[#allocation2 + $0x2b4] sm:$0xf0] }
 0x1a9   :  { %v1117_v17 = vpop.f32.mrf.mxu2  ;;  %v1022_v47 = vpop.f32.mrf.mxu0 }
 0x1aa   :  { %v1166_v60 = vpop.f32.mrf.mxu3  ;;  %v1118_v45 = vadd.f32 %v1117_v17, %v1069_v44  ;;  %v1071_v15 = vpop.f32.mrf.mxu1  ;;  %v8340_v44 = vld [vmem:[#allocation2 + $0x264] sm:$0xf] }
 0x1ab   :  { %v1072_v54 = vadd.f32 %v1071_v15, %v1022_v47  ;;  %v9532_v47 = vld [vmem:[%s10542_s0 + $0x30] sm:$0xff] }
 0x1ac   :  { %v1167_v21 = vadd.f32 %v1166_v60, %v1118_v45 }
 0x1ad   :  { %1387 = vmatmul.bf16.gmra.mxu1 %v768_v31  ;;  %v6751_v31 = vor.u32 %v8329_v2, %v6748_v61 }
 0x1ae   :  { %v1180_v6 = vpack.c.bf16 %v1167_v21, %v1165_v48  ;;  %v8337_v48 = vld [vmem:[#allocation2 + $0x24c] sm:$0xf]  ;;  %v6780_v21 = vld [vmem:[#allocation2 + $0x258] sm:$0xf0] }
 0x1af   :  { %v6783_v56 = vor.u32 %v8337_v48, %v6780_v21  ;;  %v8352_v48 = vld [vmem:[#allocation2 + $0x2c4] sm:$0xf] }
 0x1b0   :  { %1285 = vmatmul.bf16.gmra.mxu0 %v1180_v6  ;;  %1653 = vmatmul.bf16.gmra.mxu3 %v6775_v51  ;;  %v9576_v51 = vld [vmem:[%s10542_s0] sm:$0xff] }
 0x1b1   :  { %v1120_v62 = vpop.f32.mrf.mxu2  ;;  %v1024_v20 = vpop.f32.mrf.mxu0 }
 0x1b2   :  { %v1169_v63 = vpop.f32.mrf.mxu3  ;;  %v1073_v37 = vpop.f32.mrf.mxu1  ;;  %v1121_v41 = vadd.f32 %v1120_v62, %v1072_v54  ;;  %v8346_v62 = vld [vmem:[#allocation2 + $0x28c] sm:$0xf0] }
 0x1b3   :  { %v1074_v25 = vadd.f32 %v1073_v37, %v1024_v20  ;;  %v6803_v54 = vor.u32 %v8346_v62, %v6802_v3  ;;  %v6804_v20 = vld [vmem:[#allocation2 + $0x290] sm:$0xf0]  ;;  %v8349_v3 = vld [vmem:[#allocation2 + $0x2ac] sm:$0xf]  ;;  %v6828_v62 = vld [vmem:[#allocation2 + $0x2b8] sm:$0xf0] }
 0x1b4   :  { %v1170_v18 = vadd.f32 %v1169_v63, %v1121_v41  ;;  %v8344_v63 = vld [vmem:[#allocation2 + $0x284] sm:$0xf] }
 0x1b5   :  { %v6807_v2 = vor.u32 %v8344_v63, %v6804_v20  ;;  %v6810_v63 = vld [vmem:[#allocation2 + $0x288] sm:$0xf]  ;;  %v6831_v20 = vor.u32 %v8349_v3, %v6828_v62  ;;  %v8363_v62 = vld [vmem:[#allocation5 + $0x98] sm:$0xff] }
 0x1b9   :  { %v1122_v29 = vpop.f32.mrf.mxu2 }
 0x1ba   :  { %v1123_v5 = vadd.f32 %v1122_v29, %v1074_v25  ;;  %v1353_v33 = vpop.f32.mrf.mxu1  ;;  %v1171_v0 = vpop.f32.mrf.mxu3  ;;  %v9562_v25 = vld [vmem:[%s10542_s0 + $0x10] sm:$0xff] }
 0x1bc   :  { %v1172_v7 = vadd.f32 %v1171_v0, %v1123_v5  ;;  %v6796_v5 = vld [vmem:[#allocation2 + $0x278] sm:$0xf0]  ;;  %v8339_v0 = vld [vmem:[#allocation2 + $0x254] sm:$0xf0] }
 0x1bd   :  { %1741 = vmatmul.bf16.vlgmr.msrb.gmra.mxu1 %v6751_v31  ;;  %v8341_v31 = vld [vmem:[#allocation2 + $0x26c] sm:$0xf] }
 0x1be   :  { %v1181_v38 = vpack.c.bf16 %v1172_v7, %v1170_v18  ;;  %2689 = vmatpush.bf16.msrb.mxu1 %v9434_v1  ;;  %v6786_v1 = vld [vmem:[#allocation2 + $0x260] sm:$0xf]  ;;  %v6799_v18 = vor.u32 %v8341_v31, %v6796_v5  ;;  %v9570_v7 = vld [vmem:[%s10542_s0 + $0x8] sm:$0xff]  ;;  %v8358_v5 = vld [vmem:[#allocation2 + $0x2ec] sm:$0xf0] }
 0x1bf   :  { %v6787_v60 = vor.u32 %v8342_v9, %v6786_v1  ;;  %v6794_v1 = vld [vmem:[#allocation2 + $0x268] sm:$0xf]  ;;  %v8343_v9 = vld [vmem:[#allocation2 + $0x274] sm:$0xf0]  ;;  %v6850_v31 = vld [vmem:[#allocation2 + $0x2e0] sm:$0xf] }
 0x1c0   :  { %1290 = vmatmul.bf16.gmra.mxu0 %v1181_v38  ;;  %v6818_v38 = vld [vmem:[#allocation2 + $0x2a0] sm:$0xf] }
 0x1c1   :  { %1609 = vmatmul.bf16.gmra.mxu2 %v6787_v60  ;;  %v6819_v12 = vor.u32 %v8350_v14, %v6818_v38  ;;  %v8353_v14 = vld [vmem:[#allocation2 + $0x2cc] sm:$0xf] }
 0x1c2   :  { %v1355_v30 = vpop.f32.mrf.mxu1  ;;  %2690 = vmatpush.bf16.msrb.mxu1 %v9446_v4  ;;  %v6788_v4 = vld [vmem:[#allocation2 + $0x270] sm:$0xf0] }
 0x1c3   :  { %v6791_v45 = vor.u32 %v8340_v44, %v6788_v4  ;;  %v6795_v4 = vor.u32 %v8343_v9, %v6794_v1  ;;  %v8366_v9 = vld [vmem:[#allocation5 + $0xb0] sm:$0xff] }
 0x1c5   :  { %1658 = vmatmul.bf16.gmra.mxu3 %v6791_v45 }
 0x1c6   :  { %2691 = vmatpush.bf16.msrb.mxu1 %v9458_v13  ;;  %v9525_v13 = vld [vmem:[%s10542_s0 + $0x38] sm:$0xff] }
 0x1ca   :  { %v1358_v28 = vpop.f32.mrf.mxu1  ;;  %2692 = vmatpush.bf16.msrb.mxu1 %v9473_v52 }
 0x1cd   :  { %v1256_v8 = vpop.f32.mrf.mxu0  ;;  %1746 = vmatmul.bf16.gmra.mxu1 %v6767_v10 }
 0x1ce   :  { %v9519_v17 = vadd.f32 %v1353_v33, %v1256_v8  ;;  %2693 = vmatpush.bf16.msrb.mxu1 %v9479_v57  ;;  %v6778_v33 = vld [vmem:[#allocation2 + $0x248] sm:$0xf]  ;;  %v6812_v8 = vld [vmem:[#allocation2 + $0x298] sm:$0xf0] }
 0x1cf   :  { %v6779_v22 = vor.u32 %v8339_v0, %v6778_v33  ;;  %v8356_v33 = vld [vmem:[#allocation2 + $0x2e4] sm:$0xf] }
 0x1d0   :  { %1692 = vmatmul.bf16.vlgmr.msrb.gmra.mxu0 %v6747_v11  ;;  %v8345_v11 = vld [vmem:[#allocation2 + $0x28c] sm:$0xf] }
 0x1d1   :  { %2640 = vmatpush.bf16.msrb.mxu0 %v9525_v13  ;;  %1614 = vmatmul.bf16.gmra.mxu2 %v6803_v54  ;;  %v6815_v44 = vor.u32 %v8345_v11, %v6812_v8  ;;  %v8347_v54 = vld [vmem:[#allocation2 + $0x294] sm:$0xf0] }
 0x1d2   :  { %v1360_v52 = vpop.f32.mrf.mxu1  ;;  %2694 = vmatpush.bf16.msrb.mxu1 %v9485_v24  ;;  %v9541_v24 = vld [vmem:[%s10542_s0 + $0x28] sm:$0xff] }
 0x1d5   :  { %v1258_v15 = vpop.f32.mrf.mxu0  ;;  %2641 = vmatpush.bf16.msrb.mxu0 %v9532_v47  ;;  %1663 = vmatmul.bf16.gmra.mxu3 %v6807_v2 }
 0x1d6   :  { %v9535_v57 = vadd.f32 %v1355_v30, %v1258_v15  ;;  %2695 = vmatpush.bf16.msrb.mxu1 %v9491_v32  ;;  %v9548_v32 = vld [vmem:[%s10542_s0 + $0x20] sm:$0xff]  ;;  %v8354_v15 = vld [vmem:[#allocation2 + $0x2cc] sm:$0xf0] }
 0x1d9   :  { %2642 = vmatpush.bf16.msrb.mxu0 %v9541_v24 }
 0x1da   :  { %v1363_v6 = vpop.f32.mrf.mxu1  ;;  %2696 = vmatpush.bf16.msrb.mxu1 %v9500_v34  ;;  %v9556_v34 = vld [vmem:[%s10542_s0 + $0x18] sm:$0xff] }
 0x1dd   :  { %v1261_v43 = vpop.f32.mrf.mxu0  ;;  %1751 = vmatmul.bf16.gmra.mxu1 %v6783_v56  ;;  %2643 = vmatpush.bf16.msrb.mxu0 %v9548_v32  ;;  %v6839_v56 = vor.u32 %v8352_v48, %v6836_v55  ;;  %v6842_v48 = vld [vmem:[#allocation2 + $0x2c8] sm:$0xf] }
 0x1de   :  { %v9551_v37 = vadd.f32 %v1358_v28, %v1261_v43 }
 0x1e0   :  { %1697 = vmatmul.bf16.gmra.mxu0 %v6763_v42 }
 0x1e1   :  { %2644 = vmatpush.bf16.msrb.mxu0 %v9556_v34  ;;  %1619 = vmatmul.bf16.gmra.mxu2 %v6819_v12  ;;  %v6826_v12 = vld [vmem:[#allocation2 + $0x2a8] sm:$0xf] }
 0x1e2   :  { %v1365_v61 = vpop.f32.mrf.mxu1  ;;  %v6827_v11 = vor.u32 %v8351_v59, %v6826_v12 }
 0x1e5   :  { %v1263_v41 = vpop.f32.mrf.mxu0  ;;  %2645 = vmatpush.bf16.msrb.mxu0 %v9562_v25  ;;  %1668 = vmatmul.bf16.gmra.mxu3 %v6823_v40  ;;  %v6847_v40 = vor.u32 %v8353_v14, %v6844_v50  ;;  %v9610_v50 = vld [vmem:[%s10542_s0 + $0xf8] sm:$0xff] }
 0x1e6   :  { %v9565_v29 = vadd.f32 %v1360_v52, %v1263_v41  ;;  %v6834_v52 = vld [vmem:[#allocation2 + $0x2c0] sm:$0xf] }
 0x1e7   :  { %v6835_v53 = vor.u32 %v8354_v15, %v6834_v52  ;;  %v6860_v52 = vld [vmem:[#allocation2 + $0x2f8] sm:$0xf0]  ;;  %v8364_v15 = vld [vmem:[#allocation5 + $0xa0] sm:$0xff] }
 0x1e9   :  { %2646 = vmatpush.bf16.msrb.mxu0 %v9570_v7 }
 0x1ea   :  { %v1368_v35 = vpop.f32.mrf.mxu1 }
 0x1ed   :  { %v1266_v36 = vpop.f32.mrf.mxu0  ;;  %1756 = vmatmul.bf16.gmra.mxu1 %v6799_v18  ;;  %2647 = vmatpush.bf16.msrb.mxu0 %v9576_v51  ;;  %v6851_v18 = vor.u32 %v8358_v5, %v6850_v31 }
 0x1ee   :  { %v9579_v30 = vadd.f32 %v1363_v6, %v1266_v36 }
 0x1f0   :  { %1702 = vmatmul.bf16.gmra.mxu0 %v6779_v22 }
 0x1f1   :  { %1624 = vmatmul.bf16.gmra.mxu2 %v6835_v53  ;;  %v8355_v53 = vld [vmem:[#allocation2 + $0x2d4] sm:$0xf0] }
 0x1f2   :  { %v1370_v49 = vpop.f32.mrf.mxu1 }
 0x1f5   :  { %v1268_v10 = vpop.f32.mrf.mxu0  ;;  %1673 = vmatmul.bf16.gmra.mxu3 %v6839_v56 }
 0x1f6   :  { %v9581_v28 = vadd.f32 %v1365_v61, %v1268_v10  ;;  %v6811_v61 = vor.u32 %v8347_v54, %v6810_v63  ;;  %v8367_v10 = vld [vmem:[#allocation5 + $0xb8] sm:$0xff]  ;;  %v6843_v63 = vor.u32 %v8355_v53, %v6842_v48 }
 0x1f7   :  { %1855 = vmatpush.bf16.msrb.mxu2 %v8367_v10  ;;  %v9618_v10 = vld [vmem:[%s10542_s0 + $0xf0] sm:$0xff]  ;;  %v9638_v53 = vld [vmem:[%s10542_s0 + $0xd8] sm:$0xff] }
 0x1fa   :  { %v1373_v60 = vpop.f32.mrf.mxu1 }
 0x1fb   :  { %1856 = vmatpush.bf16.msrb.mxu2 %v8366_v9  ;;  %v9624_v9 = vld [vmem:[%s10542_s0 + $0xe8] sm:$0xff] }
 0x1fd   :  { %v1271_v45 = vpop.f32.mrf.mxu0  ;;  %1761 = vmatmul.bf16.gmra.mxu1 %v6815_v44 }
 0x1fe   :  { %v9583_v21 = vadd.f32 %v1368_v35, %v1271_v45  ;;  %v6852_v35 = vld [vmem:[#allocation2 + $0x2f0] sm:$0xf0]  ;;  %v8357_v45 = vld [vmem:[#allocation2 + $0x2ec] sm:$0xf] }
 0x1ff   :  { %v6855_v22 = vor.u32 %v8356_v33, %v6852_v35  ;;  %v6863_v55 = vor.u32 %v8357_v45, %v6860_v52  ;;  %v6858_v35 = vld [vmem:[#allocation2 + $0x2e8] sm:$0xf]  ;;  %v9632_v45 = vld [vmem:[%s10542_s0 + $0xe0] sm:$0xff] }
 0x200   :  { %1707 = vmatmul.bf16.gmra.mxu0 %v6795_v4 }
 0x201   :  { %1629 = vmatmul.bf16.gmra.mxu2 %v6851_v18  ;;  %v8360_v18 = vld [vmem:[#allocation5 + $0x80] sm:$0xff] }
 0x202   :  { %v9585_v6 = vpop.f32.mrf.mxu1 }
 0x203   :  { %10550 = vst [vmem:[#allocation19_spill] sm:$0xff] %v9585_v6 }
 0x205   :  { %v1273_v42 = vpop.f32.mrf.mxu0  ;;  %1678 = vmatmul.bf16.gmra.mxu3 %v6855_v22  ;;  %v8359_v22 = vld [vmem:[#allocation2 + $0x2f4] sm:$0xf0] }
 0x206   :  { %v9587_v43 = vadd.f32 %v1370_v49, %v1273_v42  ;;  %v1595_v42 = vpop.f32.mrf.mxu2  ;;  %v6859_v12 = vor.u32 %v8359_v22, %v6858_v35 }
 0x20a   :  { %v1378_v2 = vpop.f32.mrf.mxu1 }
 0x20d   :  { %v1276_v41 = vpop.f32.mrf.mxu0  ;;  %1766 = vmatmul.bf16.gmra.mxu1 %v6831_v20 }
 0x20e   :  { %v9589_v0 = vadd.f32 %v1373_v60, %v1276_v41  ;;  %v8365_v60 = vld [vmem:[#allocation5 + $0xa8] sm:$0xff]  ;;  %v1597_v31 = vpop.f32.mrf.mxu2 }
 0x20f   :  { %1857 = vmatpush.bf16.msrb.mxu2 %v8365_v60  ;;  %v8361_v41 = vld [vmem:[#allocation5 + $0x88] sm:$0xff] }
 0x210   :  { %1712 = vmatmul.bf16.gmra.mxu0 %v6811_v61 }
 0x212   :  { %v9591_v36 = vpop.f32.mrf.mxu1 }
 0x213   :  { %10551 = vst [vmem:[#allocation20_spill] sm:$0xff] %v9591_v36  ;;  %1858 = vmatpush.bf16.msrb.mxu2 %v8364_v15  ;;  %v1644_v3 = vpop.f32.mrf.mxu3 }
 0x215   :  { %v9593_v38 = vpop.f32.mrf.mxu0 }
 0x216   :  { %10552 = vst [vmem:[#allocation21_spill] sm:$0xff] %v9593_v38 }
 0x217   :  { %1859 = vmatpush.bf16.msrb.mxu2 %v8363_v62  ;;  %v1645_v62 = vadd.f32 %v1644_v3, %v1595_v42 }
 0x21a   :  { %v1383_v49 = vpop.f32.mrf.mxu1 }
 0x21b   :  { %v1646_v33 = vpop.f32.mrf.mxu3 }
 0x21d   :  { %v1281_v8 = vpop.f32.mrf.mxu0  ;;  %1771 = vmatmul.bf16.gmra.mxu1 %v6847_v40 }
 0x21e   :  { %v9595_v1 = vadd.f32 %v1378_v2, %v1281_v8  ;;  %v8362_v2 = vld [vmem:[#allocation5 + $0x90] sm:$0xff] }
 0x21f   :  { %1860 = vmatpush.bf16.msrb.mxu2 %v8362_v2  ;;  %v9650_v2 = vld [vmem:[%s10542_s0 + $0xc8] sm:$0xff] }
 0x220   :  { %1717 = vmatmul.bf16.gmra.mxu0 %v6827_v11 }
 0x222   :  { %v9597_v44 = vpop.f32.mrf.mxu1 }
 0x223   :  { %1861 = vmatpush.bf16.msrb.mxu2 %v8361_v41  ;;  %v1649_v11 = vpop.f32.mrf.mxu3 }
 0x225   :  { %v9599_v4 = vpop.f32.mrf.mxu0 }
 0x226   :  { %10553 = vst [vmem:[#allocation22_spill] sm:$0xff] %v9599_v4 }
 0x227   :  { %1862 = vmatpush.bf16.msrb.mxu2 %v8360_v18  ;;  %v1647_v18 = vadd.f32 %v1646_v33, %v1597_v31 }
 0x22a   :  { %v1388_v56 = vpop.f32.mrf.mxu1 }
 0x22b   :  { %2260 = vmatpush.bf16.msra.mxu2 %v9610_v50  ;;  %v1651_v15 = vpop.f32.mrf.mxu3 }
 0x22d   :  { %v1286_v54 = vpop.f32.mrf.mxu0  ;;  %1776 = vmatmul.bf16.gmra.mxu1 %v6863_v55 }
 0x22e   :  { %v9601_v20 = vadd.f32 %v1383_v49, %v1286_v54  ;;  %v1600_v49 = vpop.f32.mrf.mxu2 }
 0x22f   :  { %2261 = vmatpush.bf16.msra.mxu2 %v9618_v10  ;;  %v1650_v31 = vadd.f32 %v1649_v11, %v1600_v49 }
 0x230   :  { %1722 = vmatmul.bf16.gmra.mxu0 %v6843_v63 }
 0x232   :  { %v9603_v61 = vpop.f32.mrf.mxu1 }
 0x233   :  { %10554 = vst [vmem:[#allocation23_spill] sm:$0xff] %v9603_v61  ;;  %2262 = vmatpush.bf16.msra.mxu2 %v9624_v9  ;;  %v1654_v41 = vpop.f32.mrf.mxu3 }
 0x235   :  { %v9605_v5 = vpop.f32.mrf.mxu0 }
 0x236   :  { %v1602_v52 = vpop.f32.mrf.mxu2 }
 0x237   :  { %2263 = vmatpush.bf16.msra.mxu2 %v9632_v45 }
 0x23a   :  { %v1742_v14 = vpop.f32.mrf.mxu1 }
 0x23b   :  { %2264 = vmatpush.bf16.msra.mxu2 %v9638_v53  ;;  %v1656_v61 = vpop.f32.mrf.mxu3 }
 0x23d   :  { %v1291_v59 = vpop.f32.mrf.mxu0 }
 0x23e   :  { %v9613_v40 = vadd.f32 %v1388_v56, %v1291_v59  ;;  %v9644_v56 = vld [vmem:[%s10542_s0 + $0xd0] sm:$0xff]  ;;  %v1605_v54 = vpop.f32.mrf.mxu2  ;;  %v9656_v59 = vld [vmem:[%s10542_s0 + $0xc0] sm:$0xff] }
 0x23f   :  { %2265 = vmatpush.bf16.msra.mxu2 %v9644_v56 }
 0x240   :  { %1727 = vmatmul.bf16.gmra.mxu0 %v6859_v12 }
 0x242   :  { %v1744_v8 = vpop.f32.mrf.mxu1 }
 0x243   :  { %2266 = vmatpush.bf16.msra.mxu2 %v9650_v2 }
 0x245   :  { %v9627_v60 = vpop.f32.mrf.mxu0 }
 0x246   :  { %10555 = vst [vmem:[#allocation24_spill] sm:$0xff] %v9627_v60  ;;  %v1607_v36 = vpop.f32.mrf.mxu2 }
 0x247   :  { %2267 = vmatpush.bf16.msra.mxu2 %v9656_v59 }
 0x24a   :  { %v1747_v48 = vpop.f32.mrf.mxu1 }
 0x24d   :  { %v1693_v55 = vpop.f32.mrf.mxu0 }
 0x24e   :  { %v1694_v35 = vadd.f32 %v1693_v55, %v1645_v62  ;;  %v1652_v55 = vadd.f32 %v1651_v15, %v1602_v52 }
 0x250   :  { %v1743_v42 = vadd.f32 %v1742_v14, %v1694_v35  ;;  %v1610_v14 = vpop.f32.mrf.mxu2 }
 0x252   :  { %v1749_v63 = vpop.f32.mrf.mxu1 }
 0x255   :  { %v1695_v22 = vpop.f32.mrf.mxu0 }
 0x256   :  { %v1696_v12 = vadd.f32 %v1695_v22, %v1647_v18 }
 0x258   :  { %v1745_v3 = vadd.f32 %v1744_v8, %v1696_v12  ;;  %v1659_v8 = vpop.f32.mrf.mxu3  ;;  %v1612_v49 = vpop.f32.mrf.mxu2 }
 0x25a   :  { %v1782_v6 = vpack.c.bf16 %v1745_v3, %v1743_v42  ;;  %v1752_v38 = vpop.f32.mrf.mxu1 }
 0x25c   :  { %1863 = vmatmul.bf16.vlgmr.msrb.gmra.mxu2 %v1782_v6 }
 0x25d   :  { %v1698_v4 = vpop.f32.mrf.mxu0  ;;  %2738 = vmatpush.bf16.msrb.mxu2 %v9381_v46 }
 0x25e   :  { %v1699_v62 = vadd.f32 %v1698_v4, %v1650_v31  ;;  %v1657_v4 = vadd.f32 %v1656_v61, %v1607_v36 }
 0x260   :  { %v1748_v35 = vadd.f32 %v1747_v48, %v1699_v62  ;;  %v1661_v11 = vpop.f32.mrf.mxu3  ;;  %v1615_v31 = vpop.f32.mrf.mxu2 }
 0x261   :  { %2739 = vmatpush.bf16.msrb.mxu2 %v9390_v16  ;;  %v1655_v16 = vadd.f32 %v1654_v41, %v1605_v54  ;;  %v1660_v54 = vadd.f32 %v1659_v8, %v1610_v14  ;;  %v1662_v62 = vadd.f32 %v1661_v11, %v1612_v49 }
 0x262   :  { %v1754_v33 = vpop.f32.mrf.mxu1 }
 0x265   :  { %v1700_v18 = vpop.f32.mrf.mxu0  ;;  %2740 = vmatpush.bf16.msrb.mxu2 %v9397_v23 }
 0x266   :  { %v1701_v22 = vadd.f32 %v1700_v18, %v1652_v55 }
 0x268   :  { %v1750_v12 = vadd.f32 %v1749_v63, %v1701_v22  ;;  %v1664_v55 = vpop.f32.mrf.mxu3  ;;  %v1617_v36 = vpop.f32.mrf.mxu2 }
 0x269   :  { %2741 = vmatpush.bf16.msrb.mxu2 %v9406_v27 }
 0x26a   :  { %v1783_v6 = vpack.c.bf16 %v1750_v12, %v1748_v35  ;;  %v1757_v46 = vpop.f32.mrf.mxu1 }
 0x26c   :  { %1868 = vmatmul.bf16.gmra.mxu2 %v1783_v6 }
 0x26d   :  { %v1703_v42 = vpop.f32.mrf.mxu0  ;;  %2742 = vmatpush.bf16.msrb.mxu2 %v9428_v26 }
 0x26e   :  { %v1704_v23 = vadd.f32 %v1703_v42, %v1655_v16  ;;  %v1665_v42 = vadd.f32 %v1664_v55, %v1615_v31 }
 0x270   :  { %v1753_v63 = vadd.f32 %v1752_v38, %v1704_v23  ;;  %v1666_v18 = vpop.f32.mrf.mxu3 }
 0x271   :  { %2743 = vmatpush.bf16.msrb.mxu2 %v9440_v58  ;;  %v1667_v16 = vadd.f32 %v1666_v18, %v1617_v36 }
 0x272   :  { %v1759_v48 = vpop.f32.mrf.mxu1 }
 0x275   :  { %v1705_v52 = vpop.f32.mrf.mxu0  ;;  %2744 = vmatpush.bf16.msrb.mxu2 %v9452_v39 }
 0x276   :  { %v1706_v15 = vadd.f32 %v1705_v52, %v1657_v4 }
 0x278   :  { %v1755_v27 = vadd.f32 %v1754_v33, %v1706_v15  ;;  %v1669_v6 = vpop.f32.mrf.mxu3 }
 0x279   :  { %2745 = vmatpush.bf16.msrb.mxu2 %v9464_v19  ;;  %v1620_v19 = vpop.f32.mrf.mxu2 }
 0x27a   :  { %v1784_v3 = vpack.c.bf16 %v1755_v27, %v1753_v63  ;;  %v1762_v41 = vpop.f32.mrf.mxu1  ;;  %v1670_v27 = vadd.f32 %v1669_v6, %v1620_v19  ;;  %v6906_v19 = vld [vmem:[#allocation2 + $0x308] sm:$0xf]  ;;  %v8371_v6 = vld [vmem:[#allocation2 + $0x314] sm:$0xf0] }
 0x27c   :  { %1873 = vmatmul.bf16.gmra.mxu2 %v1784_v3 }
 0x27d   :  { %v1708_v26 = vpop.f32.mrf.mxu0 }
 0x27e   :  { %v1709_v58 = vadd.f32 %v1708_v26, %v1660_v54 }
 0x280   :  { %v1758_v39 = vadd.f32 %v1757_v46, %v1709_v58  ;;  %v1671_v15 = vpop.f32.mrf.mxu3 }
 0x281   :  { %v1622_v52 = vpop.f32.mrf.mxu2 }
 0x282   :  { %v1764_v38 = vpop.f32.mrf.mxu1  ;;  %v1672_v54 = vadd.f32 %v1671_v15, %v1622_v52 }
 0x285   :  { %v1710_v61 = vpop.f32.mrf.mxu0 }
 0x286   :  { %v1711_v22 = vadd.f32 %v1710_v61, %v1662_v62 }
 0x288   :  { %v1760_v35 = vadd.f32 %v1759_v48, %v1711_v22  ;;  %v1674_v26 = vpop.f32.mrf.mxu3 }
 0x289   :  { %v1625_v3 = vpop.f32.mrf.mxu2 }
 0x28a   :  { %v1785_v12 = vpack.c.bf16 %v1760_v35, %v1758_v39  ;;  %v1767_v14 = vpop.f32.mrf.mxu1  ;;  %v8370_v39 = vld [vmem:[#allocation2 + $0x30c] sm:$0xf0]  ;;  %v8368_v35 = vld [vmem:[#allocation2 + $0x304] sm:$0xf] }
 0x28c   :  { %1878 = vmatmul.bf16.gmra.mxu2 %v1785_v12 }
 0x28d   :  { %v1713_v33 = vpop.f32.mrf.mxu0 }
 0x28e   :  { %v1714_v4 = vadd.f32 %v1713_v33, %v1665_v42  ;;  %v6900_v42 = vld [vmem:[#allocation2 + $0x310] sm:$0xf0] }
 0x290   :  { %v1763_v49 = vadd.f32 %v1762_v41, %v1714_v4  ;;  %v6898_v41 = vld [vmem:[#allocation2 + $0x300] sm:$0xf]  ;;  %v1676_v12 = vpop.f32.mrf.mxu3  ;;  %v6907_v4 = vor.u32 %v8371_v6, %v6906_v19 }
 0x291   :  { %v1627_v22 = vpop.f32.mrf.mxu2  ;;  %v6899_v33 = vor.u32 %v8370_v39, %v6898_v41  ;;  %v6922_v41 = vld [vmem:[#allocation2 + $0x328] sm:$0xf]  ;;  %v8375_v39 = vld [vmem:[#allocation2 + $0x334] sm:$0xf0]  ;;  %v6930_v19 = vld [vmem:[#allocation2 + $0x340] sm:$0xf] }
 0x292   :  { %v1769_v48 = vpop.f32.mrf.mxu1  ;;  %2219 = vmatmul.bf16.vlgmr.msra.gmra.mxu1 %v6907_v4  ;;  %v6932_v4 = vld [vmem:[#allocation2 + $0x350] sm:$0xf0] }
 0x293   :  { %2121 = vmatmul.bf16.vlgmr.msrb.gmra.mxu3 %v6899_v33  ;;  %3167 = vmatpush.bf16.msra.mxu1 %v9525_v13 }
 0x295   :  { %v1715_v23 = vpop.f32.mrf.mxu0 }
 0x296   :  { %v1716_v8 = vadd.f32 %v1715_v23, %v1667_v16  ;;  %v6903_v16 = vor.u32 %v8368_v35, %v6900_v42  ;;  %v1675_v23 = vadd.f32 %v1674_v26, %v1625_v3 }
 0x297   :  { %3168 = vmatpush.bf16.msra.mxu1 %v9532_v47  ;;  %v6916_v47 = vld [vmem:[#allocation2 + $0x330] sm:$0xf0] }
 0x298   :  { %v1765_v11 = vadd.f32 %v1764_v38, %v1716_v8  ;;  %2170 = vmatmul.bf16.vlgmr.msra.gmra.mxu0 %v6903_v16  ;;  %v1677_v8 = vadd.f32 %v1676_v12, %v1627_v22  ;;  %v8376_v16 = vld [vmem:[#allocation2 + $0x344] sm:$0xf] }
 0x299   :  { %v1630_v15 = vpop.f32.mrf.mxu2 }
 0x29a   :  { %v1786_v63 = vpack.c.bf16 %v1765_v11, %v1763_v49  ;;  %v1772_v61 = vpop.f32.mrf.mxu1 }
 0x29b   :  { %3169 = vmatpush.bf16.msra.mxu1 %v9541_v24 }
 0x29c   :  { %1883 = vmatmul.bf16.gmra.mxu2 %v1786_v63  ;;  %v1679_v63 = vpop.f32.mrf.mxu3 }
 0x29d   :  { %v1718_v46 = vpop.f32.mrf.mxu0 }
 0x29e   :  { %v1719_v62 = vadd.f32 %v1718_v46, %v1670_v27 }
 0x29f   :  { %3170 = vmatpush.bf16.msra.mxu1 %v9548_v32  ;;  %v6923_v32 = vor.u32 %v8375_v39, %v6922_v41  ;;  %v9708_v41 = vld [vmem:[%s10542_s0 + $0x58] sm:$0xff] }
 0x2a0   :  { %v1768_v55 = vadd.f32 %v1767_v14, %v1719_v62  ;;  %v8374_v62 = vld [vmem:[#allocation2 + $0x32c] sm:$0xf0] }
 0x2a2   :  { %v1774_v14 = vpop.f32.mrf.mxu1  ;;  %2224 = vmatmul.bf16.gmra.mxu1 %v6923_v32  ;;  %v8384_v32 = vld [vmem:[#allocation2 + $0x384] sm:$0xf] }
 0x2a3   :  { %3171 = vmatpush.bf16.msra.mxu1 %v9556_v34  ;;  %v8378_v34 = vld [vmem:[#allocation2 + $0x34c] sm:$0xf0] }
 0x2a4   :  { %v6931_v6 = vor.u32 %v8378_v34, %v6930_v19  ;;  %v6940_v19 = vld [vmem:[#allocation2 + $0x358] sm:$0xf0]  ;;  %v6970_v34 = vld [vmem:[#allocation2 + $0x388] sm:$0xf] }
 0x2a5   :  { %v1720_v58 = vpop.f32.mrf.mxu0 }
 0x2a6   :  { %v1721_v31 = vadd.f32 %v1720_v58, %v1672_v54  ;;  %v6914_v54 = vld [vmem:[#allocation2 + $0x320] sm:$0xf]  ;;  %v1680_v58 = vadd.f32 %v1679_v63, %v1630_v15  ;;  %v8382_v15 = vld [vmem:[#allocation2 + $0x36c] sm:$0xf0] }
 0x2a7   :  { %v6915_v13 = vor.u32 %v8374_v62, %v6914_v54  ;;  %3172 = vmatpush.bf16.msra.mxu1 %v9562_v25  ;;  %v8369_v25 = vld [vmem:[#allocation2 + $0x30c] sm:$0xf]  ;;  %v9687_v54 = vld [vmem:[%s10542_s0 + $0x70] sm:$0xff] }
 0x2a8   :  { %v1770_v36 = vadd.f32 %v1769_v48, %v1721_v31  ;;  %v8372_v31 = vld [vmem:[#allocation2 + $0x324] sm:$0xf]  ;;  %v8373_v62 = vld [vmem:[#allocation2 + $0x32c] sm:$0xf] }
 0x2a9   :  { %2126 = vmatmul.bf16.gmra.mxu3 %v6915_v13  ;;  %v6924_v13 = vld [vmem:[#allocation2 + $0x338] sm:$0xf0] }
 0x2aa   :  { %v1787_v18 = vpack.c.bf16 %v1770_v36, %v1768_v55  ;;  %v1777_v3 = vpop.f32.mrf.mxu1  ;;  %v1632_v55 = vpop.f32.mrf.mxu2 }
 0x2ab   :  { %v1681_v36 = vpop.f32.mrf.mxu3  ;;  %3173 = vmatpush.bf16.msra.mxu1 %v9570_v7  ;;  %v6946_v7 = vld [vmem:[#allocation2 + $0x360] sm:$0xf] }
 0x2ac   :  { %1888 = vmatmul.bf16.gmra.mxu2 %v1787_v18  ;;  %v6919_v18 = vor.u32 %v8372_v31, %v6916_v47  ;;  %v1682_v24 = vadd.f32 %v1681_v36, %v1632_v55  ;;  %v6947_v63 = vor.u32 %v8382_v15, %v6946_v7  ;;  %v8383_v31 = vld [vmem:[#allocation2 + $0x374] sm:$0xf0]  ;;  %v6980_v15 = vld [vmem:[#allocation2 + $0x3b0] sm:$0xf0] }
 0x2ad   :  { %v1723_v38 = vpop.f32.mrf.mxu0 }
 0x2ae   :  { %v1724_v49 = vadd.f32 %v1723_v38, %v1675_v23  ;;  %2175 = vmatmul.bf16.gmra.mxu0 %v6919_v18  ;;  %v6935_v23 = vor.u32 %v8376_v16, %v6932_v4  ;;  %v6927_v18 = vor.u32 %v8373_v62, %v6924_v13 }
 0x2af   :  { %3174 = vmatpush.bf16.msra.mxu1 %v9576_v51  ;;  %v9678_v51 = vld [vmem:[%s10542_s0 + $0x78] sm:$0xff] }
 0x2b0   :  { %v1773_v46 = vadd.f32 %v1772_v61, %v1724_v49  ;;  %v8379_v49 = vld [vmem:[#allocation2 + $0x354] sm:$0xf0] }
 0x2b2   :  { %v1779_v12 = vpop.f32.mrf.mxu1 }
 0x2b5   :  { %v1725_v11 = vpop.f32.mrf.mxu0 }
 0x2b6   :  { %v1726_v52 = vadd.f32 %v1725_v11, %v1677_v8  ;;  %v6938_v8 = vld [vmem:[#allocation2 + $0x348] sm:$0xf] }
 0x2b7   :  { %v6939_v11 = vor.u32 %v8379_v49, %v6938_v8  ;;  %v6978_v8 = vld [vmem:[#allocation2 + $0x3a0] sm:$0xf]  ;;  %v8390_v49 = vld [vmem:[#allocation2 + $0x3ac] sm:$0xf0] }
 0x2b8   :  { %v1775_v48 = vadd.f32 %v1774_v14, %v1726_v52  ;;  %v6908_v14 = vld [vmem:[#allocation2 + $0x318] sm:$0xf0] }
 0x2b9   :  { %2131 = vmatmul.bf16.gmra.mxu3 %v6931_v6  ;;  %v6911_v52 = vor.u32 %v8369_v25, %v6908_v14  ;;  %2229 = vmatmul.bf16.gmra.mxu1 %v6939_v11  ;;  %v8387_v6 = vld [vmem:[#allocation2 + $0x394] sm:$0xf0]  ;;  %v9732_v14 = vld [vmem:[%s10542_s0 + $0x40] sm:$0xff]  ;;  %v6979_v11 = vor.u32 %v8390_v49, %v6978_v8 }
 0x2ba   :  { %v1788_v27 = vpack.c.bf16 %v1775_v48, %v1773_v46  ;;  %v6971_v16 = vor.u32 %v8387_v6, %v6970_v34  ;;  %v8396_v49 = vld [vmem:[#allocation2 + $0x3e4] sm:$0xf] }
 0x2bc   :  { %1893 = vmatmul.bf16.gmra.mxu2 %v1788_v27  ;;  %v8380_v27 = vld [vmem:[#allocation2 + $0x364] sm:$0xf] }
 0x2bd   :  { %v1728_v26 = vpop.f32.mrf.mxu0 }
 0x2be   :  { %v1729_v61 = vadd.f32 %v1728_v26, %v1680_v58  ;;  %2180 = vmatmul.bf16.gmra.mxu0 %v6935_v23  ;;  %v6954_v58 = vld [vmem:[#allocation2 + $0x368] sm:$0xf] }
 0x2bf   :  { %v6955_v47 = vor.u32 %v8383_v31, %v6954_v58 }
 0x2c0   :  { %v1778_v38 = vadd.f32 %v1777_v3, %v1729_v61  ;;  %v6948_v3 = vld [vmem:[#allocation2 + $0x370] sm:$0xf0]  ;;  %v6962_v61 = vld [vmem:[#allocation2 + $0x380] sm:$0xf] }
 0x2c1   :  { %v6951_v26 = vor.u32 %v8380_v27, %v6948_v3  ;;  %v6956_v27 = vld [vmem:[#allocation2 + $0x378] sm:$0xf0]  ;;  %v6986_v3 = vld [vmem:[#allocation2 + $0x3a8] sm:$0xf] }
 0x2c5   :  { %v1730_v22 = vpop.f32.mrf.mxu0 }
 0x2c6   :  { %v1731_v35 = vadd.f32 %v1730_v22, %v1682_v24  ;;  %v9702_v24 = vld [vmem:[%s10542_s0 + $0x60] sm:$0xff]  ;;  %v8386_v22 = vld [vmem:[#allocation2 + $0x38c] sm:$0xf0] }
 0x2c8   :  { %v1780_v33 = vadd.f32 %v1779_v12, %v1731_v35  ;;  %v6964_v12 = vld [vmem:[#allocation2 + $0x390] sm:$0xf0] }
 0x2c9   :  { %2136 = vmatmul.bf16.gmra.mxu3 %v6947_v63  ;;  %2234 = vmatmul.bf16.gmra.mxu1 %v6955_v47  ;;  %v6994_v47 = vld [vmem:[#allocation2 + $0x3c0] sm:$0xf] }
 0x2ca   :  { %v1789_v42 = vpack.c.bf16 %v1780_v33, %v1778_v38  ;;  %v6967_v38 = vor.u32 %v8384_v32, %v6964_v12  ;;  %v9717_v33 = vld [vmem:[%s10542_s0 + $0x50] sm:$0xff]  ;;  %v8385_v32 = vld [vmem:[#allocation2 + $0x38c] sm:$0xf]  ;;  %v6972_v12 = vld [vmem:[#allocation2 + $0x398] sm:$0xf0] }
 0x2cb   :  { %v6975_v6 = vor.u32 %v8385_v32, %v6972_v12  ;;  %v8403_v32 = vld [vmem:[#allocation5 + $0xd8] sm:$0xff] }
 0x2cc   :  { %1898 = vmatmul.bf16.gmra.mxu2 %v1789_v42  ;;  %v8377_v42 = vld [vmem:[#allocation2 + $0x34c] sm:$0xf] }
 0x2cd   :  { %v6943_v25 = vor.u32 %v8377_v42, %v6940_v19 }
 0x2ce   :  { %2185 = vmatmul.bf16.gmra.mxu0 %v6951_v26  ;;  %v8391_v26 = vld [vmem:[#allocation2 + $0x3b4] sm:$0xf0] }
 0x2cf   :  { %v6987_v62 = vor.u32 %v8391_v26, %v6986_v3  ;;  %v8407_v26 = vld [vmem:[#allocation5 + $0xf8] sm:$0xff] }
 0x2d0   :  { %2382 = vmatpush.bf16.msra.mxu3 %v8407_v26 }
 0x2d9   :  { %2239 = vmatmul.bf16.gmra.mxu1 %v6971_v16  ;;  %v7010_v16 = vld [vmem:[#allocation2 + $0x3e0] sm:$0xf] }
 0x2dc   :  { %2268 = vmatmul.bf16.vlgmr.msra.gmra.mxu2 %v6911_v52 }
 0x2dd   :  { %3216 = vmatpush.bf16.msra.mxu2 %v9678_v51 }
 0x2de   :  { %2190 = vmatmul.bf16.gmra.mxu0 %v6967_v38  ;;  %v7002_v38 = vld [vmem:[#allocation2 + $0x3c8] sm:$0xf] }
 0x2df   :  { %v1864_v46 = vpop.f32.mrf.mxu2 }
 0x2e0   :  { %v9682_v48 = vadd.f32 %v1864_v46, %v9519_v17  ;;  %v9693_v17 = vld [vmem:[%s10542_s0 + $0x68] sm:$0xff] }
 0x2e1   :  { %3217 = vmatpush.bf16.msra.mxu2 %v9687_v54  ;;  %v8381_v46 = vld [vmem:[#allocation2 + $0x36c] sm:$0xf] }
 0x2e2   :  { %v6959_v31 = vor.u32 %v8381_v46, %v6956_v27 }
 0x2e5   :  { %3218 = vmatpush.bf16.msra.mxu2 %v9693_v17 }
 0x2e7   :  { %v1866_v55 = vpop.f32.mrf.mxu2 }
 0x2e8   :  { %v9697_v36 = vadd.f32 %v1866_v55, %v9535_v57  ;;  %v6963_v57 = vor.u32 %v8386_v22, %v6962_v61  ;;  %v8392_v22 = vld [vmem:[#allocation2 + $0x3c4] sm:$0xf] }
 0x2e9   :  { %3219 = vmatpush.bf16.msra.mxu2 %v9702_v24  ;;  %2244 = vmatmul.bf16.gmra.mxu1 %v6987_v62 }
 0x2ea   :  { %2141 = vmatmul.bf16.gmra.mxu3 %v6963_v57  ;;  %v6996_v57 = vld [vmem:[#allocation2 + $0x3d0] sm:$0xf0] }
 0x2ec   :  { %2273 = vmatmul.bf16.gmra.mxu2 %v6927_v18 }
 0x2ed   :  { %3220 = vmatpush.bf16.msra.mxu2 %v9708_v41 }
 0x2ef   :  { %v1869_v39 = vpop.f32.mrf.mxu2 }
 0x2f0   :  { %v9712_v35 = vadd.f32 %v1869_v39, %v9551_v37  ;;  %v9723_v37 = vld [vmem:[%s10542_s0 + $0x48] sm:$0xff]  ;;  %v6999_v39 = vor.u32 %v8392_v22, %v6996_v57 }
 0x2f1   :  { %3221 = vmatpush.bf16.msra.mxu2 %v9717_v33 }
 0x2f5   :  { %3222 = vmatpush.bf16.msra.mxu2 %v9723_v37 }
 0x2f7   :  { %v1871_v4 = vpop.f32.mrf.mxu2 }
 0x2f8   :  { %v9727_v23 = vadd.f32 %v1871_v4, %v9565_v29  ;;  %v8388_v29 = vld [vmem:[#allocation2 + $0x3a4] sm:$0xf] }
 0x2f9   :  { %3223 = vmatpush.bf16.msra.mxu2 %v9732_v14  ;;  %v6983_v63 = vor.u32 %v8388_v29, %v6980_v15  ;;  %v8389_v29 = vld [vmem:[#allocation2 + $0x3ac] sm:$0xf]  ;;  %v6988_v15 = vld [vmem:[#allocation2 + $0x3b8] sm:$0xf0] }
 0x2fa   :  { %2146 = vmatmul.bf16.gmra.mxu3 %v6979_v11  ;;  %v7012_v11 = vld [vmem:[#allocation2 + $0x3f0] sm:$0xf0]  ;;  %v6991_v3 = vor.u32 %v8389_v29, %v6988_v15 }
 0x2fb   :  { %2195 = vmatmul.bf16.gmra.mxu0 %v6983_v63  ;;  %v7018_v63 = vld [vmem:[#allocation2 + $0x3e8] sm:$0xf] }
 0x2fc   :  { %2278 = vmatmul.bf16.gmra.mxu2 %v6943_v25 }
 0x2ff   :  { %v1874_v52 = vpop.f32.mrf.mxu2 }
 0x300   :  { %v9736_v7 = vadd.f32 %v1874_v52, %v9579_v30  ;;  %v8394_v30 = vld [vmem:[#allocation2 + $0x3cc] sm:$0xf0]  ;;  %v7015_v52 = vor.u32 %v8396_v49, %v7012_v11  ;;  %v8400_v49 = vld [vmem:[#allocation5 + $0xc0] sm:$0xff] }
 0x301   :  { %v6995_v55 = vor.u32 %v8394_v30, %v6994_v47  ;;  %v8393_v47 = vld [vmem:[#allocation2 + $0x3cc] sm:$0xf]  ;;  %v7004_v30 = vld [vmem:[#allocation2 + $0x3d8] sm:$0xf0] }
 0x302   :  { %v7007_v22 = vor.u32 %v8393_v47, %v7004_v30 }
 0x307   :  { %v1876_v13 = vpop.f32.mrf.mxu2 }
 0x308   :  { %v9739_v58 = vadd.f32 %v1876_v13, %v9581_v28  ;;  %v8395_v28 = vld [vmem:[#allocation2 + $0x3d4] sm:$0xf0] }
 0x309   :  { %v7003_v42 = vor.u32 %v8395_v28, %v7002_v38  ;;  %v8402_v28 = vld [vmem:[#allocation5 + $0xd0] sm:$0xff] }
 0x30a   :  { %2151 = vmatmul.bf16.gmra.mxu3 %v6995_v55 }
 0x30b   :  { %2200 = vmatmul.bf16.gmra.mxu0 %v6999_v39  ;;  %2249 = vmatmul.bf16.gmra.mxu1 %v7003_v42  ;;  %v8401_v42 = vld [vmem:[#allocation5 + $0xc8] sm:$0xff] }
 0x30c   :  { %2283 = vmatmul.bf16.gmra.mxu2 %v6959_v31  ;;  %v8405_v31 = vld [vmem:[#allocation5 + $0xe8] sm:$0xff] }
 0x30f   :  { %v1879_v18 = vpop.f32.mrf.mxu2  ;;  %v2220_v12 = vpop.f32.mrf.mxu1 }
 0x310   :  { %v9742_v61 = vadd.f32 %v1879_v18, %v9583_v21  ;;  %v8398_v21 = vld [vmem:[#allocation2 + $0x3ec] sm:$0xf0]  ;;  %v8404_v18 = vld [vmem:[#allocation5 + $0xe0] sm:$0xff] }
 0x311   :  { %v7011_v4 = vor.u32 %v8398_v21, %v7010_v16  ;;  %v8397_v16 = vld [vmem:[#allocation2 + $0x3ec] sm:$0xf]  ;;  %v7020_v21 = vld [vmem:[#allocation2 + $0x3f8] sm:$0xf0] }
 0x312   :  { %v7023_v11 = vor.u32 %v8397_v16, %v7020_v21 }
 0x315   :  { %v2171_v57 = vpop.f32.mrf.mxu0 }
 0x316   :  { %v2122_v39 = vpop.f32.mrf.mxu3 }
 0x317   :  { %v1881_v19 = vpop.f32.mrf.mxu2 }
 0x318   :  { %v9745_v34 = vadd.f32 %v1881_v19, %v9587_v43  ;;  %v8399_v43 = vld [vmem:[#allocation2 + $0x3f4] sm:$0xf0] }
 0x319   :  { %v7019_v46 = vor.u32 %v8399_v43, %v7018_v63 }
 0x31a   :  { %2156 = vmatmul.bf16.gmra.mxu3 %v7011_v4 }
 0x31b   :  { %2205 = vmatmul.bf16.gmra.mxu0 %v7015_v52  ;;  %2254 = vmatmul.bf16.gmra.mxu1 %v7019_v46 }
 0x31c   :  { %2288 = vmatmul.bf16.gmra.mxu2 %v6975_v6 }
 0x31d   :  { %v2173_v19 = vpop.f32.mrf.mxu0 }
 0x31e   :  { %v2124_v6 = vpop.f32.mrf.mxu3 }
 0x31f   :  { %v1884_v25 = vpop.f32.mrf.mxu2 }
 0x320   :  { %v9748_v8 = vadd.f32 %v1884_v25, %v9589_v0  ;;  %v8406_v0 = vld [vmem:[#allocation5 + $0xf0] sm:$0xff]  ;;  %v2222_v25 = vpop.f32.mrf.mxu1 }
 0x321   :  { %2383 = vmatpush.bf16.msra.mxu3 %v8406_v0 }
 0x325   :  { %2384 = vmatpush.bf16.msra.mxu3 %v8405_v31 }
 0x327   :  { %v9750_v27 = vpop.f32.mrf.mxu2 }
 0x328   :  { %10556 = vst [vmem:[#allocation25_spill] sm:$0xff] %v9750_v27  ;;  %v2225_v63 = vpop.f32.mrf.mxu1 }
 0x329   :  { %2385 = vmatpush.bf16.msra.mxu3 %v8404_v18 }
 0x32b   :  { %v2176_v52 = vpop.f32.mrf.mxu0 }
 0x32c   :  { %2293 = vmatmul.bf16.gmra.mxu2 %v6991_v3  ;;  %v2127_v29 = vpop.f32.mrf.mxu3 }
 0x32d   :  { %2386 = vmatpush.bf16.msra.mxu3 %v8403_v32 }
 0x32f   :  { %v1889_v62 = vpop.f32.mrf.mxu2 }
 0x330   :  { %v9753_v13 = vadd.f32 %v1889_v62, %v9595_v1 }
 0x331   :  { %2387 = vmatpush.bf16.msra.mxu3 %v8402_v28 }
 0x333   :  { %v2178_v43 = vpop.f32.mrf.mxu0 }
 0x334   :  { %v2129_v3 = vpop.f32.mrf.mxu3 }
 0x335   :  { %2388 = vmatpush.bf16.msra.mxu3 %v8401_v42 }
 0x337   :  { %v9755_v55 = vpop.f32.mrf.mxu2 }
 0x338   :  { %10557 = vst [vmem:[#allocation26_spill] sm:$0xff] %v9755_v55 }
 0x339   :  { %2389 = vmatpush.bf16.msra.mxu3 %v8400_v49 }
 0x33b   :  { %v2181_v62 = vpop.f32.mrf.mxu0 }
 0x33c   :  { %2298 = vmatmul.bf16.gmra.mxu2 %v7007_v22  ;;  %v2132_v0 = vpop.f32.mrf.mxu3 }
 0x33d   :  { %2787 = vmatpush.bf16.msrb.mxu3 %v9610_v50  ;;  %v2227_v50 = vpop.f32.mrf.mxu1 }
 0x33f   :  { %v1894_v38 = vpop.f32.mrf.mxu2 }
 0x340   :  { %v9758_v1 = vadd.f32 %v1894_v38, %v9601_v20 }
 0x341   :  { %2788 = vmatpush.bf16.msrb.mxu3 %v9618_v10  ;;  %v2172_v10 = vadd.f32 %v2171_v57, %v2122_v39  ;;  %v2177_v39 = vadd.f32 %v2176_v52, %v2127_v29  ;;  %v9802_v29 = vld [vmem:[%s10542_s0 + $0x98] sm:$0xff] }
 0x343   :  { %v2221_v31 = vadd.f32 %v2220_v12, %v2172_v10  ;;  %v2179_v12 = vadd.f32 %v2178_v43, %v2129_v3  ;;  %v2226_v38 = vadd.f32 %v2225_v63, %v2177_v39  ;;  %v2182_v3 = vadd.f32 %v2181_v62, %v2132_v0 }
 0x344   :  { %v2134_v32 = vpop.f32.mrf.mxu3 }
 0x345   :  { %2789 = vmatpush.bf16.msrb.mxu3 %v9624_v9  ;;  %v2230_v9 = vpop.f32.mrf.mxu1 }
 0x347   :  { %v9760_v4 = vpop.f32.mrf.mxu2 }
 0x348   :  { %10558 = vst [vmem:[#allocation27_spill] sm:$0xff] %v9760_v4 }
 0x349   :  { %2790 = vmatpush.bf16.msrb.mxu3 %v9632_v45 }
 0x34c   :  { %2303 = vmatmul.bf16.gmra.mxu2 %v7023_v11  ;;  %v2137_v42 = vpop.f32.mrf.mxu3  ;;  %v9796_v11 = vld [vmem:[%s10542_s0 + $0xa0] sm:$0xff] }
 0x34d   :  { %2791 = vmatpush.bf16.msrb.mxu3 %v9638_v53  ;;  %v2183_v53 = vpop.f32.mrf.mxu0  ;;  %v2232_v57 = vpop.f32.mrf.mxu1 }
 0x34f   :  { %v1899_v20 = vpop.f32.mrf.mxu2 }
 0x350   :  { %v9765_v15 = vadd.f32 %v1899_v20, %v9613_v40  ;;  %v2174_v40 = vadd.f32 %v2173_v19, %v2124_v6  ;;  %v9790_v19 = vld [vmem:[%s10542_s0 + $0xa8] sm:$0xff]  ;;  %v2228_v6 = vadd.f32 %v2227_v50, %v2179_v12  ;;  %v9808_v50 = vld [vmem:[%s10542_s0 + $0x90] sm:$0xff] }
 0x351   :  { %2792 = vmatpush.bf16.msrb.mxu3 %v9644_v56  ;;  %v9778_v56 = vld [vmem:[%s10542_s0 + $0xb8] sm:$0xff] }
 0x352   :  { %v2223_v47 = vadd.f32 %v2222_v25, %v2174_v40  ;;  %v2231_v40 = vadd.f32 %v2230_v9, %v2182_v3 }
 0x354   :  { %v2139_v43 = vpop.f32.mrf.mxu3 }
 0x355   :  { %2793 = vmatpush.bf16.msrb.mxu3 %v9650_v2  ;;  %v2186_v28 = vpop.f32.mrf.mxu0  ;;  %v2235_v49 = vpop.f32.mrf.mxu1 }
 0x357   :  { %v9769_v46 = vpop.f32.mrf.mxu2 }
 0x358   :  { %10559 = vst [vmem:[#allocation28_spill] sm:$0xff] %v9769_v46 }
 0x359   :  { %2794 = vmatpush.bf16.msrb.mxu3 %v9656_v59  ;;  %v9784_v59 = vld [vmem:[%s10542_s0 + $0xb0] sm:$0xff] }
 0x35d   :  { %v2188_v20 = vpop.f32.mrf.mxu0  ;;  %v2237_v10 = vpop.f32.mrf.mxu1 }
 0x35e   :  { %v2189_v39 = vadd.f32 %v2188_v20, %v2139_v43 }
 0x35f   :  { %v2269_v26 = vpop.f32.mrf.mxu2 }
 0x360   :  { %v2270_v30 = vadd.f32 %v2269_v26, %v2221_v31  ;;  %v2184_v26 = vadd.f32 %v2183_v53, %v2134_v32  ;;  %v9814_v31 = vld [vmem:[%s10542_s0 + $0x88] sm:$0xff] }
 0x365   :  { %v2240_v53 = vpop.f32.mrf.mxu1 }
 0x367   :  { %v2271_v45 = vpop.f32.mrf.mxu2 }
 0x368   :  { %v2272_v18 = vadd.f32 %v2271_v45, %v2223_v47  ;;  %v2233_v47 = vadd.f32 %v2232_v57, %v2184_v26 }
 0x36a   :  { %v2309_v22 = vpack.c.bf16 %v2272_v18, %v2270_v30  ;;  %v2191_v30 = vpop.f32.mrf.mxu0 }
 0x36c   :  { %2390 = vmatmul.bf16.vlgmr.msra.gmra.mxu3 %v2309_v22  ;;  %v9820_v22 = vld [vmem:[%s10542_s0 + $0x80] sm:$0xff] }
 0x36d   :  { %3265 = vmatpush.bf16.msra.mxu3 %v9778_v56  ;;  %v2142_v18 = vpop.f32.mrf.mxu3 }
 0x36f   :  { %v2274_v2 = vpop.f32.mrf.mxu2 }
 0x370   :  { %v2275_v21 = vadd.f32 %v2274_v2, %v2226_v38  ;;  %v2187_v2 = vadd.f32 %v2186_v28, %v2137_v42 }
 0x371   :  { %3266 = vmatpush.bf16.msra.mxu3 %v9784_v59 }
 0x372   :  { %v2193_v12 = vpop.f32.mrf.mxu0  ;;  %v2236_v38 = vadd.f32 %v2235_v49, %v2187_v2 }
 0x375   :  { %3267 = vmatpush.bf16.msra.mxu3 %v9790_v19  ;;  %v2144_v57 = vpop.f32.mrf.mxu3 }
 0x377   :  { %v2276_v16 = vpop.f32.mrf.mxu2 }
 0x378   :  { %v2277_v25 = vadd.f32 %v2276_v16, %v2228_v6  ;;  %v2238_v6 = vadd.f32 %v2237_v10, %v2189_v39 }
 0x379   :  { %3268 = vmatpush.bf16.msra.mxu3 %v9796_v11 }
 0x37a   :  { %v2310_v52 = vpack.c.bf16 %v2277_v25, %v2275_v21  ;;  %v2242_v21 = vpop.f32.mrf.mxu1  ;;  %v2196_v3 = vpop.f32.mrf.mxu0 }
 0x37c   :  { %2395 = vmatmul.bf16.gmra.mxu3 %v2310_v52 }
 0x37d   :  { %3269 = vmatpush.bf16.msra.mxu3 %v9802_v29  ;;  %v2147_v26 = vpop.f32.mrf.mxu3 }
 0x37e   :  { %v2197_v39 = vadd.f32 %v2196_v3, %v2147_v26  ;;  %v7060_v3 = vld [vmem:[#allocation2 + $0x410] sm:$0xf0] }
 0x37f   :  { %v2279_v63 = vpop.f32.mrf.mxu2 }
 0x380   :  { %v2280_v62 = vadd.f32 %v2279_v63, %v2231_v40 }
 0x381   :  { %3270 = vmatpush.bf16.msra.mxu3 %v9808_v50 }
 0x382   :  { %v2198_v28 = vpop.f32.mrf.mxu0 }
 0x385   :  { %3271 = vmatpush.bf16.msra.mxu3 %v9814_v31  ;;  %v2149_v20 = vpop.f32.mrf.mxu3 }
 0x387   :  { %v2281_v45 = vpop.f32.mrf.mxu2 }
 0x388   :  { %v2282_v0 = vadd.f32 %v2281_v45, %v2233_v47  ;;  %v2192_v47 = vadd.f32 %v2191_v30, %v2142_v18  ;;  %v2245_v45 = vpop.f32.mrf.mxu1 }
 0x389   :  { %3272 = vmatpush.bf16.msra.mxu3 %v9820_v22 }
 0x38a   :  { %v2311_v9 = vpack.c.bf16 %v2282_v0, %v2280_v62  ;;  %v2194_v62 = vadd.f32 %v2193_v12, %v2144_v57  ;;  %v2241_v0 = vadd.f32 %v2240_v53, %v2192_v47  ;;  %v8411_v47 = vld [vmem:[#allocation2 + $0x414] sm:$0xf0] }
 0x38c   :  { %2400 = vmatmul.bf16.gmra.mxu3 %v2311_v9  ;;  %v2243_v9 = vadd.f32 %v2242_v21, %v2194_v62  ;;  %v7058_v62 = vld [vmem:[#allocation2 + $0x400] sm:$0xf] }
 0x38f   :  { %v2284_v32 = vpop.f32.mrf.mxu2 }
 0x390   :  { %v2285_v25 = vadd.f32 %v2284_v32, %v2236_v38  ;;  %v2247_v2 = vpop.f32.mrf.mxu1  ;;  %v2201_v38 = vpop.f32.mrf.mxu0 }
 0x397   :  { %v2286_v16 = vpop.f32.mrf.mxu2 }
 0x398   :  { %v2287_v52 = vadd.f32 %v2286_v16, %v2238_v6  ;;  %v2152_v6 = vpop.f32.mrf.mxu3  ;;  %v2199_v16 = vadd.f32 %v2198_v28, %v2149_v20  ;;  %v2203_v21 = vpop.f32.mrf.mxu0 }
 0x399   :  { %v2202_v20 = vadd.f32 %v2201_v38, %v2152_v6 }
 0x39a   :  { %v2312_v63 = vpack.c.bf16 %v2287_v52, %v2285_v25  ;;  %v2246_v25 = vadd.f32 %v2245_v45, %v2197_v39  ;;  %v2250_v52 = vpop.f32.mrf.mxu1  ;;  %v2248_v30 = vadd.f32 %v2247_v2, %v2199_v16  ;;  %v9832_v16 = vld [vmem:[%s10542_s0 + $0x30] sm:$0xff] }
 0x39b   :  { %v2251_v2 = vadd.f32 %v2250_v52, %v2202_v20 }
 0x39c   :  { %2405 = vmatmul.bf16.gmra.mxu3 %v2312_v63 }
 0x39f   :  { %v2289_v40 = vpop.f32.mrf.mxu2 }
 0x3a0   :  { %v2290_v43 = vadd.f32 %v2289_v40, %v2241_v0  ;;  %v2154_v63 = vpop.f32.mrf.mxu3  ;;  %v7066_v40 = vld [vmem:[#allocation2 + $0x408] sm:$0xf] }
 0x3a1   :  { %v7067_v0 = vor.u32 %v8411_v47, %v7066_v40  ;;  %v7082_v40 = vld [vmem:[#allocation2 + $0x428] sm:$0xf]  ;;  %v8415_v47 = vld [vmem:[#allocation2 + $0x434] sm:$0xf0] }
 0x3a2   :  { %v2252_v28 = vpop.f32.mrf.mxu1 }
 0x3a3   :  { %2746 = vmatmul.bf16.vlgmr.msrb.gmra.mxu2 %v7067_v0  ;;  %v7083_v0 = vor.u32 %v8415_v47, %v7082_v40  ;;  %v7090_v40 = vld [vmem:[#allocation2 + $0x440] sm:$0xf]  ;;  %v8418_v47 = vld [vmem:[#allocation2 + $0x44c] sm:$0xf0] }
 0x3a7   :  { %v2291_v42 = vpop.f32.mrf.mxu2 }
 0x3a8   :  { %v2292_v49 = vadd.f32 %v2291_v42, %v2243_v9  ;;  %v8410_v9 = vld [vmem:[#allocation2 + $0x40c] sm:$0xf0]  ;;  %v8408_v42 = vld [vmem:[#allocation2 + $0x404] sm:$0xf]  ;;  %v2157_v39 = vpop.f32.mrf.mxu3 }
 0x3a9   :  { %v7059_v26 = vor.u32 %v8410_v9, %v7058_v62  ;;  %v7074_v9 = vld [vmem:[#allocation2 + $0x420] sm:$0xf] }
 0x3aa   :  { %v2313_v10 = vpack.c.bf16 %v2292_v49, %v2290_v43  ;;  %v7063_v43 = vor.u32 %v8408_v42, %v7060_v3  ;;  %v9826_v49 = vld [vmem:[%s10542_s0 + $0x38] sm:$0xff]  ;;  %v8414_v42 = vld [vmem:[#allocation2 + $0x42c] sm:$0xf0]  ;;  %v8412_v3 = vld [vmem:[#allocation2 + $0x424] sm:$0xf] }
 0x3ab   :  { %2648 = vmatmul.bf16.vlgmr.msrb.gmra.mxu0 %v7059_v26  ;;  %3694 = vmatpush.bf16.msrb.mxu2 %v9826_v49  ;;  %v7075_v26 = vor.u32 %v8414_v42, %v7074_v9  ;;  %v7092_v9 = vld [vmem:[#allocation2 + $0x450] sm:$0xf0] }
 0x3ac   :  { %2410 = vmatmul.bf16.gmra.mxu3 %v2313_v10  ;;  %2697 = vmatmul.bf16.vlgmr.msrb.gmra.mxu1 %v7063_v43  ;;  %v2204_v10 = vadd.f32 %v2203_v21, %v2154_v63  ;;  %v7076_v43 = vld [vmem:[#allocation2 + $0x430] sm:$0xf0] }
 0x3ad   :  { %v7079_v20 = vor.u32 %v8412_v3, %v7076_v43  ;;  %v8409_v3 = vld [vmem:[#allocation2 + $0x40c] sm:$0xf] }
 0x3ae   :  { %v2253_v38 = vadd.f32 %v2252_v28, %v2204_v10  ;;  %v9850_v28 = vld [vmem:[%s10542_s0 + $0x18] sm:$0xff] }
 0x3af   :  { %v2294_v32 = vpop.f32.mrf.mxu2  ;;  %3695 = vmatpush.bf16.msrb.mxu2 %v9832_v16 }
 0x3b0   :  { %v2295_v12 = vadd.f32 %v2294_v32, %v2246_v25  ;;  %v2206_v32 = vpop.f32.mrf.mxu0  ;;  %v2159_v21 = vpop.f32.mrf.mxu3 }
 0x3b1   :  { %v2207_v62 = vadd.f32 %v2206_v32, %v2157_v39  ;;  %v9856_v32 = vld [vmem:[%s10542_s0 + $0x10] sm:$0xff] }
 0x3b3   :  { %2751 = vmatmul.bf16.gmra.mxu2 %v7083_v0  ;;  %v7091_v0 = vor.u32 %v8418_v47, %v7090_v40 }
 0x3b7   :  { %v2296_v18 = vpop.f32.mrf.mxu2 }
 0x3b8   :  { %v2297_v53 = vadd.f32 %v2296_v18, %v2248_v30  ;;  %v2255_v18 = vpop.f32.mrf.mxu1 }
 0x3ba   :  { %v2314_v57 = vpack.c.bf16 %v2297_v53, %v2295_v12  ;;  %v9838_v12 = vld [vmem:[%s10542_s0 + $0x28] sm:$0xff]  ;;  %v9844_v53 = vld [vmem:[%s10542_s0 + $0x20] sm:$0xff] }
 0x3bb   :  { %3696 = vmatpush.bf16.msrb.mxu2 %v9838_v12  ;;  %2653 = vmatmul.bf16.gmra.mxu0 %v7075_v26  ;;  %v7068_v26 = vld [vmem:[#allocation2 + $0x418] sm:$0xf0] }
 0x3bc   :  { %2415 = vmatmul.bf16.gmra.mxu3 %v2314_v57  ;;  %v2208_v57 = vpop.f32.mrf.mxu0  ;;  %2702 = vmatmul.bf16.gmra.mxu1 %v7079_v20  ;;  %v7071_v43 = vor.u32 %v8409_v3, %v7068_v26  ;;  %v7114_v20 = vld [vmem:[#allocation2 + $0x468] sm:$0xf]  ;;  %v7122_v3 = vld [vmem:[#allocation2 + $0x480] sm:$0xf]  ;;  %v8426_v26 = vld [vmem:[#allocation2 + $0x48c] sm:$0xf0] }
 0x3bf   :  { %v2299_v45 = vpop.f32.mrf.mxu2  ;;  %3697 = vmatpush.bf16.msrb.mxu2 %v9844_v53 }
 0x3c0   :  { %v2300_v25 = vadd.f32 %v2299_v45, %v2251_v2  ;;  %v2209_v45 = vadd.f32 %v2208_v57, %v2159_v21  ;;  %v2257_v10 = vpop.f32.mrf.mxu1  ;;  %v2256_v2 = vadd.f32 %v2255_v18, %v2207_v62  ;;  %v7098_v57 = vld [vmem:[#allocation2 + $0x448] sm:$0xf]  ;;  %v8419_v21 = vld [vmem:[#allocation2 + $0x454] sm:$0xf0]  ;;  %v8416_v62 = vld [vmem:[#allocation2 + $0x444] sm:$0xf] }
 0x3c1   :  { %v7095_v42 = vor.u32 %v8416_v62, %v7092_v9 }
 0x3c2   :  { %v2258_v39 = vadd.f32 %v2257_v10, %v2209_v45  ;;  %v8423_v10 = vld [vmem:[#allocation2 + $0x474] sm:$0xf0] }
 0x3c3   :  { %3698 = vmatpush.bf16.msrb.mxu2 %v9850_v28 }
 0x3c7   :  { %v2301_v6 = vpop.f32.mrf.mxu2  ;;  %3699 = vmatpush.bf16.msrb.mxu2 %v9856_v32 }
 0x3c8   :  { %v2302_v30 = vadd.f32 %v2301_v6, %v2253_v38 }
 0x3ca   :  { %v2315_v52 = vpack.c.bf16 %v2302_v30, %v2300_v25  ;;  %v9862_v30 = vld [vmem:[%s10542_s0 + $0x8] sm:$0xff] }
 0x3cb   :  { %3700 = vmatpush.bf16.msrb.mxu2 %v9862_v30  ;;  %2658 = vmatmul.bf16.gmra.mxu0 %v7091_v0  ;;  %v8427_v0 = vld [vmem:[#allocation2 + $0x494] sm:$0xf0] }
 0x3cc   :  { %2420 = vmatmul.bf16.gmra.mxu3 %v2315_v52  ;;  %v9868_v52 = vld [vmem:[%s10542_s0] sm:$0xff]  ;;  %2707 = vmatmul.bf16.gmra.mxu1 %v7095_v42 }
 0x3cf   :  { %v2304_v63 = vpop.f32.mrf.mxu2  ;;  %3701 = vmatpush.bf16.msrb.mxu2 %v9868_v52 }
 0x3d0   :  { %v2305_v6 = vadd.f32 %v2304_v63, %v2256_v2  ;;  %v7099_v63 = vor.u32 %v8419_v21, %v7098_v57  ;;  %v7108_v57 = vld [vmem:[#allocation2 + $0x470] sm:$0xf0] }
 0x3d2   :  { %2756 = vmatmul.bf16.gmra.mxu2 %v7099_v63  ;;  %v8413_v63 = vld [vmem:[#allocation2 + $0x42c] sm:$0xf] }
 0x3d7   :  { %v2306_v38 = vpop.f32.mrf.mxu2 }
 0x3d8   :  { %v2307_v25 = vadd.f32 %v2306_v38, %v2258_v39  ;;  %v7115_v39 = vor.u32 %v8423_v10, %v7114_v20  ;;  %v7106_v38 = vld [vmem:[#allocation2 + $0x460] sm:$0xf] }
 0x3da   :  { %v2316_v18 = vpack.c.bf16 %v2307_v25, %v2305_v6  ;;  %v8422_v6 = vld [vmem:[#allocation2 + $0x46c] sm:$0xf0]  ;;  %v8420_v25 = vld [vmem:[#allocation2 + $0x464] sm:$0xf] }
 0x3db   :  { %v7111_v21 = vor.u32 %v8420_v25, %v7108_v57  ;;  %v8430_v57 = vld [vmem:[#allocation2 + $0x4ac] sm:$0xf0] }
 0x3dc   :  { %2425 = vmatmul.bf16.gmra.mxu3 %v2316_v18  ;;  %v7107_v18 = vor.u32 %v8422_v6, %v7106_v38  ;;  %v7146_v38 = vld [vmem:[#allocation2 + $0x4a8] sm:$0xf]  ;;  %v8431_v6 = vld [vmem:[#allocation2 + $0x4b4] sm:$0xf0] }
 0x3dd   :  { %2712 = vmatmul.bf16.gmra.mxu1 %v7111_v21  ;;  %v7147_v25 = vor.u32 %v8431_v6, %v7146_v38  ;;  %v8428_v21 = vld [vmem:[#allocation2 + $0x4a4] sm:$0xf]  ;;  %v7178_v38 = vld [vmem:[#allocation2 + $0x4e8] sm:$0xf]  ;;  %v8439_v6 = vld [vmem:[#allocation2 + $0x4f4] sm:$0xf0] }
 0x3de   :  { %2663 = vmatmul.bf16.gmra.mxu0 %v7107_v18  ;;  %v7138_v18 = vld [vmem:[#allocation2 + $0x4a0] sm:$0xf] }
 0x3e2   :  { %2761 = vmatmul.bf16.gmra.mxu2 %v7115_v39 }
 0x3ec   :  { %2795 = vmatmul.bf16.vlgmr.msrb.gmra.mxu3 %v7071_v43  ;;  %v7123_v43 = vor.u32 %v8426_v26, %v7122_v3  ;;  %v7154_v26 = vld [vmem:[#allocation2 + $0x4c0] sm:$0xf] }
 0x3ed   :  { %3743 = vmatpush.bf16.msrb.mxu3 %v9678_v51  ;;  %v7084_v51 = vld [vmem:[#allocation2 + $0x438] sm:$0xf0] }
 0x3ee   :  { %v7087_v47 = vor.u32 %v8413_v63, %v7084_v51  ;;  %2668 = vmatmul.bf16.gmra.mxu0 %v7123_v43  ;;  %v7139_v63 = vor.u32 %v8430_v57, %v7138_v18  ;;  %v8432_v43 = vld [vmem:[#allocation2 + $0x4c4] sm:$0xf]  ;;  %v7179_v18 = vor.u32 %v8439_v6, %v7178_v38  ;;  %v7170_v57 = vld [vmem:[#allocation2 + $0x4e0] sm:$0xf]  ;;  %v8441_v38 = vld [vmem:[#allocation5 + $0x108] sm:$0xff] }
 0x3ef   :  { %v2391_v45 = vpop.f32.mrf.mxu3 }
 0x3f0   :  { %v9873_v2 = vadd.f32 %v2391_v45, %v9682_v48  ;;  %v7124_v45 = vld [vmem:[#allocation2 + $0x490] sm:$0xf0] }
 0x3f1   :  { %3744 = vmatpush.bf16.msrb.mxu3 %v9687_v54  ;;  %v7130_v54 = vld [vmem:[#allocation2 + $0x488] sm:$0xf] }
 0x3f2   :  { %v7131_v42 = vor.u32 %v8427_v0, %v7130_v54  ;;  %v7162_v54 = vld [vmem:[#allocation2 + $0x4c8] sm:$0xf]  ;;  %v8435_v0 = vld [vmem:[#allocation2 + $0x4d4] sm:$0xf0] }
 0x3f3   :  { %v7163_v3 = vor.u32 %v8435_v0, %v7162_v54  ;;  %v8446_v54 = vld [vmem:[#allocation5 + $0x130] sm:$0xff] }
 0x3f4   :  { %2766 = vmatmul.bf16.gmra.mxu2 %v7131_v42 }
 0x3f5   :  { %3745 = vmatpush.bf16.msrb.mxu3 %v9693_v17  ;;  %v8424_v17 = vld [vmem:[#allocation2 + $0x484] sm:$0xf] }
 0x3f7   :  { %v2393_v40 = vpop.f32.mrf.mxu3 }
 0x3f8   :  { %v9878_v48 = vadd.f32 %v2393_v40, %v9697_v36  ;;  %v7127_v36 = vor.u32 %v8424_v17, %v7124_v45  ;;  %v7116_v40 = vld [vmem:[#allocation2 + $0x478] sm:$0xf0]  ;;  %v8434_v17 = vld [vmem:[#allocation2 + $0x4cc] sm:$0xf0] }
 0x3f9   :  { %3746 = vmatpush.bf16.msrb.mxu3 %v9702_v24  ;;  %v8417_v24 = vld [vmem:[#allocation2 + $0x44c] sm:$0xf]  ;;  %v7155_v45 = vor.u32 %v8434_v17, %v7154_v26  ;;  %v7164_v17 = vld [vmem:[#allocation2 + $0x4d8] sm:$0xf0] }
 0x3fa   :  { %2717 = vmatmul.bf16.gmra.mxu1 %v7127_v36  ;;  %v7156_v36 = vld [vmem:[#allocation2 + $0x4d0] sm:$0xf0]  ;;  %v8433_v26 = vld [vmem:[#allocation2 + $0x4cc] sm:$0xf] }
 0x3fc   :  { %2800 = vmatmul.bf16.gmra.mxu3 %v7087_v47 }
 0x3fd   :  { %3747 = vmatpush.bf16.msrb.mxu3 %v9708_v41  ;;  %v7100_v41 = vld [vmem:[#allocation2 + $0x458] sm:$0xf0] }
 0x3fe   :  { %v7103_v10 = vor.u32 %v8417_v24, %v7100_v41  ;;  %2673 = vmatmul.bf16.gmra.mxu0 %v7139_v63  ;;  %v7159_v24 = vor.u32 %v8432_v43, %v7156_v36  ;;  %v7132_v41 = vld [vmem:[#allocation2 + $0x498] sm:$0xf0]  ;;  %v8436_v63 = vld [vmem:[#allocation2 + $0x4e4] sm:$0xf]  ;;  %v7167_v36 = vor.u32 %v8433_v26, %v7164_v17 }
 0x3ff   :  { %v2396_v62 = vpop.f32.mrf.mxu3  ;;  %v9942_v17 = vld [vmem:[%s10542_s0 + $0xe0] sm:$0xff] }
 0x400   :  { %v9883_v9 = vadd.f32 %v2396_v62, %v9712_v35 }
 0x401   :  { %3748 = vmatpush.bf16.msrb.mxu3 %v9717_v33 }
 0x404   :  { %2771 = vmatmul.bf16.gmra.mxu2 %v7147_v25 }
 0x405   :  { %3749 = vmatpush.bf16.msrb.mxu3 %v9723_v37  ;;  %v7140_v37 = vld [vmem:[#allocation2 + $0x4b0] sm:$0xf0] }
 0x406   :  { %v7143_v51 = vor.u32 %v8428_v21, %v7140_v37  ;;  %v8438_v21 = vld [vmem:[#allocation2 + $0x4ec] sm:$0xf0] }
 0x407   :  { %v2398_v20 = vpop.f32.mrf.mxu3  ;;  %v7171_v37 = vor.u32 %v8438_v21, %v7170_v57  ;;  %v8437_v57 = vld [vmem:[#allocation2 + $0x4ec] sm:$0xf]  ;;  %v7180_v21 = vld [vmem:[#allocation2 + $0x4f8] sm:$0xf0] }
 0x408   :  { %v9888_v35 = vadd.f32 %v2398_v20, %v9727_v23  ;;  %v8421_v23 = vld [vmem:[#allocation2 + $0x46c] sm:$0xf] }
 0x409   :  { %3750 = vmatpush.bf16.msrb.mxu3 %v9732_v14  ;;  %v7119_v62 = vor.u32 %v8421_v23, %v7116_v40  ;;  %v7148_v40 = vld [vmem:[#allocation2 + $0x4b8] sm:$0xf0] }
 0x40a   :  { %2722 = vmatmul.bf16.gmra.mxu1 %v7143_v51  ;;  %v7172_v51 = vld [vmem:[#allocation2 + $0x4f0] sm:$0xf0] }
 0x40b   :  { %v7175_v23 = vor.u32 %v8436_v63, %v7172_v51  ;;  %v8440_v51 = vld [vmem:[#allocation5 + $0x100] sm:$0xff] }
 0x40c   :  { %2805 = vmatmul.bf16.gmra.mxu3 %v7103_v10 }
 0x40e   :  { %2678 = vmatmul.bf16.gmra.mxu0 %v7155_v45  ;;  %v8444_v45 = vld [vmem:[#allocation5 + $0x120] sm:$0xff] }
 0x40f   :  { %v2401_v39 = vpop.f32.mrf.mxu3 }
 0x410   :  { %v9892_v33 = vadd.f32 %v2401_v39, %v9736_v7 }
 0x414   :  { %2776 = vmatmul.bf16.gmra.mxu2 %v7163_v3  ;;  %v8445_v3 = vld [vmem:[#allocation5 + $0x128] sm:$0xff] }
 0x417   :  { %v2403_v14 = vpop.f32.mrf.mxu3 }
 0x418   :  { %v9895_v47 = vadd.f32 %v2403_v14, %v9739_v58  ;;  %v8425_v58 = vld [vmem:[#allocation2 + $0x48c] sm:$0xf] }
 0x419   :  { %v7135_v39 = vor.u32 %v8425_v58, %v7132_v41  ;;  %v8443_v41 = vld [vmem:[#allocation5 + $0x118] sm:$0xff] }
 0x41a   :  { %2727 = vmatmul.bf16.gmra.mxu1 %v7159_v24 }
 0x41c   :  { %2810 = vmatmul.bf16.gmra.mxu3 %v7119_v62 }
 0x41e   :  { %2683 = vmatmul.bf16.gmra.mxu0 %v7171_v37 }
 0x41f   :  { %v2406_v7 = vpop.f32.mrf.mxu3 }
 0x420   :  { %v9898_v42 = vadd.f32 %v2406_v7, %v9742_v61  ;;  %v8447_v7 = vld [vmem:[#allocation5 + $0x138] sm:$0xff] }
 0x421   :  { %2909 = vmatpush.bf16.msra.mxu0 %v8447_v7 }
 0x424   :  { %2781 = vmatmul.bf16.gmra.mxu2 %v7179_v18 }
 0x425   :  { %2910 = vmatpush.bf16.msra.mxu0 %v8446_v54 }
 0x427   :  { %v2408_v20 = vpop.f32.mrf.mxu3 }
 0x428   :  { %v9901_v10 = vadd.f32 %v2408_v20, %v9745_v34  ;;  %v8429_v34 = vld [vmem:[#allocation2 + $0x4ac] sm:$0xf]  ;;  %v2649_v24 = vpop.f32.mrf.mxu0  ;;  %v2747_v20 = vpop.f32.mrf.mxu2 }
 0x429   :  { %v7151_v62 = vor.u32 %v8429_v34, %v7148_v40  ;;  %2911 = vmatpush.bf16.msra.mxu0 %v8445_v3  ;;  %v2698_v58 = vpop.f32.mrf.mxu1  ;;  %v9921_v34 = vld [vmem:[%s10542_s0 + $0xf8] sm:$0xff]  ;;  %v9936_v3 = vld [vmem:[%s10542_s0 + $0xe8] sm:$0xff] }
 0x42a   :  { %2732 = vmatmul.bf16.gmra.mxu1 %v7175_v23  ;;  %v7183_v23 = vor.u32 %v8437_v57, %v7180_v21 }
 0x42c   :  { %2815 = vmatmul.bf16.gmra.mxu3 %v7135_v39 }
 0x42d   :  { %2912 = vmatpush.bf16.msra.mxu0 %v8444_v45 }
 0x42f   :  { %v2411_v61 = vpop.f32.mrf.mxu3 }
 0x430   :  { %v9904_v25 = vadd.f32 %v2411_v61, %v9748_v8  ;;  %v8442_v61 = vld [vmem:[#allocation5 + $0x110] sm:$0xff]  ;;  %v2651_v6 = vpop.f32.mrf.mxu0  ;;  %v2749_v37 = vpop.f32.mrf.mxu2 }
 0x431   :  { %2913 = vmatpush.bf16.msra.mxu0 %v8443_v41  ;;  %v2700_v18 = vpop.f32.mrf.mxu1 }
 0x435   :  { %2914 = vmatpush.bf16.msra.mxu0 %v8442_v61 }
 0x437   :  { %v9906_v14 = vpop.f32.mrf.mxu3 }
 0x438   :  { %10560 = vst [vmem:[#allocation29_spill] sm:$0xff] %v9906_v14  ;;  %v2752_v54 = vpop.f32.mrf.mxu2 }
 0x439   :  { %2915 = vmatpush.bf16.msra.mxu0 %v8441_v38  ;;  %v2703_v40 = vpop.f32.mrf.mxu1  ;;  %v2699_v38 = vadd.f32 %v2698_v58, %v2649_v24 }
 0x43c   :  { %2820 = vmatmul.bf16.gmra.mxu3 %v7151_v62  ;;  %v9927_v62 = vld [vmem:[%s10542_s0 + $0xf0] sm:$0xff] }
 0x43d   :  { %2916 = vmatpush.bf16.msra.mxu0 %v8440_v51  ;;  %v2701_v51 = vadd.f32 %v2700_v18, %v2651_v6 }
 0x43f   :  { %v2416_v8 = vpop.f32.mrf.mxu3  ;;  %v2750_v27 = vadd.f32 %v2749_v37, %v2701_v51 }
 0x440   :  { %v9909_v0 = vadd.f32 %v2416_v8, %v9753_v13  ;;  %v2754_v41 = vpop.f32.mrf.mxu2 }
 0x441   :  { %3314 = vmatpush.bf16.msrb.mxu0 %v9921_v34 }
 0x445   :  { %3315 = vmatpush.bf16.msrb.mxu0 %v9927_v62 }
 0x447   :  { %v9911_v43 = vpop.f32.mrf.mxu3 }
 0x448   :  { %10561 = vst [vmem:[#allocation30_spill] sm:$0xff] %v9911_v43  ;;  %v9968_v43 = vld [vmem:[%s10542_s0 + $0xc0] sm:$0xff] }
 0x449   :  { %3316 = vmatpush.bf16.msrb.mxu0 %v9936_v3 }
 0x44c   :  { %2825 = vmatmul.bf16.gmra.mxu3 %v7167_v36  ;;  %v9950_v36 = vld [vmem:[%s10542_s0 + $0xd8] sm:$0xff] }
 0x44d   :  { %3317 = vmatpush.bf16.msrb.mxu0 %v9942_v17 }
 0x44f   :  { %v2421_v39 = vpop.f32.mrf.mxu3 }
 0x450   :  { %v9914_v13 = vadd.f32 %v2421_v39, %v9758_v1  ;;  %v2654_v1 = vpop.f32.mrf.mxu0  ;;  %v9956_v39 = vld [vmem:[%s10542_s0 + $0xd0] sm:$0xff] }
 0x451   :  { %3318 = vmatpush.bf16.msrb.mxu0 %v9950_v36 }
 0x455   :  { %3319 = vmatpush.bf16.msrb.mxu0 %v9956_v39  ;;  %v2757_v14 = vpop.f32.mrf.mxu2 }
 0x457   :  { %v9916_v63 = vpop.f32.mrf.mxu3 }
 0x458   :  { %10562 = vst [vmem:[#allocation31_spill] sm:$0xff] %v9916_v63  ;;  %v2656_v26 = vpop.f32.mrf.mxu0 }
 0x45c   :  { %2830 = vmatmul.bf16.gmra.mxu3 %v7183_v23  ;;  %v9962_v23 = vld [vmem:[%s10542_s0 + $0xc8] sm:$0xff] }
 0x45d   :  { %3320 = vmatpush.bf16.msrb.mxu0 %v9962_v23 }
 0x45f   :  { %v2426_v7 = vpop.f32.mrf.mxu3 }
 0x460   :  { %v9931_v8 = vadd.f32 %v2426_v7, %v9765_v15  ;;  %v2705_v15 = vpop.f32.mrf.mxu1  ;;  %v2659_v57 = vpop.f32.mrf.mxu0  ;;  %v2748_v7 = vadd.f32 %v2747_v20, %v2699_v38  ;;  %v2704_v38 = vadd.f32 %v2703_v40, %v2654_v1 }
 0x461   :  { %3321 = vmatpush.bf16.msrb.mxu0 %v9968_v43  ;;  %v2759_v20 = vpop.f32.mrf.mxu2  ;;  %v2706_v37 = vadd.f32 %v2705_v15, %v2656_v26 }
 0x462   :  { %v2753_v51 = vadd.f32 %v2752_v54, %v2704_v38 }
 0x463   :  { %v2755_v60 = vadd.f32 %v2754_v41, %v2706_v37 }
 0x467   :  { %v9945_v45 = vpop.f32.mrf.mxu3 }
 0x468   :  { %10563 = vst [vmem:[#allocation32_spill] sm:$0xff] %v9945_v45  ;;  %v2708_v21 = vpop.f32.mrf.mxu1  ;;  %v2661_v45 = vpop.f32.mrf.mxu0 }
 0x469   :  { %v2709_v40 = vadd.f32 %v2708_v21, %v2659_v57 }
 0x46f   :  { %v2796_v61 = vpop.f32.mrf.mxu3 }
 0x470   :  { %v2797_v58 = vadd.f32 %v2796_v61, %v2748_v7  ;;  %v2710_v55 = vpop.f32.mrf.mxu1  ;;  %v2664_v46 = vpop.f32.mrf.mxu0 }
 0x471   :  { %v2711_v54 = vadd.f32 %v2710_v55, %v2661_v45 }
 0x477   :  { %v2798_v24 = vpop.f32.mrf.mxu3 }
 0x478   :  { %v2799_v6 = vadd.f32 %v2798_v24, %v2750_v27  ;;  %v2713_v4 = vpop.f32.mrf.mxu1  ;;  %v2762_v24 = vpop.f32.mrf.mxu2 }
 0x479   :  { %v2714_v57 = vadd.f32 %v2713_v4, %v2664_v46 }
 0x47a   :  { %v2836_v18 = vpack.c.bf16 %v2799_v6, %v2797_v58 }
 0x47b   :  { %v2763_v45 = vadd.f32 %v2762_v24, %v2714_v57 }
 0x47c   :  { %2917 = vmatmul.bf16.vlgmr.msra.gmra.mxu0 %v2836_v18 }
 0x47d   :  { %3792 = vmatpush.bf16.msra.mxu0 %v9778_v56  ;;  %v2666_v56 = vpop.f32.mrf.mxu0 }
 0x47f   :  { %v2801_v63 = vpop.f32.mrf.mxu3 }
 0x480   :  { %v2802_v27 = vadd.f32 %v2801_v63, %v2753_v51  ;;  %v2764_v26 = vpop.f32.mrf.mxu2  ;;  %v2760_v63 = vadd.f32 %v2759_v20, %v2711_v54 }
 0x481   :  { %3793 = vmatpush.bf16.msra.mxu0 %v9784_v59  ;;  %v2715_v59 = vpop.f32.mrf.mxu1 }
 0x482   :  { %v2716_v21 = vadd.f32 %v2715_v59, %v2666_v56 }
 0x485   :  { %3794 = vmatpush.bf16.msra.mxu0 %v9790_v19  ;;  %v2758_v19 = vadd.f32 %v2757_v14, %v2709_v40  ;;  %v2765_v14 = vadd.f32 %v2764_v26, %v2716_v21 }
 0x487   :  { %v2803_v61 = vpop.f32.mrf.mxu3 }
 0x488   :  { %v2804_v7 = vadd.f32 %v2803_v61, %v2755_v60  ;;  %v2767_v18 = vpop.f32.mrf.mxu2 }
 0x489   :  { %3795 = vmatpush.bf16.msra.mxu0 %v9796_v11  ;;  %v2669_v11 = vpop.f32.mrf.mxu0  ;;  %v2718_v6 = vpop.f32.mrf.mxu1 }
 0x48a   :  { %v2837_v58 = vpack.c.bf16 %v2804_v7, %v2802_v27 }
 0x48c   :  { %2922 = vmatmul.bf16.gmra.mxu0 %v2837_v58 }
 0x48d   :  { %3796 = vmatpush.bf16.msra.mxu0 %v9802_v29 }
 0x48f   :  { %v2806_v1 = vpop.f32.mrf.mxu3 }
 0x490   :  { %v2807_v15 = vadd.f32 %v2806_v1, %v2758_v19 }
 0x491   :  { %3797 = vmatpush.bf16.msra.mxu0 %v9808_v50  ;;  %v2671_v50 = vpop.f32.mrf.mxu0  ;;  %v2720_v55 = vpop.f32.mrf.mxu1 }
 0x492   :  { %v2721_v40 = vadd.f32 %v2720_v55, %v2671_v50  ;;  %v8448_v50 = vld [vmem:[#allocation2 + $0x504] sm:$0xf] }
 0x495   :  { %3798 = vmatpush.bf16.msra.mxu0 %v9814_v31  ;;  %v2769_v31 = vpop.f32.mrf.mxu2 }
 0x496   :  { %v2770_v19 = vadd.f32 %v2769_v31, %v2721_v40  ;;  %v8451_v31 = vld [vmem:[#allocation2 + $0x514] sm:$0xf0] }
 0x497   :  { %v2808_v60 = vpop.f32.mrf.mxu3 }
 0x498   :  { %v2809_v41 = vadd.f32 %v2808_v60, %v2760_v63 }
 0x499   :  { %3799 = vmatpush.bf16.msra.mxu0 %v9820_v22  ;;  %v2674_v27 = vpop.f32.mrf.mxu0  ;;  %v2723_v7 = vpop.f32.mrf.mxu1  ;;  %v2719_v22 = vadd.f32 %v2718_v6, %v2669_v11 }
 0x49a   :  { %v2838_v29 = vpack.c.bf16 %v2809_v41, %v2807_v15  ;;  %v2724_v15 = vadd.f32 %v2723_v7, %v2674_v27  ;;  %v7218_v27 = vld [vmem:[#allocation2 + $0x500] sm:$0xf]  ;;  %v8450_v7 = vld [vmem:[#allocation2 + $0x50c] sm:$0xf0] }
 0x49b   :  { %v2768_v54 = vadd.f32 %v2767_v18, %v2719_v22  ;;  %v7220_v18 = vld [vmem:[#allocation2 + $0x510] sm:$0xf0]  ;;  %v7219_v22 = vor.u32 %v8450_v7, %v7218_v27  ;;  %v8459_v7 = vld [vmem:[#allocation2 + $0x554] sm:$0xf0] }
 0x49c   :  { %2927 = vmatmul.bf16.gmra.mxu0 %v2838_v29 }
 0x49d   :  { %v2772_v1 = vpop.f32.mrf.mxu2  ;;  %3175 = vmatmul.bf16.vlgmr.msra.gmra.mxu1 %v7219_v22 }
 0x49e   :  { %v2773_v57 = vadd.f32 %v2772_v1, %v2724_v15 }
 0x49f   :  { %v2811_v38 = vpop.f32.mrf.mxu3 }
 0x4a0   :  { %v2812_v20 = vadd.f32 %v2811_v38, %v2763_v45 }
 0x4a1   :  { %v2676_v4 = vpop.f32.mrf.mxu0  ;;  %v2725_v56 = vpop.f32.mrf.mxu1 }
 0x4a2   :  { %v2726_v38 = vadd.f32 %v2725_v56, %v2676_v4 }
 0x4a5   :  { %v2774_v63 = vpop.f32.mrf.mxu2 }
 0x4a6   :  { %v2775_v11 = vadd.f32 %v2774_v63, %v2726_v38  ;;  %v7236_v63 = vld [vmem:[#allocation2 + $0x530] sm:$0xf0] }
 0x4a7   :  { %v2813_v37 = vpop.f32.mrf.mxu3 }
 0x4a8   :  { %v2814_v51 = vadd.f32 %v2813_v37, %v2765_v14  ;;  %v7223_v14 = vor.u32 %v8448_v50, %v7220_v18  ;;  %v7226_v37 = vld [vmem:[#allocation2 + $0x508] sm:$0xf] }
 0x4a9   :  { %v2679_v41 = vpop.f32.mrf.mxu0  ;;  %v2728_v29 = vpop.f32.mrf.mxu1 }
 0x4aa   :  { %v2839_v61 = vpack.c.bf16 %v2814_v51, %v2812_v20  ;;  %3224 = vmatmul.bf16.vlgmr.msra.gmra.mxu2 %v7223_v14 }
 0x4ac   :  { %2932 = vmatmul.bf16.gmra.mxu0 %v2839_v61  ;;  %v7227_v61 = vor.u32 %v8451_v31, %v7226_v37 }
 0x4ad   :  { %v2777_v21 = vpop.f32.mrf.mxu2 }
 0x4ae   :  { %3273 = vmatmul.bf16.vlgmr.msra.gmra.mxu3 %v7227_v61 }
 0x4af   :  { %v2816_v58 = vpop.f32.mrf.mxu3  ;;  %4221 = vmatpush.bf16.msra.mxu3 %v9826_v49 }
 0x4b0   :  { %v2817_v59 = vadd.f32 %v2816_v58, %v2768_v54  ;;  %v2729_v54 = vadd.f32 %v2728_v29, %v2679_v41  ;;  %v7234_v29 = vld [vmem:[#allocation2 + $0x520] sm:$0xf] }
 0x4b1   :  { %v2681_v51 = vpop.f32.mrf.mxu0  ;;  %v2730_v58 = vpop.f32.mrf.mxu1 }
 0x4b2   :  { %v2778_v4 = vadd.f32 %v2777_v21, %v2729_v54  ;;  %v8454_v21 = vld [vmem:[#allocation2 + $0x52c] sm:$0xf0] }
 0x4b3   :  { %4222 = vmatpush.bf16.msra.mxu3 %v9832_v16 }
 0x4b5   :  { %v2779_v1 = vpop.f32.mrf.mxu2 }
 0x4b7   :  { %v2818_v46 = vpop.f32.mrf.mxu3  ;;  %4223 = vmatpush.bf16.msra.mxu3 %v9838_v12  ;;  %v7235_v12 = vor.u32 %v8454_v21, %v7234_v29  ;;  %v7244_v29 = vld [vmem:[#allocation2 + $0x538] sm:$0xf0]  ;;  %v10008_v21 = vld [vmem:[%s10542_s0 + $0x68] sm:$0xff] }
 0x4b8   :  { %v2819_v24 = vadd.f32 %v2818_v46, %v2770_v19  ;;  %v2731_v19 = vadd.f32 %v2730_v58, %v2681_v51  ;;  %v7252_v51 = vld [vmem:[#allocation2 + $0x550] sm:$0xf0] }
 0x4b9   :  { %v2684_v46 = vpop.f32.mrf.mxu0  ;;  %v2733_v56 = vpop.f32.mrf.mxu1  ;;  %3180 = vmatmul.bf16.gmra.mxu1 %v7235_v12  ;;  %v8464_v12 = vld [vmem:[#allocation2 + $0x584] sm:$0xf] }
 0x4ba   :  { %v2840_v26 = vpack.c.bf16 %v2819_v24, %v2817_v59  ;;  %v2780_v59 = vadd.f32 %v2779_v1, %v2731_v19  ;;  %v7228_v19 = vld [vmem:[#allocation2 + $0x518] sm:$0xf0] }
 0x4bb   :  { %4224 = vmatpush.bf16.msra.mxu3 %v9844_v53 }
 0x4bc   :  { %2937 = vmatmul.bf16.gmra.mxu0 %v2840_v26  ;;  %v8452_v26 = vld [vmem:[#allocation2 + $0x524] sm:$0xf] }
 0x4bd   :  { %v7239_v38 = vor.u32 %v8452_v26, %v7236_v63  ;;  %v2782_v49 = vpop.f32.mrf.mxu2  ;;  %v7274_v26 = vld [vmem:[#allocation2 + $0x568] sm:$0xf]  ;;  %v8463_v63 = vld [vmem:[#allocation2 + $0x574] sm:$0xf0] }
 0x4bf   :  { %v2821_v60 = vpop.f32.mrf.mxu3  ;;  %3229 = vmatmul.bf16.gmra.mxu2 %v7239_v38  ;;  %4225 = vmatpush.bf16.msra.mxu3 %v9850_v28  ;;  %v7258_v28 = vld [vmem:[#allocation2 + $0x548] sm:$0xf]  ;;  %v8462_v38 = vld [vmem:[#allocation2 + $0x56c] sm:$0xf0] }
 0x4c0   :  { %v2822_v55 = vadd.f32 %v2821_v60, %v2773_v57  ;;  %v7242_v57 = vld [vmem:[#allocation2 + $0x528] sm:$0xf]  ;;  %v7259_v1 = vor.u32 %v8459_v7, %v7258_v28  ;;  %v8457_v28 = vld [vmem:[#allocation2 + $0x54c] sm:$0xf]  ;;  %v7260_v7 = vld [vmem:[#allocation2 + $0x558] sm:$0xf0] }
 0x4c1   :  { %v2735_v50 = vpop.f32.mrf.mxu1 }
 0x4c3   :  { %4226 = vmatpush.bf16.msra.mxu3 %v9856_v32  ;;  %v7250_v32 = vld [vmem:[#allocation2 + $0x540] sm:$0xf] }
 0x4c5   :  { %v2784_v14 = vpop.f32.mrf.mxu2 }
 0x4c7   :  { %v2823_v6 = vpop.f32.mrf.mxu3  ;;  %4227 = vmatpush.bf16.msra.mxu3 %v9862_v30  ;;  %v8449_v30 = vld [vmem:[#allocation2 + $0x50c] sm:$0xf] }
 0x4c8   :  { %v2824_v45 = vadd.f32 %v2823_v6, %v2775_v11  ;;  %v8455_v11 = vld [vmem:[#allocation2 + $0x534] sm:$0xf0]  ;;  %v2686_v6 = vpop.f32.mrf.mxu0 }
 0x4c9   :  { %v7243_v16 = vor.u32 %v8455_v11, %v7242_v57  ;;  %v9993_v57 = vld [vmem:[%s10542_s0 + $0x78] sm:$0xff] }
 0x4ca   :  { %v2841_v20 = vpack.c.bf16 %v2824_v45, %v2822_v55  ;;  %v2734_v55 = vadd.f32 %v2733_v56, %v2684_v46  ;;  %v2736_v45 = vadd.f32 %v2735_v50, %v2686_v6  ;;  %v7268_v46 = vld [vmem:[#allocation2 + $0x570] sm:$0xf0]  ;;  %v7231_v56 = vor.u32 %v8449_v30, %v7228_v19  ;;  %v7306_v19 = vld [vmem:[#allocation2 + $0x5a8] sm:$0xf] }
 0x4cb   :  { %3278 = vmatmul.bf16.gmra.mxu3 %v7243_v16  ;;  %v8453_v16 = vld [vmem:[#allocation2 + $0x52c] sm:$0xf]  ;;  %v7284_v6 = vld [vmem:[#allocation2 + $0x590] sm:$0xf0] }
 0x4cc   :  { %2942 = vmatmul.bf16.gmra.mxu0 %v2841_v20  ;;  %v2783_v53 = vadd.f32 %v2782_v49, %v2734_v55  ;;  %v2785_v37 = vadd.f32 %v2784_v14, %v2736_v45  ;;  %v8456_v20 = vld [vmem:[#allocation2 + $0x544] sm:$0xf]  ;;  %4228 = vmatpush.bf16.msra.mxu3 %v9868_v52  ;;  %v7247_v50 = vor.u32 %v8453_v16, %v7244_v29  ;;  %v7290_v45 = vld [vmem:[#allocation2 + $0x588] sm:$0xf]  ;;  %v8467_v14 = vld [vmem:[#allocation2 + $0x594] sm:$0xf0] }
 0x4cd   :  { %v7255_v27 = vor.u32 %v8456_v20, %v7252_v51  ;;  %v8466_v20 = vld [vmem:[#allocation2 + $0x58c] sm:$0xf0] }
 0x4cf   :  { %v2826_v40 = vpop.f32.mrf.mxu3  ;;  %3234 = vmatmul.bf16.gmra.mxu2 %v7255_v27 }
 0x4d0   :  { %v2827_v60 = vadd.f32 %v2826_v40, %v2778_v4  ;;  %v8458_v40 = vld [vmem:[#allocation2 + $0x54c] sm:$0xf0]  ;;  %v8460_v4 = vld [vmem:[#allocation2 + $0x564] sm:$0xf] }
 0x4d1   :  { %v7251_v54 = vor.u32 %v8458_v40, %v7250_v32  ;;  %v7300_v32 = vld [vmem:[#allocation2 + $0x5b0] sm:$0xf0]  ;;  %v7263_v40 = vor.u32 %v8457_v28, %v7260_v7 }
 0x4d3   :  { %3185 = vmatmul.bf16.gmra.mxu1 %v7251_v54 }
 0x4d7   :  { %v2828_v24 = vpop.f32.mrf.mxu3 }
 0x4d8   :  { %v2829_v15 = vadd.f32 %v2828_v24, %v2780_v59  ;;  %v7271_v59 = vor.u32 %v8460_v4, %v7268_v46  ;;  %v8471_v4 = vld [vmem:[#allocation2 + $0x5b4] sm:$0xf0] }
 0x4da   :  { %v2842_v41 = vpack.c.bf16 %v2829_v15, %v2827_v60  ;;  %v7275_v60 = vor.u32 %v8463_v63, %v7274_v26  ;;  %v7266_v15 = vld [vmem:[#allocation2 + $0x560] sm:$0xf] }
 0x4db   :  { %3283 = vmatmul.bf16.gmra.mxu3 %v7259_v1  ;;  %v7267_v49 = vor.u32 %v8462_v38, %v7266_v15  ;;  %v8468_v1 = vld [vmem:[#allocation2 + $0x5a4] sm:$0xf]  ;;  %v8461_v15 = vld [vmem:[#allocation2 + $0x56c] sm:$0xf]  ;;  %v7276_v38 = vld [vmem:[#allocation2 + $0x578] sm:$0xf0] }
 0x4dc   :  { %2947 = vmatmul.bf16.gmra.mxu0 %v2842_v41  ;;  %v7303_v54 = vor.u32 %v8468_v1, %v7300_v32  ;;  %v7279_v16 = vor.u32 %v8461_v15, %v7276_v38  ;;  %v7338_v1 = vld [vmem:[#allocation2 + $0x5e8] sm:$0xf]  ;;  %v8479_v32 = vld [vmem:[#allocation2 + $0x5f4] sm:$0xf0]  ;;  %v8486_v15 = vld [vmem:[#allocation5 + $0x170] sm:$0xff] }
 0x4dd   :  { %v8485_v38 = vld [vmem:[#allocation5 + $0x168] sm:$0xff] }
 0x4df   :  { %v2831_v18 = vpop.f32.mrf.mxu3  ;;  %3239 = vmatmul.bf16.gmra.mxu2 %v7271_v59  ;;  %v7298_v59 = vld [vmem:[#allocation2 + $0x5a0] sm:$0xf] }
 0x4e0   :  { %v2832_v61 = vadd.f32 %v2831_v18, %v2783_v53  ;;  %v7287_v18 = vor.u32 %v8464_v12, %v7284_v6  ;;  %v7322_v12 = vld [vmem:[#allocation2 + $0x5c8] sm:$0xf]  ;;  %v8475_v6 = vld [vmem:[#allocation2 + $0x5d4] sm:$0xf0] }
 0x4e3   :  { %3190 = vmatmul.bf16.gmra.mxu1 %v7267_v49  ;;  %v8472_v49 = vld [vmem:[#allocation2 + $0x5c4] sm:$0xf] }
 0x4e7   :  { %v2833_v31 = vpop.f32.mrf.mxu3 }
 0x4e8   :  { %v2834_v58 = vadd.f32 %v2833_v31, %v2785_v37  ;;  %v7291_v37 = vor.u32 %v8467_v14, %v7290_v45  ;;  %v7282_v31 = vld [vmem:[#allocation2 + $0x580] sm:$0xf]  ;;  %v8474_v45 = vld [vmem:[#allocation2 + $0x5cc] sm:$0xf0] }
 0x4e9   :  { %v7283_v51 = vor.u32 %v8466_v20, %v7282_v31  ;;  %v8465_v31 = vld [vmem:[#allocation2 + $0x58c] sm:$0xf]  ;;  %v7292_v20 = vld [vmem:[#allocation2 + $0x598] sm:$0xf0] }
 0x4ea   :  { %v2843_v22 = vpack.c.bf16 %v2834_v58, %v2832_v61  ;;  %v10023_v61 = vld [vmem:[%s10542_s0 + $0x58] sm:$0xff]  ;;  %v7295_v28 = vor.u32 %v8465_v31, %v7292_v20 }
 0x4eb   :  { %3288 = vmatmul.bf16.gmra.mxu3 %v7275_v60 }
 0x4ec   :  { %2952 = vmatmul.bf16.gmra.mxu0 %v2843_v22  ;;  %v10038_v22 = vld [vmem:[%s10542_s0 + $0x48] sm:$0xff] }
 0x4ef   :  { %3244 = vmatmul.bf16.gmra.mxu2 %v7287_v18  ;;  %v7323_v18 = vor.u32 %v8475_v6, %v7322_v12  ;;  %v8473_v12 = vld [vmem:[#allocation2 + $0x5cc] sm:$0xf]  ;;  %v7324_v6 = vld [vmem:[#allocation2 + $0x5d8] sm:$0xf0] }
 0x4f3   :  { %3195 = vmatmul.bf16.gmra.mxu1 %v7283_v51  ;;  %v8476_v51 = vld [vmem:[#allocation2 + $0x5e4] sm:$0xf] }
 0x4f9   :  { %v2918_v24 = vpop.f32.mrf.mxu0 }
 0x4fa   :  { %v9988_v52 = vadd.f32 %v2918_v24, %v9873_v2  ;;  %v9999_v2 = vld [vmem:[%s10542_s0 + $0x70] sm:$0xff] }
 0x4fb   :  { %3293 = vmatmul.bf16.gmra.mxu3 %v7291_v37  ;;  %v8470_v24 = vld [vmem:[#allocation2 + $0x5ac] sm:$0xf0] }
 0x4fc   :  { %3322 = vmatmul.bf16.vlgmr.msrb.gmra.mxu0 %v7231_v56  ;;  %v7307_v56 = vor.u32 %v8471_v4, %v7306_v19  ;;  %v7299_v26 = vor.u32 %v8470_v24, %v7298_v59  ;;  %v8478_v19 = vld [vmem:[#allocation2 + $0x5ec] sm:$0xf0]  ;;  %v8469_v59 = vld [vmem:[#allocation2 + $0x5ac] sm:$0xf]  ;;  %v7308_v24 = vld [vmem:[#allocation2 + $0x5b8] sm:$0xf0] }
 0x4fd   :  { %4270 = vmatpush.bf16.msrb.mxu0 %v9993_v57 }
 0x4ff   :  { %3249 = vmatmul.bf16.gmra.mxu2 %v7303_v54  ;;  %v7339_v54 = vor.u32 %v8479_v32, %v7338_v1 }
 0x501   :  { %v2920_v11 = vpop.f32.mrf.mxu0  ;;  %4271 = vmatpush.bf16.msrb.mxu0 %v9999_v2 }
 0x502   :  { %v10003_v41 = vadd.f32 %v2920_v11, %v9878_v48  ;;  %v10014_v48 = vld [vmem:[%s10542_s0 + $0x60] sm:$0xff]  ;;  %v7316_v11 = vld [vmem:[#allocation2 + $0x5d0] sm:$0xf0] }
 0x503   :  { %3200 = vmatmul.bf16.gmra.mxu1 %v7299_v26  ;;  %v7319_v29 = vor.u32 %v8472_v49, %v7316_v11  ;;  %v7311_v26 = vor.u32 %v8469_v59, %v7308_v24  ;;  %v8484_v11 = vld [vmem:[#allocation5 + $0x160] sm:$0xff] }
 0x505   :  { %4272 = vmatpush.bf16.msrb.mxu0 %v10008_v21 }
 0x509   :  { %v2923_v55 = vpop.f32.mrf.mxu0  ;;  %4273 = vmatpush.bf16.msrb.mxu0 %v10014_v48 }
 0x50a   :  { %v10018_v53 = vadd.f32 %v2923_v55, %v9883_v9  ;;  %v10029_v9 = vld [vmem:[%s10542_s0 + $0x50] sm:$0xff]  ;;  %v7314_v55 = vld [vmem:[#allocation2 + $0x5c0] sm:$0xf] }
 0x50b   :  { %3298 = vmatmul.bf16.gmra.mxu3 %v7307_v56  ;;  %v8487_v56 = vld [vmem:[#allocation5 + $0x178] sm:$0xff] }
 0x50c   :  { %3327 = vmatmul.bf16.gmra.mxu0 %v7247_v50  ;;  %3436 = vmatpush.bf16.msrb.mxu1 %v8487_v56 }
 0x50d   :  { %4274 = vmatpush.bf16.msrb.mxu0 %v10023_v61 }
 0x50f   :  { %3254 = vmatmul.bf16.gmra.mxu2 %v7319_v29 }
 0x510   :  { %3437 = vmatpush.bf16.msrb.mxu1 %v8486_v15 }
 0x511   :  { %v2925_v58 = vpop.f32.mrf.mxu0  ;;  %4275 = vmatpush.bf16.msrb.mxu0 %v10029_v9 }
 0x512   :  { %v10033_v27 = vadd.f32 %v2925_v58, %v9888_v35  ;;  %v10044_v35 = vld [vmem:[%s10542_s0 + $0x40] sm:$0xff]  ;;  %v7332_v58 = vld [vmem:[#allocation2 + $0x5f0] sm:$0xf0] }
 0x513   :  { %v7335_v7 = vor.u32 %v8476_v51, %v7332_v58 }
 0x514   :  { %3438 = vmatpush.bf16.msrb.mxu1 %v8485_v38 }
 0x515   :  { %4276 = vmatpush.bf16.msrb.mxu0 %v10038_v22 }
 0x518   :  { %3439 = vmatpush.bf16.msrb.mxu1 %v8484_v11 }
 0x519   :  { %v2928_v30 = vpop.f32.mrf.mxu0  ;;  %4277 = vmatpush.bf16.msrb.mxu0 %v10044_v35 }
 0x51a   :  { %v10048_v46 = vadd.f32 %v2928_v30, %v9892_v33  ;;  %v7330_v30 = vld [vmem:[#allocation2 + $0x5e0] sm:$0xf] }
 0x51b   :  { %3303 = vmatmul.bf16.gmra.mxu3 %v7323_v18 }
 0x51c   :  { %3332 = vmatmul.bf16.gmra.mxu0 %v7263_v40 }
 0x51f   :  { %3259 = vmatmul.bf16.gmra.mxu2 %v7335_v7  ;;  %v8477_v7 = vld [vmem:[#allocation2 + $0x5ec] sm:$0xf] }
 0x521   :  { %v2930_v63 = vpop.f32.mrf.mxu0 }
 0x522   :  { %v10051_v60 = vadd.f32 %v2930_v63, %v9895_v47  ;;  %v7315_v47 = vor.u32 %v8474_v45, %v7314_v55  ;;  %v7327_v55 = vor.u32 %v8473_v12, %v7324_v6 }
 0x524   :  { %3205 = vmatmul.bf16.gmra.mxu1 %v7315_v47  ;;  %v8482_v47 = vld [vmem:[#allocation5 + $0x150] sm:$0xff] }
 0x529   :  { %v2933_v33 = vpop.f32.mrf.mxu0 }
 0x52a   :  { %v10054_v50 = vadd.f32 %v2933_v33, %v9898_v42  ;;  %v8483_v33 = vld [vmem:[#allocation5 + $0x158] sm:$0xff] }
 0x52b   :  { %3308 = vmatmul.bf16.gmra.mxu3 %v7339_v54  ;;  %3440 = vmatpush.bf16.msrb.mxu1 %v8483_v33 }
 0x52c   :  { %3337 = vmatmul.bf16.gmra.mxu0 %v7279_v16  ;;  %v3176_v16 = vpop.f32.mrf.mxu1 }
 0x52d   :  { %v3225_v29 = vpop.f32.mrf.mxu2 }
 0x52e   :  { %v3226_v24 = vadd.f32 %v3225_v29, %v3176_v16 }
 0x52f   :  { %3441 = vmatpush.bf16.msrb.mxu1 %v8482_v47 }
 0x531   :  { %v2935_v14 = vpop.f32.mrf.mxu0  ;;  %v3274_v18 = vpop.f32.mrf.mxu3 }
 0x532   :  { %v10057_v37 = vadd.f32 %v2935_v14, %v9901_v10  ;;  %v7331_v10 = vor.u32 %v8478_v19, %v7330_v30  ;;  %v8481_v14 = vld [vmem:[#allocation5 + $0x148] sm:$0xff]  ;;  %v3275_v15 = vadd.f32 %v3274_v18, %v3226_v24 }
 0x533   :  { %3442 = vmatpush.bf16.msrb.mxu1 %v8481_v14  ;;  %v10102_v14 = vld [vmem:[%s10542_s0 + $0xa8] sm:$0xff] }
 0x534   :  { %3210 = vmatmul.bf16.gmra.mxu1 %v7331_v10  ;;  %v3178_v31 = vpop.f32.mrf.mxu1 }
 0x535   :  { %v3227_v20 = vpop.f32.mrf.mxu2 }
 0x539   :  { %v2938_v42 = vpop.f32.mrf.mxu0  ;;  %v3276_v58 = vpop.f32.mrf.mxu3 }
 0x53a   :  { %v10060_v40 = vadd.f32 %v2938_v42, %v9904_v25  ;;  %v7340_v42 = vld [vmem:[#allocation2 + $0x5f8] sm:$0xf0] }
 0x53b   :  { %v7343_v54 = vor.u32 %v8477_v7, %v7340_v42  ;;  %v10108_v42 = vld [vmem:[%s10542_s0 + $0xa0] sm:$0xff] }
 0x53c   :  { %3342 = vmatmul.bf16.gmra.mxu0 %v7295_v28  ;;  %v8480_v28 = vld [vmem:[#allocation5 + $0x140] sm:$0xff]  ;;  %v3181_v1 = vpop.f32.mrf.mxu1 }
 0x53d   :  { %3443 = vmatpush.bf16.msrb.mxu1 %v8480_v28 }
 0x541   :  { %v10062_v4 = vpop.f32.mrf.mxu0  ;;  %3841 = vmatpush.bf16.msra.mxu1 %v9921_v34 }
 0x542   :  { %v3230_v32 = vpop.f32.mrf.mxu2 }
 0x543   :  { %v3231_v29 = vadd.f32 %v3230_v32, %v3181_v1  ;;  %v10114_v32 = vld [vmem:[%s10542_s0 + $0x98] sm:$0xff] }
 0x544   :  { %v3183_v10 = vpop.f32.mrf.mxu1 }
 0x545   :  { %3842 = vmatpush.bf16.msra.mxu1 %v9927_v62 }
 0x549   :  { %v2943_v63 = vpop.f32.mrf.mxu0  ;;  %3843 = vmatpush.bf16.msra.mxu1 %v9936_v3 }
 0x54a   :  { %v10065_v25 = vadd.f32 %v2943_v63, %v9909_v0  ;;  %v3232_v34 = vpop.f32.mrf.mxu2  ;;  %v3228_v63 = vadd.f32 %v3227_v20, %v3178_v31 }
 0x54b   :  { %v3233_v18 = vadd.f32 %v3232_v34, %v3183_v10  ;;  %v10120_v34 = vld [vmem:[%s10542_s0 + $0x90] sm:$0xff] }
 0x54c   :  { %3347 = vmatmul.bf16.gmra.mxu0 %v7311_v26  ;;  %v3277_v38 = vadd.f32 %v3276_v58, %v3228_v63  ;;  %v10126_v63 = vld [vmem:[%s10542_s0 + $0x88] sm:$0xff] }
 0x54d   :  { %3844 = vmatpush.bf16.msra.mxu1 %v9942_v17 }
 0x54e   :  { %v3279_v19 = vpop.f32.mrf.mxu3 }
 0x550   :  { %v3186_v26 = vpop.f32.mrf.mxu1 }
 0x551   :  { %v10067_v49 = vpop.f32.mrf.mxu0  ;;  %3845 = vmatpush.bf16.msra.mxu1 %v9950_v36 }
 0x555   :  { %3846 = vmatpush.bf16.msra.mxu1 %v9956_v39  ;;  %v10090_v39 = vld [vmem:[%s10542_s0 + $0xb8] sm:$0xff] }
 0x556   :  { %v3281_v59 = vpop.f32.mrf.mxu3 }
 0x557   :  { %v3282_v31 = vadd.f32 %v3281_v59, %v3233_v18 }
 0x558   :  { %v3188_v36 = vpop.f32.mrf.mxu1 }
 0x559   :  { %v2948_v45 = vpop.f32.mrf.mxu0  ;;  %3847 = vmatpush.bf16.msra.mxu1 %v9962_v23 }
 0x55a   :  { %v10070_v0 = vadd.f32 %v2948_v45, %v9914_v13 }
 0x55c   :  { %3352 = vmatmul.bf16.gmra.mxu0 %v7327_v55  ;;  %v3280_v55 = vadd.f32 %v3279_v19, %v3231_v29 }
 0x55d   :  { %3848 = vmatpush.bf16.msra.mxu1 %v9968_v43  ;;  %v10096_v43 = vld [vmem:[%s10542_s0 + $0xb0] sm:$0xff] }
 0x55e   :  { %v3284_v3 = vpop.f32.mrf.mxu3 }
 0x560   :  { %v3191_v45 = vpop.f32.mrf.mxu1 }
 0x561   :  { %v10072_v51 = vpop.f32.mrf.mxu0 }
 0x566   :  { %v3286_v16 = vpop.f32.mrf.mxu3 }
 0x569   :  { %v2953_v13 = vpop.f32.mrf.mxu0 }
 0x56a   :  { %v10077_v30 = vadd.f32 %v2953_v13, %v9931_v8  ;;  %v3235_v8 = vpop.f32.mrf.mxu2 }
 0x56b   :  { %v3236_v10 = vadd.f32 %v3235_v8, %v3186_v26 }
 0x56c   :  { %3357 = vmatmul.bf16.gmra.mxu0 %v7343_v54  ;;  %v3193_v54 = vpop.f32.mrf.mxu1 }
 0x56d   :  { %v3285_v24 = vadd.f32 %v3284_v3, %v3236_v10 }
 0x56e   :  { %v3289_v7 = vpop.f32.mrf.mxu3 }
 0x571   :  { %v10081_v56 = vpop.f32.mrf.mxu0 }
 0x572   :  { %v3237_v6 = vpop.f32.mrf.mxu2 }
 0x573   :  { %v3238_v59 = vadd.f32 %v3237_v6, %v3188_v36 }
 0x579   :  { %v3323_v62 = vpop.f32.mrf.mxu0 }
 0x57a   :  { %v3324_v11 = vadd.f32 %v3323_v62, %v3275_v15  ;;  %v3240_v47 = vpop.f32.mrf.mxu2  ;;  %v3291_v62 = vpop.f32.mrf.mxu3  ;;  %v3287_v15 = vadd.f32 %v3286_v16, %v3238_v59 }
 0x57b   :  { %v3241_v6 = vadd.f32 %v3240_v47, %v3191_v45 }
 0x57d   :  { %v3290_v18 = vadd.f32 %v3289_v7, %v3241_v6 }
 0x581   :  { %v3325_v17 = vpop.f32.mrf.mxu0 }
 0x582   :  { %v3326_v33 = vadd.f32 %v3325_v17, %v3277_v38  ;;  %v3242_v19 = vpop.f32.mrf.mxu2  ;;  %v3196_v17 = vpop.f32.mrf.mxu1 }
 0x584   :  { %v3363_v12 = vpack.c.bf16 %v3326_v33, %v3324_v11  ;;  %v10132_v33 = vld [vmem:[%s10542_s0 + $0x80] sm:$0xff] }
 0x586   :  { %3444 = vmatmul.bf16.vlgmr.msrb.gmra.mxu1 %v3363_v12  ;;  %v3294_v12 = vpop.f32.mrf.mxu3 }
 0x587   :  { %4319 = vmatpush.bf16.msrb.mxu1 %v10090_v39 }
 0x589   :  { %v3328_v23 = vpop.f32.mrf.mxu0 }
 0x58a   :  { %v3329_v58 = vadd.f32 %v3328_v23, %v3280_v55  ;;  %v3245_v11 = vpop.f32.mrf.mxu2  ;;  %v3243_v23 = vadd.f32 %v3242_v19, %v3193_v54  ;;  %v3198_v29 = vpop.f32.mrf.mxu1 }
 0x58b   :  { %4320 = vmatpush.bf16.msrb.mxu1 %v10096_v43 }
 0x58c   :  { %v3292_v55 = vadd.f32 %v3291_v62, %v3243_v23 }
 0x58f   :  { %4321 = vmatpush.bf16.msrb.mxu1 %v10102_v14 }
 0x591   :  { %v3330_v20 = vpop.f32.mrf.mxu0 }
 0x592   :  { %v3331_v28 = vadd.f32 %v3330_v20, %v3282_v31  ;;  %v3247_v16 = vpop.f32.mrf.mxu2  ;;  %v3296_v20 = vpop.f32.mrf.mxu3 }
 0x593   :  { %4322 = vmatpush.bf16.msrb.mxu1 %v10108_v42 }
 0x594   :  { %v3364_v1 = vpack.c.bf16 %v3331_v28, %v3329_v58 }
 0x596   :  { %3449 = vmatmul.bf16.gmra.mxu1 %v3364_v1 }
 0x597   :  { %4323 = vmatpush.bf16.msrb.mxu1 %v10114_v32 }
 0x599   :  { %v3333_v13 = vpop.f32.mrf.mxu0 }
 0x59a   :  { %v3334_v26 = vadd.f32 %v3333_v13, %v3285_v24  ;;  %v3201_v13 = vpop.f32.mrf.mxu1  ;;  %v3250_v10 = vpop.f32.mrf.mxu2  ;;  %v3246_v24 = vadd.f32 %v3245_v11, %v3196_v17 }
 0x59b   :  { %4324 = vmatpush.bf16.msrb.mxu1 %v10120_v34  ;;  %v3251_v6 = vadd.f32 %v3250_v10, %v3201_v13  ;;  %v7386_v13 = vld [vmem:[#allocation2 + $0x608] sm:$0xf]  ;;  %v8491_v10 = vld [vmem:[#allocation2 + $0x614] sm:$0xf0] }
 0x59f   :  { %4325 = vmatpush.bf16.msrb.mxu1 %v10126_v63 }
 0x5a1   :  { %v3335_v38 = vpop.f32.mrf.mxu0 }
 0x5a2   :  { %v3336_v8 = vadd.f32 %v3335_v38, %v3287_v15  ;;  %v3299_v15 = vpop.f32.mrf.mxu3  ;;  %v3248_v38 = vadd.f32 %v3247_v16, %v3198_v29  ;;  %v3203_v45 = vpop.f32.mrf.mxu1  ;;  %v7378_v29 = vld [vmem:[#allocation2 + $0x600] sm:$0xf]  ;;  %v8488_v16 = vld [vmem:[#allocation2 + $0x604] sm:$0xf] }
 0x5a3   :  { %4326 = vmatpush.bf16.msrb.mxu1 %v10132_v33  ;;  %v3252_v54 = vpop.f32.mrf.mxu2 }
 0x5a4   :  { %v3365_v3 = vpack.c.bf16 %v3336_v8, %v3334_v26  ;;  %v3295_v26 = vadd.f32 %v3294_v12, %v3246_v24  ;;  %v3297_v8 = vadd.f32 %v3296_v20, %v3248_v38  ;;  %v8490_v12 = vld [vmem:[#allocation2 + $0x60c] sm:$0xf0] }
 0x5a6   :  { %3454 = vmatmul.bf16.gmra.mxu1 %v3365_v3 }
 0x5a9   :  { %v3338_v36 = vpop.f32.mrf.mxu0 }
 0x5aa   :  { %v3339_v58 = vadd.f32 %v3338_v36, %v3290_v18  ;;  %v3301_v3 = vpop.f32.mrf.mxu3  ;;  %v3206_v23 = vpop.f32.mrf.mxu1 }
 0x5ab   :  { %v3255_v18 = vpop.f32.mrf.mxu2 }
 0x5b1   :  { %v3340_v31 = vpop.f32.mrf.mxu0 }
 0x5b2   :  { %v3341_v28 = vadd.f32 %v3340_v31, %v3292_v55  ;;  %v3253_v55 = vadd.f32 %v3252_v54, %v3203_v45  ;;  %v3300_v31 = vadd.f32 %v3299_v15, %v3251_v6  ;;  %v7387_v15 = vor.u32 %v8491_v10, %v7386_v13  ;;  %v8495_v13 = vld [vmem:[#allocation2 + $0x634] sm:$0xf0] }
 0x5b3   :  { %v3256_v54 = vadd.f32 %v3255_v18, %v3206_v23 }
 0x5b4   :  { %v3366_v1 = vpack.c.bf16 %v3341_v28, %v3339_v58  ;;  %v3304_v58 = vpop.f32.mrf.mxu3  ;;  %v3302_v17 = vadd.f32 %v3301_v3, %v3253_v55  ;;  %3800 = vmatmul.bf16.vlgmr.msra.gmra.mxu0 %v7387_v15 }
 0x5b6   :  { %3459 = vmatmul.bf16.gmra.mxu1 %v3366_v1  ;;  %v7379_v1 = vor.u32 %v8490_v12, %v7378_v29  ;;  %v8492_v29 = vld [vmem:[#allocation2 + $0x624] sm:$0xf] }
 0x5b8   :  { %3702 = vmatmul.bf16.vlgmr.msrb.gmra.mxu2 %v7379_v1 }
 0x5b9   :  { %v3343_v59 = vpop.f32.mrf.mxu0 }
 0x5ba   :  { %v3344_v19 = vadd.f32 %v3343_v59, %v3295_v26  ;;  %v7380_v59 = vld [vmem:[#allocation2 + $0x610] sm:$0xf0]  ;;  %v3208_v26 = vpop.f32.mrf.mxu1 }
 0x5bb   :  { %v7383_v24 = vor.u32 %v8488_v16, %v7380_v59  ;;  %v7396_v16 = vld [vmem:[#allocation2 + $0x630] sm:$0xf0]  ;;  %v8812_v59 = vld [vmem:[%s10542_s0 + $0x20] sm:$0xff] }
 0x5bc   :  { %v3306_v45 = vpop.f32.mrf.mxu3 }
 0x5bd   :  { %3751 = vmatmul.bf16.vlgmr.msrb.gmra.mxu3 %v7383_v24 }
 0x5c1   :  { %v3345_v47 = vpop.f32.mrf.mxu0 }
 0x5c2   :  { %v3346_v7 = vadd.f32 %v3345_v47, %v3297_v8  ;;  %v3257_v8 = vpop.f32.mrf.mxu2  ;;  %v3211_v3 = vpop.f32.mrf.mxu1 }
 0x5c4   :  { %v3367_v62 = vpack.c.bf16 %v3346_v7, %v3344_v19  ;;  %v8809_v19 = vld [vmem:[%s10542_s0 + $0x38] sm:$0xff]  ;;  %v3258_v7 = vadd.f32 %v3257_v8, %v3208_v26  ;;  %v7402_v8 = vld [vmem:[#allocation2 + $0x628] sm:$0xf] }
 0x5c5   :  { %4748 = vmatpush.bf16.msra.mxu0 %v8809_v19  ;;  %v7403_v15 = vor.u32 %v8495_v13, %v7402_v8 }
 0x5c6   :  { %3464 = vmatmul.bf16.gmra.mxu1 %v3367_v62  ;;  %v3305_v62 = vadd.f32 %v3304_v58, %v3256_v54  ;;  %v3307_v55 = vadd.f32 %v3306_v45, %v3258_v7  ;;  %v8811_v58 = vld [vmem:[%s10542_s0 + $0x28] sm:$0xff]  ;;  %v8813_v45 = vld [vmem:[%s10542_s0 + $0x18] sm:$0xff]  ;;  %v8814_v7 = vld [vmem:[%s10542_s0 + $0x10] sm:$0xff] }
 0x5c7   :  { %3805 = vmatmul.bf16.gmra.mxu0 %v7403_v15 }
 0x5c9   :  { %v3348_v36 = vpop.f32.mrf.mxu0 }
 0x5ca   :  { %v3349_v20 = vadd.f32 %v3348_v36, %v3300_v31  ;;  %v8810_v36 = vld [vmem:[%s10542_s0 + $0x30] sm:$0xff]  ;;  %v3260_v6 = vpop.f32.mrf.mxu2  ;;  %v3213_v24 = vpop.f32.mrf.mxu1 }
 0x5cb   :  { %4749 = vmatpush.bf16.msra.mxu0 %v8810_v36  ;;  %v3261_v10 = vadd.f32 %v3260_v6, %v3211_v3  ;;  %v8496_v3 = vld [vmem:[#allocation2 + $0x644] sm:$0xf] }
 0x5cf   :  { %4750 = vmatpush.bf16.msra.mxu0 %v8811_v58  ;;  %v7418_v58 = vld [vmem:[#allocation2 + $0x648] sm:$0xf] }
 0x5d1   :  { %v3350_v11 = vpop.f32.mrf.mxu0 }
 0x5d2   :  { %v3351_v28 = vadd.f32 %v3350_v11, %v3302_v17  ;;  %v7394_v17 = vld [vmem:[#allocation2 + $0x620] sm:$0xf]  ;;  %v8494_v11 = vld [vmem:[#allocation2 + $0x62c] sm:$0xf0] }
 0x5d3   :  { %v7395_v12 = vor.u32 %v8494_v11, %v7394_v17  ;;  %4751 = vmatpush.bf16.msra.mxu0 %v8812_v59  ;;  %v7388_v59 = vld [vmem:[#allocation2 + $0x618] sm:$0xf0] }
 0x5d4   :  { %v3368_v38 = vpack.c.bf16 %v3351_v28, %v3349_v20  ;;  %v3309_v20 = vpop.f32.mrf.mxu3  ;;  %v7399_v28 = vor.u32 %v8492_v29, %v7396_v16  ;;  %v7412_v29 = vld [vmem:[#allocation2 + $0x650] sm:$0xf0]  ;;  %v8816_v16 = vld [vmem:[%s10542_s0] sm:$0xff] }
 0x5d5   :  { %3707 = vmatmul.bf16.gmra.mxu2 %v7395_v12  ;;  %v3310_v19 = vadd.f32 %v3309_v20, %v3261_v10  ;;  %v8499_v20 = vld [vmem:[#allocation2 + $0x654] sm:$0xf0]  ;;  %v7428_v10 = vld [vmem:[#allocation2 + $0x670] sm:$0xf0] }
 0x5d6   :  { %3469 = vmatmul.bf16.gmra.mxu1 %v3368_v38  ;;  %3756 = vmatmul.bf16.gmra.mxu3 %v7399_v28  ;;  %v3262_v38 = vpop.f32.mrf.mxu2  ;;  %v7419_v28 = vor.u32 %v8499_v20, %v7418_v58  ;;  %v8497_v58 = vld [vmem:[#allocation2 + $0x64c] sm:$0xf]  ;;  %v8510_v20 = vld [vmem:[#allocation2 + $0x6ac] sm:$0xf0] }
 0x5d7   :  { %4752 = vmatpush.bf16.msra.mxu0 %v8813_v45 }
 0x5d8   :  { %3810 = vmatmul.bf16.gmra.mxu0 %v7419_v28  ;;  %v8508_v28 = vld [vmem:[#allocation2 + $0x6a4] sm:$0xf] }
 0x5d9   :  { %v3353_v47 = vpop.f32.mrf.mxu0 }
 0x5da   :  { %v3354_v23 = vadd.f32 %v3353_v47, %v3305_v62  ;;  %v3263_v47 = vadd.f32 %v3262_v38, %v3213_v24  ;;  %v7426_v24 = vld [vmem:[#allocation2 + $0x660] sm:$0xf]  ;;  %v8502_v38 = vld [vmem:[#allocation2 + $0x66c] sm:$0xf0] }
 0x5db   :  { %4753 = vmatpush.bf16.msra.mxu0 %v8814_v7  ;;  %v7427_v13 = vor.u32 %v8502_v38, %v7426_v24 }
 0x5dc   :  { %v3311_v54 = vpop.f32.mrf.mxu3 }
 0x5dd   :  { %v3312_v62 = vadd.f32 %v3311_v54, %v3263_v47  ;;  %v7434_v54 = vld [vmem:[#allocation2 + $0x668] sm:$0xf] }
 0x5e1   :  { %v3355_v31 = vpop.f32.mrf.mxu0 }
 0x5e2   :  { %v3356_v18 = vadd.f32 %v3355_v31, %v3307_v55  ;;  %v7410_v55 = vld [vmem:[#allocation2 + $0x640] sm:$0xf]  ;;  %v8498_v31 = vld [vmem:[#allocation2 + $0x64c] sm:$0xf0] }
 0x5e3   :  { %v7411_v11 = vor.u32 %v8498_v31, %v7410_v55  ;;  %v8493_v55 = vld [vmem:[#allocation2 + $0x62c] sm:$0xf]  ;;  %v7404_v31 = vld [vmem:[#allocation2 + $0x638] sm:$0xf0] }
 0x5e4   :  { %v3369_v1 = vpack.c.bf16 %v3356_v18, %v3354_v23  ;;  %v8815_v23 = vld [vmem:[%s10542_s0 + $0x8] sm:$0xff]  ;;  %v7415_v18 = vor.u32 %v8496_v3, %v7412_v29  ;;  %v8506_v3 = vld [vmem:[#allocation2 + $0x68c] sm:$0xf0] }
 0x5e5   :  { %4754 = vmatpush.bf16.msra.mxu0 %v8815_v23  ;;  %3712 = vmatmul.bf16.gmra.mxu2 %v7411_v11 }
 0x5e6   :  { %3474 = vmatmul.bf16.gmra.mxu1 %v3369_v1  ;;  %3761 = vmatmul.bf16.gmra.mxu3 %v7415_v18  ;;  %v8489_v1 = vld [vmem:[#allocation2 + $0x60c] sm:$0xf] }
 0x5e7   :  { %v7391_v8 = vor.u32 %v8489_v1, %v7388_v59 }
 0x5e9   :  { %v3358_v26 = vpop.f32.mrf.mxu0  ;;  %4755 = vmatpush.bf16.msra.mxu0 %v8816_v16 }
 0x5ea   :  { %v3359_v6 = vadd.f32 %v3358_v26, %v3310_v19  ;;  %v8500_v26 = vld [vmem:[#allocation2 + $0x664] sm:$0xf]  ;;  %v8503_v19 = vld [vmem:[#allocation2 + $0x674] sm:$0xf0] }
 0x5eb   :  { %v7431_v45 = vor.u32 %v8500_v26, %v7428_v10  ;;  %v7435_v7 = vor.u32 %v8503_v19, %v7434_v54  ;;  %v8511_v26 = vld [vmem:[#allocation2 + $0x6b4] sm:$0xf0]  ;;  %v8501_v10 = vld [vmem:[#allocation2 + $0x66c] sm:$0xf]  ;;  %v8514_v54 = vld [vmem:[#allocation2 + $0x6cc] sm:$0xf0] }
 0x5ec   :  { %v8512_v19 = vld [vmem:[#allocation2 + $0x6c4] sm:$0xf] }
 0x5ed   :  { %3815 = vmatmul.bf16.gmra.mxu0 %v7435_v7 }
 0x5f1   :  { %v3360_v36 = vpop.f32.mrf.mxu0 }
 0x5f2   :  { %v3361_v17 = vadd.f32 %v3360_v36, %v3312_v62 }
 0x5f4   :  { %v3370_v12 = vpack.c.bf16 %v3361_v17, %v3359_v6  ;;  %v8504_v6 = vld [vmem:[#allocation2 + $0x684] sm:$0xf]  ;;  %v7407_v17 = vor.u32 %v8493_v55, %v7404_v31 }
 0x5f5   :  { %3717 = vmatmul.bf16.gmra.mxu2 %v7427_v13 }
 0x5f6   :  { %3479 = vmatmul.bf16.gmra.mxu1 %v3370_v12  ;;  %3766 = vmatmul.bf16.gmra.mxu3 %v7431_v45  ;;  %v7474_v45 = vld [vmem:[#allocation2 + $0x6c0] sm:$0xf] }
 0x5f7   :  { %v7475_v7 = vor.u32 %v8514_v54, %v7474_v45  ;;  %v8523_v45 = vld [vmem:[#allocation5 + $0x198] sm:$0xff]  ;;  %v8513_v54 = vld [vmem:[#allocation2 + $0x6cc] sm:$0xf] }
 0x603   :  { %v3445_v15 = vpop.f32.mrf.mxu1 }
 0x604   :  { %v10160_v47 = vadd.f32 %v3445_v15, %v9988_v52  ;;  %v7442_v52 = vld [vmem:[#allocation2 + $0x680] sm:$0xf]  ;;  %v7436_v15 = vld [vmem:[#allocation2 + $0x678] sm:$0xf0] }
 0x605   :  { %v7443_v11 = vor.u32 %v8506_v3, %v7442_v52  ;;  %v7482_v52 = vld [vmem:[#allocation2 + $0x6c8] sm:$0xf] }
 0x606   :  { %3849 = vmatmul.bf16.vlgmr.msra.gmra.mxu1 %v7391_v8 }
 0x607   :  { %4797 = vmatpush.bf16.msra.mxu1 %v9993_v57  ;;  %v7444_v57 = vld [vmem:[#allocation2 + $0x690] sm:$0xf0]  ;;  %3722 = vmatmul.bf16.gmra.mxu2 %v7443_v11  ;;  %v8505_v11 = vld [vmem:[#allocation2 + $0x68c] sm:$0xf] }
 0x608   :  { %v7447_v23 = vor.u32 %v8504_v6, %v7444_v57  ;;  %v7452_v57 = vld [vmem:[#allocation2 + $0x698] sm:$0xf0] }
 0x60a   :  { %3771 = vmatmul.bf16.gmra.mxu3 %v7447_v23  ;;  %v8518_v23 = vld [vmem:[#allocation2 + $0x6ec] sm:$0xf0] }
 0x60b   :  { %v3447_v62 = vpop.f32.mrf.mxu1  ;;  %4798 = vmatpush.bf16.msra.mxu1 %v9999_v2 }
 0x60c   :  { %v10165_v36 = vadd.f32 %v3447_v62, %v10003_v41  ;;  %v7450_v41 = vld [vmem:[#allocation2 + $0x688] sm:$0xf] }
 0x60f   :  { %4799 = vmatpush.bf16.msra.mxu1 %v10008_v21  ;;  %v8507_v21 = vld [vmem:[#allocation2 + $0x694] sm:$0xf0] }
 0x610   :  { %v7451_v18 = vor.u32 %v8507_v21, %v7450_v41  ;;  %v8516_v41 = vld [vmem:[#allocation2 + $0x6e4] sm:$0xf]  ;;  %v7455_v21 = vor.u32 %v8505_v11, %v7452_v57  ;;  %v10209_v57 = vld [vmem:[%s10542_s0 + $0xf8] sm:$0xff] }
 0x611   :  { %v8520_v11 = vld [vmem:[#allocation5 + $0x180] sm:$0xff] }
 0x612   :  { %3820 = vmatmul.bf16.gmra.mxu0 %v7451_v18 }
 0x613   :  { %v3450_v29 = vpop.f32.mrf.mxu1  ;;  %4800 = vmatpush.bf16.msra.mxu1 %v10014_v48  ;;  %v7420_v48 = vld [vmem:[#allocation2 + $0x658] sm:$0xf0] }
 0x614   :  { %v10170_v2 = vadd.f32 %v3450_v29, %v10018_v53  ;;  %v7458_v53 = vld [vmem:[#allocation2 + $0x6a0] sm:$0xf]  ;;  %v7423_v1 = vor.u32 %v8497_v58, %v7420_v48 }
 0x615   :  { %v7459_v59 = vor.u32 %v8510_v20, %v7458_v53  ;;  %v7490_v29 = vld [vmem:[#allocation2 + $0x6e0] sm:$0xf]  ;;  %v7498_v53 = vld [vmem:[#allocation2 + $0x6e8] sm:$0xf] }
 0x616   :  { %3854 = vmatmul.bf16.gmra.mxu1 %v7407_v17  ;;  %v7491_v18 = vor.u32 %v8518_v23, %v7490_v29  ;;  %v7500_v29 = vld [vmem:[#allocation2 + $0x6f8] sm:$0xf0] }
 0x617   :  { %4801 = vmatpush.bf16.msra.mxu1 %v10023_v61  ;;  %v7460_v61 = vld [vmem:[#allocation2 + $0x6b0] sm:$0xf0]  ;;  %3727 = vmatmul.bf16.gmra.mxu2 %v7459_v59  ;;  %v8509_v59 = vld [vmem:[#allocation2 + $0x6ac] sm:$0xf] }
 0x618   :  { %v7463_v38 = vor.u32 %v8508_v28, %v7460_v61  ;;  %v7468_v61 = vld [vmem:[#allocation2 + $0x6b8] sm:$0xf0] }
 0x61a   :  { %3776 = vmatmul.bf16.gmra.mxu3 %v7463_v38 }
 0x61b   :  { %v3452_v12 = vpop.f32.mrf.mxu1  ;;  %4802 = vmatpush.bf16.msra.mxu1 %v10029_v9 }
 0x61c   :  { %v10175_v16 = vadd.f32 %v3452_v12, %v10033_v27  ;;  %v7466_v27 = vld [vmem:[#allocation2 + $0x6a8] sm:$0xf] }
 0x61d   :  { %v7467_v8 = vor.u32 %v8511_v26, %v7466_v27  ;;  %v8526_v27 = vld [vmem:[#allocation5 + $0x1b0] sm:$0xff] }
 0x61f   :  { %4803 = vmatpush.bf16.msra.mxu1 %v10038_v22 }
 0x622   :  { %3825 = vmatmul.bf16.gmra.mxu0 %v7467_v8 }
 0x623   :  { %v3455_v24 = vpop.f32.mrf.mxu1  ;;  %4804 = vmatpush.bf16.msra.mxu1 %v10044_v35  ;;  %v7439_v35 = vor.u32 %v8501_v10, %v7436_v15 }
 0x624   :  { %v10180_v9 = vadd.f32 %v3455_v24, %v10048_v46  ;;  %v7476_v46 = vld [vmem:[#allocation2 + $0x6d0] sm:$0xf0]  ;;  %v7471_v24 = vor.u32 %v8509_v59, %v7468_v61  ;;  %v10238_v59 = vld [vmem:[%s10542_s0 + $0xd8] sm:$0xff] }
 0x625   :  { %v7479_v55 = vor.u32 %v8512_v19, %v7476_v46  ;;  %v7484_v19 = vld [vmem:[#allocation2 + $0x6d8] sm:$0xf0] }
 0x626   :  { %3859 = vmatmul.bf16.gmra.mxu1 %v7423_v1  ;;  %v8527_v1 = vld [vmem:[#allocation5 + $0x1b8] sm:$0xff] }
 0x627   :  { %3732 = vmatmul.bf16.gmra.mxu2 %v7475_v7  ;;  %v7487_v7 = vor.u32 %v8513_v54, %v7484_v19  ;;  %v10250_v54 = vld [vmem:[%s10542_s0 + $0xc8] sm:$0xff] }
 0x628   :  { %3963 = vmatpush.bf16.msra.mxu2 %v8527_v1 }
 0x62a   :  { %3781 = vmatmul.bf16.gmra.mxu3 %v7479_v55  ;;  %v8521_v55 = vld [vmem:[#allocation5 + $0x188] sm:$0xff] }
 0x62b   :  { %v3457_v22 = vpop.f32.mrf.mxu1 }
 0x62c   :  { %v10183_v13 = vadd.f32 %v3457_v22, %v10051_v60  ;;  %v8515_v60 = vld [vmem:[#allocation2 + $0x6d4] sm:$0xf0]  ;;  %3964 = vmatpush.bf16.msra.mxu2 %v8526_v27  ;;  %v8524_v22 = vld [vmem:[#allocation5 + $0x1a0] sm:$0xff] }
 0x62d   :  { %v7483_v3 = vor.u32 %v8515_v60, %v7482_v52 }
 0x632   :  { %3830 = vmatmul.bf16.gmra.mxu0 %v7483_v3 }
 0x633   :  { %v3460_v62 = vpop.f32.mrf.mxu1 }
 0x634   :  { %v10186_v31 = vadd.f32 %v3460_v62, %v10054_v50  ;;  %v7492_v50 = vld [vmem:[#allocation2 + $0x6f0] sm:$0xf0] }
 0x635   :  { %v7495_v58 = vor.u32 %v8516_v41, %v7492_v50  ;;  %v8522_v62 = vld [vmem:[#allocation5 + $0x190] sm:$0xff] }
 0x636   :  { %3864 = vmatmul.bf16.gmra.mxu1 %v7439_v35  ;;  %v3801_v35 = vpop.f32.mrf.mxu0 }
 0x637   :  { %3737 = vmatmul.bf16.gmra.mxu2 %v7491_v18  ;;  %v10215_v18 = vld [vmem:[%s10542_s0 + $0xf0] sm:$0xff] }
 0x63a   :  { %3786 = vmatmul.bf16.gmra.mxu3 %v7495_v58 }
 0x63b   :  { %v3462_v6 = vpop.f32.mrf.mxu1  ;;  %v3703_v10 = vpop.f32.mrf.mxu2 }
 0x63c   :  { %v10189_v17 = vadd.f32 %v3462_v6, %v10057_v37  ;;  %v8519_v37 = vld [vmem:[#allocation2 + $0x6f4] sm:$0xf0] }
 0x63d   :  { %v7499_v20 = vor.u32 %v8519_v37, %v7498_v53  ;;  %v10224_v53 = vld [vmem:[%s10542_s0 + $0xe8] sm:$0xff] }
 0x63e   :  { %v3803_v6 = vpop.f32.mrf.mxu0 }
 0x640   :  { %v3752_v15 = vpop.f32.mrf.mxu3 }
 0x641   :  { %v3753_v27 = vadd.f32 %v3752_v15, %v3703_v10 }
 0x642   :  { %3835 = vmatmul.bf16.gmra.mxu0 %v7499_v20  ;;  %v10230_v20 = vld [vmem:[%s10542_s0 + $0xe0] sm:$0xff] }
 0x643   :  { %v3465_v12 = vpop.f32.mrf.mxu1  ;;  %v3705_v52 = vpop.f32.mrf.mxu2  ;;  %v3802_v19 = vadd.f32 %v3801_v35, %v3753_v27 }
 0x644   :  { %v10192_v48 = vadd.f32 %v3465_v12, %v10060_v40  ;;  %v8525_v40 = vld [vmem:[#allocation5 + $0x1a8] sm:$0xff] }
 0x645   :  { %3965 = vmatpush.bf16.msra.mxu2 %v8525_v40 }
 0x646   :  { %3869 = vmatmul.bf16.gmra.mxu1 %v7455_v21  ;;  %v3806_v58 = vpop.f32.mrf.mxu0 }
 0x648   :  { %v3754_v60 = vpop.f32.mrf.mxu3 }
 0x649   :  { %3966 = vmatpush.bf16.msra.mxu2 %v8524_v22 }
 0x64b   :  { %v10194_v28 = vpop.f32.mrf.mxu1 }
 0x64d   :  { %3967 = vmatpush.bf16.msra.mxu2 %v8523_v45  ;;  %v3755_v45 = vadd.f32 %v3754_v60, %v3705_v52 }
 0x64e   :  { %v3808_v61 = vpop.f32.mrf.mxu0 }
 0x651   :  { %3968 = vmatpush.bf16.msra.mxu2 %v8522_v62  ;;  %v10256_v62 = vld [vmem:[%s10542_s0 + $0xc0] sm:$0xff] }
 0x653   :  { %v3470_v38 = vpop.f32.mrf.mxu1 }
 0x654   :  { %v10197_v26 = vadd.f32 %v3470_v38, %v10065_v25 }
 0x655   :  { %3969 = vmatpush.bf16.msra.mxu2 %v8521_v55 }
 0x656   :  { %3874 = vmatmul.bf16.gmra.mxu1 %v7471_v24  ;;  %v10244_v24 = vld [vmem:[%s10542_s0 + $0xd0] sm:$0xff]  ;;  %s9013_s0 = smov [#allocation13]  }
 0x657   :  { %s6270_s27 = sshll.u32 %s9013_s0, 4  ;;  %s6271_s27 = int_to_ptr.vmem [resolvable:$true] %s6270_s27 }
 0x658   :  { %v3708_v23 = vpop.f32.mrf.mxu2 }
 0x659   :  { %3970 = vmatpush.bf16.msra.mxu2 %v8520_v11  ;;  %v3757_v41 = vpop.f32.mrf.mxu3 }
 0x65b   :  { %v10199_v8 = vpop.f32.mrf.mxu1 }
 0x65d   :  { %4368 = vmatpush.bf16.msrb.mxu2 %v10209_v57 }
 0x660   :  { %v3710_v37 = vpop.f32.mrf.mxu2 }
 0x661   :  { %4369 = vmatpush.bf16.msrb.mxu2 %v10215_v18 }
 0x663   :  { %v3475_v46 = vpop.f32.mrf.mxu1 }
 0x664   :  { %v10202_v25 = vadd.f32 %v3475_v46, %v10070_v0  ;;  %v8517_v0 = vld [vmem:[#allocation2 + $0x6ec] sm:$0xf]  ;;  %v3804_v46 = vadd.f32 %v3803_v6, %v3755_v45 }
 0x665   :  { %v7503_v21 = vor.u32 %v8517_v0, %v7500_v29  ;;  %4370 = vmatpush.bf16.msrb.mxu2 %v10224_v53  ;;  %v3758_v29 = vadd.f32 %v3757_v41, %v3708_v23 }
 0x666   :  { %3879 = vmatmul.bf16.gmra.mxu1 %v7487_v7  ;;  %v3811_v7 = vpop.f32.mrf.mxu0 }
 0x668   :  { %v3713_v40 = vpop.f32.mrf.mxu2 }
 0x669   :  { %4371 = vmatpush.bf16.msrb.mxu2 %v10230_v20 }
 0x66b   :  { %v10204_v3 = vpop.f32.mrf.mxu1 }
 0x66d   :  { %4372 = vmatpush.bf16.msrb.mxu2 %v10238_v59 }
 0x66e   :  { %v3813_v35 = vpop.f32.mrf.mxu0 }
 0x670   :  { %v3715_v60 = vpop.f32.mrf.mxu2 }
 0x671   :  { %4373 = vmatpush.bf16.msrb.mxu2 %v10244_v24 }
 0x673   :  { %v3480_v50 = vpop.f32.mrf.mxu1 }
 0x674   :  { %v10219_v12 = vadd.f32 %v3480_v50, %v10077_v30  ;;  %v3759_v30 = vpop.f32.mrf.mxu3 }
 0x675   :  { %4374 = vmatpush.bf16.msrb.mxu2 %v10250_v54  ;;  %v3760_v6 = vadd.f32 %v3759_v30, %v3710_v37 }
 0x676   :  { %3884 = vmatmul.bf16.gmra.mxu1 %v7503_v21  ;;  %v3807_v21 = vadd.f32 %v3806_v58, %v3758_v29 }
 0x677   :  { %v3809_v45 = vadd.f32 %v3808_v61, %v3760_v6 }
 0x678   :  { %v3718_v50 = vpop.f32.mrf.mxu2 }
 0x679   :  { %4375 = vmatpush.bf16.msrb.mxu2 %v10256_v62 }
 0x67b   :  { %v10233_v1 = vpop.f32.mrf.mxu1 }
 0x67c   :  { %v3762_v22 = vpop.f32.mrf.mxu3 }
 0x67d   :  { %v3763_v41 = vadd.f32 %v3762_v22, %v3713_v40 }
 0x683   :  { %v3850_v38 = vpop.f32.mrf.mxu1 }
 0x684   :  { %v3851_v15 = vadd.f32 %v3850_v38, %v3802_v19  ;;  %v3764_v11 = vpop.f32.mrf.mxu3 }
 0x685   :  { %v3765_v58 = vadd.f32 %v3764_v11, %v3715_v60 }
 0x687   :  { %v3814_v30 = vadd.f32 %v3813_v35, %v3765_v58 }
 0x68b   :  { %v3852_v10 = vpop.f32.mrf.mxu1 }
 0x68c   :  { %v3853_v55 = vadd.f32 %v3852_v10, %v3804_v46  ;;  %v3767_v27 = vpop.f32.mrf.mxu3  ;;  %v3816_v10 = vpop.f32.mrf.mxu0 }
 0x68d   :  { %v3768_v40 = vadd.f32 %v3767_v27, %v3718_v50 }
 0x68e   :  { %v3890_v52 = vpack.c.bf16 %v3853_v55, %v3851_v15 }
 0x68f   :  { %v3817_v11 = vadd.f32 %v3816_v10, %v3768_v40 }
 0x690   :  { %3971 = vmatmul.bf16.vlgmr.msra.gmra.mxu2 %v3890_v52 }
 0x691   :  { %4846 = vmatpush.bf16.msra.mxu2 %v10090_v39  ;;  %v3720_v39 = vpop.f32.mrf.mxu2 }
 0x693   :  { %v3855_v0 = vpop.f32.mrf.mxu1 }
 0x694   :  { %v3856_v19 = vadd.f32 %v3855_v0, %v3807_v21  ;;  %v3818_v37 = vpop.f32.mrf.mxu0 }
 0x695   :  { %4847 = vmatpush.bf16.msra.mxu2 %v10096_v43  ;;  %v3769_v43 = vpop.f32.mrf.mxu3 }
 0x696   :  { %v3770_v22 = vadd.f32 %v3769_v43, %v3720_v39 }
 0x699   :  { %4848 = vmatpush.bf16.msra.mxu2 %v10102_v14  ;;  %v3812_v14 = vadd.f32 %v3811_v7, %v3763_v41  ;;  %v3819_v7 = vadd.f32 %v3818_v37, %v3770_v22 }
 0x69b   :  { %v3857_v38 = vpop.f32.mrf.mxu1 }
 0x69c   :  { %v3858_v46 = vadd.f32 %v3857_v38, %v3809_v45  ;;  %v3821_v29 = vpop.f32.mrf.mxu0 }
 0x69d   :  { %4849 = vmatpush.bf16.msra.mxu2 %v10108_v42  ;;  %v3723_v42 = vpop.f32.mrf.mxu2  ;;  %v3772_v0 = vpop.f32.mrf.mxu3 }
 0x69e   :  { %v3891_v15 = vpack.c.bf16 %v3858_v46, %v3856_v19 }
 0x6a0   :  { %3976 = vmatmul.bf16.gmra.mxu2 %v3891_v15 }
 0x6a1   :  { %4850 = vmatpush.bf16.msra.mxu2 %v10114_v32 }
 0x6a3   :  { %v3860_v23 = vpop.f32.mrf.mxu1 }
 0x6a4   :  { %v3861_v55 = vadd.f32 %v3860_v23, %v3812_v14 }
 0x6a5   :  { %4851 = vmatpush.bf16.msra.mxu2 %v10120_v34  ;;  %v3725_v34 = vpop.f32.mrf.mxu2  ;;  %v3774_v60 = vpop.f32.mrf.mxu3 }
 0x6a6   :  { %v3775_v41 = vadd.f32 %v3774_v60, %v3725_v34 }
 0x6a9   :  { %4852 = vmatpush.bf16.msra.mxu2 %v10126_v63  ;;  %v3823_v63 = vpop.f32.mrf.mxu0 }
 0x6aa   :  { %v3824_v14 = vadd.f32 %v3823_v63, %v3775_v41  ;;  %v8530_v63 = vld [vmem:[#allocation2 + $0x70c] sm:$0xf0] }
 0x6ab   :  { %v3862_v61 = vpop.f32.mrf.mxu1 }
 0x6ac   :  { %v3863_v52 = vadd.f32 %v3862_v61, %v3814_v30 }
 0x6ad   :  { %4853 = vmatpush.bf16.msra.mxu2 %v10132_v33  ;;  %v3728_v19 = vpop.f32.mrf.mxu2  ;;  %v3777_v46 = vpop.f32.mrf.mxu3  ;;  %v3773_v33 = vadd.f32 %v3772_v0, %v3723_v42 }
 0x6ae   :  { %v3892_v32 = vpack.c.bf16 %v3863_v52, %v3861_v55  ;;  %v3778_v55 = vadd.f32 %v3777_v46, %v3728_v19  ;;  %v8531_v19 = vld [vmem:[#allocation2 + $0x714] sm:$0xf0] }
 0x6af   :  { %v3822_v58 = vadd.f32 %v3821_v29, %v3773_v33 }
 0x6b0   :  { %3981 = vmatmul.bf16.gmra.mxu2 %v3892_v32 }
 0x6b1   :  { %v3826_v23 = vpop.f32.mrf.mxu0 }
 0x6b2   :  { %v3827_v40 = vadd.f32 %v3826_v23, %v3778_v55 }
 0x6b3   :  { %v3865_v6 = vpop.f32.mrf.mxu1 }
 0x6b4   :  { %v3866_v35 = vadd.f32 %v3865_v6, %v3817_v11 }
 0x6b5   :  { %v3730_v50 = vpop.f32.mrf.mxu2  ;;  %v3779_v39 = vpop.f32.mrf.mxu3 }
 0x6b6   :  { %v3780_v6 = vadd.f32 %v3779_v39, %v3730_v50 }
 0x6b9   :  { %v3828_v30 = vpop.f32.mrf.mxu0 }
 0x6ba   :  { %v3829_v42 = vadd.f32 %v3828_v30, %v3780_v6  ;;  %v7554_v6 = vld [vmem:[#allocation2 + $0x720] sm:$0xf] }
 0x6bb   :  { %v3867_v21 = vpop.f32.mrf.mxu1 }
 0x6bc   :  { %v3868_v45 = vadd.f32 %v3867_v21, %v3819_v7  ;;  %v7538_v21 = vld [vmem:[#allocation2 + $0x700] sm:$0xf] }
 0x6bd   :  { %v3733_v52 = vpop.f32.mrf.mxu2  ;;  %v3782_v32 = vpop.f32.mrf.mxu3 }
 0x6be   :  { %v3893_v38 = vpack.c.bf16 %v3868_v45, %v3866_v35  ;;  %v8528_v35 = vld [vmem:[#allocation2 + $0x704] sm:$0xf]  ;;  %v7539_v45 = vor.u32 %v8530_v63, %v7538_v21  ;;  %v7562_v63 = vld [vmem:[#allocation2 + $0x728] sm:$0xf] }
 0x6c0   :  { %3986 = vmatmul.bf16.gmra.mxu2 %v3893_v38  ;;  %v7540_v38 = vld [vmem:[#allocation2 + $0x710] sm:$0xf0]  ;;  %4229 = vmatmul.bf16.vlgmr.msra.gmra.mxu3 %v7539_v45 }
 0x6c1   :  { %v3831_v22 = vpop.f32.mrf.mxu0  ;;  %v7543_v46 = vor.u32 %v8528_v35, %v7540_v38  ;;  %v8535_v35 = vld [vmem:[#allocation2 + $0x734] sm:$0xf0] }
 0x6c2   :  { %v7563_v38 = vor.u32 %v8535_v35, %v7562_v63 }
 0x6c3   :  { %v3870_v15 = vpop.f32.mrf.mxu1  ;;  %4278 = vmatmul.bf16.vlgmr.msrb.gmra.mxu0 %v7543_v46 }
 0x6c4   :  { %v3871_v43 = vadd.f32 %v3870_v15, %v3822_v58  ;;  %v7546_v15 = vld [vmem:[#allocation2 + $0x708] sm:$0xf]  ;;  %v3783_v58 = vadd.f32 %v3782_v32, %v3733_v52  ;;  %v8532_v32 = vld [vmem:[#allocation2 + $0x724] sm:$0xf] }
 0x6c5   :  { %v3735_v11 = vpop.f32.mrf.mxu2  ;;  %v3784_v7 = vpop.f32.mrf.mxu3  ;;  %v7547_v33 = vor.u32 %v8531_v19, %v7546_v15 }
 0x6c6   :  { %v3832_v50 = vadd.f32 %v3831_v22, %v3783_v58 }
 0x6c7   :  { %4327 = vmatmul.bf16.vlgmr.msrb.gmra.mxu1 %v7547_v33 }
 0x6c9   :  { %v3833_v41 = vpop.f32.mrf.mxu0 }
 0x6cb   :  { %v3872_v27 = vpop.f32.mrf.mxu1 }
 0x6cc   :  { %v3873_v10 = vadd.f32 %v3872_v27, %v3824_v14  ;;  %v3785_v14 = vadd.f32 %v3784_v7, %v3735_v11 }
 0x6cd   :  { %v3738_v27 = vpop.f32.mrf.mxu2  ;;  %v3787_v39 = vpop.f32.mrf.mxu3 }
 0x6ce   :  { %v3894_v37 = vpack.c.bf16 %v3873_v10, %v3871_v43  ;;  %v3834_v43 = vadd.f32 %v3833_v41, %v3785_v14  ;;  %v3788_v52 = vadd.f32 %v3787_v39, %v3738_v27  ;;  %v7570_v41 = vld [vmem:[#allocation2 + $0x740] sm:$0xf]  ;;  %v8536_v14 = vld [vmem:[#allocation2 + $0x744] sm:$0xf]  ;;  %v8529_v39 = vld [vmem:[#allocation2 + $0x70c] sm:$0xf] }
 0x6d0   :  { %3991 = vmatmul.bf16.gmra.mxu2 %v3894_v37 }
 0x6d3   :  { %v3875_v61 = vpop.f32.mrf.mxu1 }
 0x6d4   :  { %v3876_v34 = vadd.f32 %v3875_v61, %v3827_v40  ;;  %v3836_v61 = vpop.f32.mrf.mxu0  ;;  %v8534_v40 = vld [vmem:[#allocation2 + $0x72c] sm:$0xf0] }
 0x6d5   :  { %v3837_v21 = vadd.f32 %v3836_v61, %v3788_v52 }
 0x6d7   :  { %4332 = vmatmul.bf16.gmra.mxu1 %v7563_v38 }
 0x6db   :  { %v3877_v0 = vpop.f32.mrf.mxu1 }
 0x6dc   :  { %v3878_v29 = vadd.f32 %v3877_v0, %v3829_v42  ;;  %v3740_v42 = vpop.f32.mrf.mxu2  ;;  %v7555_v0 = vor.u32 %v8534_v40, %v7554_v6  ;;  %v3838_v7 = vpop.f32.mrf.mxu0  ;;  %v8542_v6 = vld [vmem:[#allocation2 + $0x76c] sm:$0xf0] }
 0x6de   :  { %v3895_v60 = vpack.c.bf16 %v3878_v29, %v3876_v34  ;;  %v3789_v34 = vpop.f32.mrf.mxu3  ;;  %4234 = vmatmul.bf16.gmra.mxu3 %v7555_v0 }
 0x6df   :  { %v3790_v11 = vadd.f32 %v3789_v34, %v3740_v42  ;;  %v8540_v34 = vld [vmem:[#allocation2 + $0x764] sm:$0xf] }
 0x6e0   :  { %3996 = vmatmul.bf16.gmra.mxu2 %v3895_v60  ;;  %v7556_v60 = vld [vmem:[#allocation2 + $0x730] sm:$0xf0] }
 0x6e1   :  { %v7559_v22 = vor.u32 %v8532_v32, %v7556_v60  ;;  %v3839_v45 = vadd.f32 %v3838_v7, %v3790_v11  ;;  %v8533_v32 = vld [vmem:[#allocation2 + $0x72c] sm:$0xf]  ;;  %v7564_v60 = vld [vmem:[#allocation2 + $0x738] sm:$0xf0]  ;;  %v8543_v11 = vld [vmem:[#allocation2 + $0x774] sm:$0xf0] }
 0x6e2   :  { %v7567_v35 = vor.u32 %v8533_v32, %v7564_v60 }
 0x6e3   :  { %v3880_v23 = vpop.f32.mrf.mxu1  ;;  %4283 = vmatmul.bf16.gmra.mxu0 %v7559_v22  ;;  %v7594_v22 = vld [vmem:[#allocation2 + $0x768] sm:$0xf] }
 0x6e4   :  { %v3881_v37 = vadd.f32 %v3880_v23, %v3832_v50  ;;  %v8538_v23 = vld [vmem:[#allocation2 + $0x74c] sm:$0xf0]  ;;  %v7572_v50 = vld [vmem:[#allocation2 + $0x750] sm:$0xf0]  ;;  %v7595_v7 = vor.u32 %v8543_v11, %v7594_v22  ;;  %v7634_v11 = vld [vmem:[#allocation2 + $0x7c0] sm:$0xf] }
 0x6e5   :  { %v7571_v58 = vor.u32 %v8538_v23, %v7570_v41  ;;  %v7575_v27 = vor.u32 %v8536_v14, %v7572_v50  ;;  %v8537_v23 = vld [vmem:[#allocation2 + $0x74c] sm:$0xf]  ;;  %v7610_v14 = vld [vmem:[#allocation2 + $0x788] sm:$0xf] }
 0x6eb   :  { %v3882_v10 = vpop.f32.mrf.mxu1 }
 0x6ec   :  { %v3883_v30 = vadd.f32 %v3882_v10, %v3834_v43  ;;  %v7548_v43 = vld [vmem:[#allocation2 + $0x718] sm:$0xf0]  ;;  %v7578_v10 = vld [vmem:[#allocation2 + $0x748] sm:$0xf] }
 0x6ed   :  { %v7551_v61 = vor.u32 %v8529_v39, %v7548_v43 }
 0x6ee   :  { %v3896_v55 = vpack.c.bf16 %v3883_v30, %v3881_v37  ;;  %4239 = vmatmul.bf16.gmra.mxu3 %v7571_v58  ;;  %v8539_v37 = vld [vmem:[#allocation2 + $0x754] sm:$0xf0]  ;;  %v7580_v58 = vld [vmem:[#allocation2 + $0x758] sm:$0xf0] }
 0x6ef   :  { %v7579_v30 = vor.u32 %v8539_v37, %v7578_v10  ;;  %v7583_v43 = vor.u32 %v8537_v23, %v7580_v58  ;;  %v7618_v10 = vld [vmem:[#allocation2 + $0x7a0] sm:$0xf] }
 0x6f0   :  { %4001 = vmatmul.bf16.gmra.mxu2 %v3896_v55  ;;  %v7586_v55 = vld [vmem:[#allocation2 + $0x760] sm:$0xf] }
 0x6f1   :  { %4337 = vmatmul.bf16.gmra.mxu1 %v7579_v30  ;;  %v7587_v40 = vor.u32 %v8542_v6, %v7586_v55  ;;  %v8548_v55 = vld [vmem:[#allocation2 + $0x7a4] sm:$0xf]  ;;  %v7620_v6 = vld [vmem:[#allocation2 + $0x7b0] sm:$0xf0] }
 0x6f3   :  { %v3885_v29 = vpop.f32.mrf.mxu1  ;;  %4288 = vmatmul.bf16.gmra.mxu0 %v7575_v27 }
 0x6f4   :  { %v3886_v19 = vadd.f32 %v3885_v29, %v3837_v21  ;;  %v7588_v29 = vld [vmem:[#allocation2 + $0x770] sm:$0xf0] }
 0x6f5   :  { %v7591_v52 = vor.u32 %v8540_v34, %v7588_v29  ;;  %v7596_v34 = vld [vmem:[#allocation2 + $0x778] sm:$0xf0]  ;;  %v7626_v29 = vld [vmem:[#allocation2 + $0x7a8] sm:$0xf] }
 0x6fb   :  { %v3887_v15 = vpop.f32.mrf.mxu1 }
 0x6fc   :  { %v3888_v46 = vadd.f32 %v3887_v15, %v3839_v45  ;;  %v7602_v45 = vld [vmem:[#allocation2 + $0x780] sm:$0xf] }
 0x6fe   :  { %v3897_v33 = vpack.c.bf16 %v3888_v46, %v3886_v19  ;;  %4244 = vmatmul.bf16.gmra.mxu3 %v7587_v40  ;;  %v8544_v46 = vld [vmem:[#allocation2 + $0x784] sm:$0xf]  ;;  %v7623_v40 = vor.u32 %v8548_v55, %v7620_v6  ;;  %v7628_v55 = vld [vmem:[#allocation2 + $0x7b8] sm:$0xf0]  ;;  %v7658_v6 = vld [vmem:[#allocation2 + $0x7e8] sm:$0xf] }
 0x700   :  { %4006 = vmatmul.bf16.gmra.mxu2 %v3897_v33  ;;  %v7604_v33 = vld [vmem:[#allocation2 + $0x790] sm:$0xf0] }
 0x701   :  { %4342 = vmatmul.bf16.gmra.mxu1 %v7595_v7  ;;  %v7607_v41 = vor.u32 %v8544_v46, %v7604_v33  ;;  %v7612_v46 = vld [vmem:[#allocation2 + $0x798] sm:$0xf0]  ;;  %v7642_v33 = vld [vmem:[#allocation2 + $0x7c8] sm:$0xf] }
 0x703   :  { %4293 = vmatmul.bf16.gmra.mxu0 %v7591_v52 }
 0x710   :  { %4376 = vmatmul.bf16.vlgmr.msrb.gmra.mxu2 %v7551_v61 }
 0x713   :  { %v3972_v42 = vpop.f32.mrf.mxu2  ;;  %4298 = vmatmul.bf16.gmra.mxu0 %v7607_v41 }
 0x714   :  { %v10268_v0 = vadd.f32 %v3972_v42, %v10160_v47  ;;  %v8546_v47 = vld [vmem:[#allocation2 + $0x78c] sm:$0xf0]  ;;  %v8541_v42 = vld [vmem:[#allocation2 + $0x76c] sm:$0xf] }
 0x715   :  { %v7603_v38 = vor.u32 %v8546_v47, %v7602_v45  ;;  %v7599_v22 = vor.u32 %v8541_v42, %v7596_v34  ;;  %v8552_v45 = vld [vmem:[#allocation2 + $0x7c4] sm:$0xf]  ;;  %v7636_v47 = vld [vmem:[#allocation2 + $0x7d0] sm:$0xf0] }
 0x717   :  { %4249 = vmatmul.bf16.gmra.mxu3 %v7603_v38  ;;  %v7639_v38 = vor.u32 %v8552_v45, %v7636_v47 }
 0x71b   :  { %v3974_v21 = vpop.f32.mrf.mxu2 }
 0x71c   :  { %v10271_v63 = vadd.f32 %v3974_v21, %v10165_v36  ;;  %v8547_v36 = vld [vmem:[#allocation2 + $0x794] sm:$0xf0] }
 0x71d   :  { %v7611_v50 = vor.u32 %v8547_v36, %v7610_v14  ;;  %v7650_v36 = vld [vmem:[#allocation2 + $0x7e0] sm:$0xf] }
 0x71f   :  { %4347 = vmatmul.bf16.gmra.mxu1 %v7611_v50 }
 0x720   :  { %4381 = vmatmul.bf16.gmra.mxu2 %v7567_v35 }
 0x723   :  { %v3977_v15 = vpop.f32.mrf.mxu2  ;;  %4303 = vmatmul.bf16.gmra.mxu0 %v7623_v40 }
 0x724   :  { %v10274_v19 = vadd.f32 %v3977_v15, %v10170_v2  ;;  %v8550_v2 = vld [vmem:[#allocation2 + $0x7ac] sm:$0xf0]  ;;  %v8545_v15 = vld [vmem:[#allocation2 + $0x78c] sm:$0xf] }
 0x725   :  { %v7619_v37 = vor.u32 %v8550_v2, %v7618_v10  ;;  %v7615_v14 = vor.u32 %v8545_v15, %v7612_v46  ;;  %v8556_v10 = vld [vmem:[#allocation2 + $0x7e4] sm:$0xf]  ;;  %v7652_v2 = vld [vmem:[#allocation2 + $0x7f0] sm:$0xf0] }
 0x727   :  { %4254 = vmatmul.bf16.gmra.mxu3 %v7619_v37  ;;  %v7655_v37 = vor.u32 %v8556_v10, %v7652_v2 }
 0x72b   :  { %v3979_v27 = vpop.f32.mrf.mxu2 }
 0x72c   :  { %v10277_v39 = vadd.f32 %v3979_v27, %v10175_v16  ;;  %v8551_v16 = vld [vmem:[#allocation2 + $0x7b4] sm:$0xf0] }
 0x72d   :  { %v7627_v52 = vor.u32 %v8551_v16, %v7626_v29  ;;  %v8567_v29 = vld [vmem:[#allocation5 + $0x1f8] sm:$0xff] }
 0x72e   :  { %4490 = vmatpush.bf16.msrb.mxu3 %v8567_v29 }
 0x72f   :  { %4352 = vmatmul.bf16.gmra.mxu1 %v7627_v52 }
 0x730   :  { %4386 = vmatmul.bf16.gmra.mxu2 %v7583_v43 }
 0x733   :  { %v3982_v30 = vpop.f32.mrf.mxu2  ;;  %4308 = vmatmul.bf16.gmra.mxu0 %v7639_v38  ;;  %v8563_v38 = vld [vmem:[#allocation5 + $0x1d8] sm:$0xff] }
 0x734   :  { %v10280_v61 = vadd.f32 %v3982_v30, %v10180_v9  ;;  %v8554_v9 = vld [vmem:[#allocation2 + $0x7cc] sm:$0xf0]  ;;  %v8549_v30 = vld [vmem:[#allocation2 + $0x7ac] sm:$0xf] }
 0x735   :  { %v7635_v7 = vor.u32 %v8554_v9, %v7634_v11  ;;  %v7631_v34 = vor.u32 %v8549_v30, %v7628_v55  ;;  %v7644_v11 = vld [vmem:[#allocation2 + $0x7d8] sm:$0xf0] }
 0x737   :  { %4259 = vmatmul.bf16.gmra.mxu3 %v7635_v7  ;;  %v8564_v7 = vld [vmem:[#allocation5 + $0x1e0] sm:$0xff] }
 0x73b   :  { %v3984_v32 = vpop.f32.mrf.mxu2 }
 0x73c   :  { %v10283_v60 = vadd.f32 %v3984_v32, %v10183_v13  ;;  %v8555_v13 = vld [vmem:[#allocation2 + $0x7d4] sm:$0xf0]  ;;  %v8565_v32 = vld [vmem:[#allocation5 + $0x1e8] sm:$0xff] }
 0x73d   :  { %v7643_v41 = vor.u32 %v8555_v13, %v7642_v33  ;;  %v8562_v33 = vld [vmem:[#allocation5 + $0x1d0] sm:$0xff]  ;;  %v8561_v13 = vld [vmem:[#allocation5 + $0x1c8] sm:$0xff] }
 0x73f   :  { %4357 = vmatmul.bf16.gmra.mxu1 %v7643_v41 }
 0x740   :  { %4391 = vmatmul.bf16.gmra.mxu2 %v7599_v22  ;;  %v8553_v22 = vld [vmem:[#allocation2 + $0x7cc] sm:$0xf]  ;;  %v4279_v45 = vpop.f32.mrf.mxu0 }
 0x743   :  { %v3987_v21 = vpop.f32.mrf.mxu2  ;;  %4313 = vmatmul.bf16.gmra.mxu0 %v7655_v37  ;;  %v4230_v47 = vpop.f32.mrf.mxu3 }
 0x744   :  { %v10286_v35 = vadd.f32 %v3987_v21, %v10186_v31  ;;  %v8558_v31 = vld [vmem:[#allocation2 + $0x7ec] sm:$0xf0]  ;;  %v7647_v21 = vor.u32 %v8553_v22, %v7644_v11  ;;  %v4328_v15 = vpop.f32.mrf.mxu1 }
 0x745   :  { %v7651_v50 = vor.u32 %v8558_v31, %v7650_v36  ;;  %v7660_v36 = vld [vmem:[#allocation2 + $0x7f8] sm:$0xf0] }
 0x747   :  { %4264 = vmatmul.bf16.gmra.mxu3 %v7651_v50 }
 0x748   :  { %v4281_v41 = vpop.f32.mrf.mxu0 }
 0x74b   :  { %v3989_v23 = vpop.f32.mrf.mxu2 }
 0x74c   :  { %v10289_v58 = vadd.f32 %v3989_v23, %v10189_v17  ;;  %v8559_v17 = vld [vmem:[#allocation2 + $0x7f4] sm:$0xf0]  ;;  %v4232_v23 = vpop.f32.mrf.mxu3  ;;  %v4330_v50 = vpop.f32.mrf.mxu1 }
 0x74d   :  { %v7659_v40 = vor.u32 %v8559_v17, %v7658_v6 }
 0x74f   :  { %4362 = vmatmul.bf16.gmra.mxu1 %v7659_v40 }
 0x750   :  { %4396 = vmatmul.bf16.gmra.mxu2 %v7615_v14  ;;  %v8557_v14 = vld [vmem:[#allocation2 + $0x7ec] sm:$0xf] }
 0x751   :  { %v7663_v10 = vor.u32 %v8557_v14, %v7660_v36 }
 0x753   :  { %v3992_v27 = vpop.f32.mrf.mxu2 }
 0x754   :  { %v10292_v43 = vadd.f32 %v3992_v27, %v10192_v48  ;;  %v8566_v48 = vld [vmem:[#allocation5 + $0x1f0] sm:$0xff]  ;;  %v8560_v27 = vld [vmem:[#allocation5 + $0x1c0] sm:$0xff]  ;;  %v4333_v55 = vpop.f32.mrf.mxu1 }
 0x755   :  { %4491 = vmatpush.bf16.msrb.mxu3 %v8566_v48 }
 0x759   :  { %4492 = vmatpush.bf16.msrb.mxu3 %v8565_v32 }
 0x75b   :  { %v10294_v42 = vpop.f32.mrf.mxu2 }
 0x75d   :  { %4493 = vmatpush.bf16.msrb.mxu3 %v8564_v7 }
 0x760   :  { %4401 = vmatmul.bf16.gmra.mxu2 %v7631_v34  ;;  %v4284_v2 = vpop.f32.mrf.mxu0 }
 0x761   :  { %4494 = vmatpush.bf16.msrb.mxu3 %v8563_v38  ;;  %v4235_v37 = vpop.f32.mrf.mxu3 }
 0x763   :  { %v3997_v16 = vpop.f32.mrf.mxu2 }
 0x764   :  { %v10297_v52 = vadd.f32 %v3997_v16, %v10197_v26 }
 0x765   :  { %4495 = vmatpush.bf16.msrb.mxu3 %v8562_v33 }
 0x768   :  { %v4286_v6 = vpop.f32.mrf.mxu0 }
 0x769   :  { %4496 = vmatpush.bf16.msrb.mxu3 %v8561_v13  ;;  %v4237_v40 = vpop.f32.mrf.mxu3 }
 0x76b   :  { %v10299_v9 = vpop.f32.mrf.mxu2 }
 0x76d   :  { %4497 = vmatpush.bf16.msrb.mxu3 %v8560_v27 }
 0x770   :  { %4406 = vmatmul.bf16.gmra.mxu2 %v7647_v21  ;;  %v4289_v29 = vpop.f32.mrf.mxu0 }
 0x771   :  { %4895 = vmatpush.bf16.msra.mxu3 %v10209_v57  ;;  %v4335_v57 = vpop.f32.mrf.mxu1  ;;  %v4240_v16 = vpop.f32.mrf.mxu3 }
 0x773   :  { %v4002_v46 = vpop.f32.mrf.mxu2 }
 0x774   :  { %v10302_v26 = vadd.f32 %v4002_v46, %v10202_v25 }
 0x775   :  { %4896 = vmatpush.bf16.msra.mxu3 %v10215_v18  ;;  %v4280_v18 = vadd.f32 %v4279_v45, %v4230_v47  ;;  %v4285_v45 = vadd.f32 %v4284_v2, %v4235_v37  ;;  %v4287_v47 = vadd.f32 %v4286_v6, %v4237_v40 }
 0x777   :  { %v4329_v48 = vadd.f32 %v4328_v15, %v4280_v18  ;;  %v4334_v46 = vadd.f32 %v4333_v55, %v4285_v45 }
 0x779   :  { %4897 = vmatpush.bf16.msra.mxu3 %v10224_v53  ;;  %v4338_v53 = vpop.f32.mrf.mxu1  ;;  %v4242_v21 = vpop.f32.mrf.mxu3 }
 0x77b   :  { %v10304_v31 = vpop.f32.mrf.mxu2 }
 0x77d   :  { %4898 = vmatpush.bf16.msra.mxu3 %v10230_v20 }
 0x780   :  { %4411 = vmatmul.bf16.gmra.mxu2 %v7663_v10  ;;  %v4290_v10 = vadd.f32 %v4289_v29, %v4240_v16 }
 0x781   :  { %4899 = vmatpush.bf16.msra.mxu3 %v10238_v59  ;;  %v4291_v59 = vpop.f32.mrf.mxu0  ;;  %v4340_v38 = vpop.f32.mrf.mxu1 }
 0x782   :  { %v4245_v13 = vpop.f32.mrf.mxu3  ;;  %v4339_v18 = vadd.f32 %v4338_v53, %v4290_v10 }
 0x783   :  { %v4007_v25 = vpop.f32.mrf.mxu2 }
 0x784   :  { %v10309_v30 = vadd.f32 %v4007_v25, %v10219_v12  ;;  %v4282_v12 = vadd.f32 %v4281_v41, %v4232_v23  ;;  %v4292_v25 = vadd.f32 %v4291_v59, %v4242_v21 }
 0x785   :  { %4900 = vmatpush.bf16.msra.mxu3 %v10244_v24 }
 0x786   :  { %v4331_v32 = vadd.f32 %v4330_v50, %v4282_v12  ;;  %v4341_v12 = vadd.f32 %v4340_v38, %v4292_v25 }
 0x789   :  { %4901 = vmatpush.bf16.msra.mxu3 %v10250_v54  ;;  %v4294_v33 = vpop.f32.mrf.mxu0  ;;  %v4336_v54 = vadd.f32 %v4335_v57, %v4287_v47  ;;  %v4343_v14 = vpop.f32.mrf.mxu1 }
 0x78a   :  { %v4247_v27 = vpop.f32.mrf.mxu3 }
 0x78b   :  { %v10313_v17 = vpop.f32.mrf.mxu2 }
 0x78d   :  { %4902 = vmatpush.bf16.msra.mxu3 %v10256_v62 }
 0x791   :  { %v4296_v36 = vpop.f32.mrf.mxu0 }
 0x793   :  { %v4377_v34 = vpop.f32.mrf.mxu2 }
 0x794   :  { %v4378_v22 = vadd.f32 %v4377_v34, %v4329_v48  ;;  %v4345_v34 = vpop.f32.mrf.mxu1 }
 0x799   :  { %v4299_v6 = vpop.f32.mrf.mxu0 }
 0x79a   :  { %v4250_v40 = vpop.f32.mrf.mxu3 }
 0x79b   :  { %v4379_v20 = vpop.f32.mrf.mxu2 }
 0x79c   :  { %v4380_v11 = vadd.f32 %v4379_v20, %v4331_v32  ;;  %v4348_v48 = vpop.f32.mrf.mxu1  ;;  %v4295_v20 = vadd.f32 %v4294_v33, %v4245_v13 }
 0x79e   :  { %v4417_v7 = vpack.c.bf16 %v4380_v11, %v4378_v22  ;;  %v4297_v22 = vadd.f32 %v4296_v36, %v4247_v27 }
 0x7a0   :  { %4498 = vmatmul.bf16.vlgmr.msrb.gmra.mxu3 %v4417_v7  ;;  %v4346_v45 = vadd.f32 %v4345_v34, %v4297_v22 }
 0x7a1   :  { %v4301_v11 = vpop.f32.mrf.mxu0 }
 0x7a2   :  { %v4252_v7 = vpop.f32.mrf.mxu3 }
 0x7a3   :  { %v4382_v24 = vpop.f32.mrf.mxu2 }
 0x7a4   :  { %v4383_v41 = vadd.f32 %v4382_v24, %v4334_v46  ;;  %v4344_v24 = vadd.f32 %v4343_v14, %v4295_v20  ;;  %v4350_v16 = vpop.f32.mrf.mxu1 }
 0x7a9   :  { %v4304_v38 = vpop.f32.mrf.mxu0 }
 0x7aa   :  { %v4255_v47 = vpop.f32.mrf.mxu3 }
 0x7ab   :  { %v4384_v15 = vpop.f32.mrf.mxu2  ;;  %v4305_v34 = vadd.f32 %v4304_v38, %v4255_v47 }
 0x7ac   :  { %v4385_v23 = vadd.f32 %v4384_v15, %v4336_v54  ;;  %v4300_v54 = vadd.f32 %v4299_v6, %v4250_v40  ;;  %v4353_v15 = vpop.f32.mrf.mxu1 }
 0x7ae   :  { %v4418_v62 = vpack.c.bf16 %v4385_v23, %v4383_v41  ;;  %v4302_v41 = vadd.f32 %v4301_v11, %v4252_v7  ;;  %v4349_v23 = vadd.f32 %v4348_v48, %v4300_v54  ;;  %v7706_v11 = vld [vmem:[#allocation2 + $0x808] sm:$0xf]  ;;  %v8571_v7 = vld [vmem:[#allocation2 + $0x814] sm:$0xf0] }
 0x7b0   :  { %4503 = vmatmul.bf16.gmra.mxu3 %v4418_v62  ;;  %v4351_v62 = vadd.f32 %v4350_v16, %v4302_v41  ;;  %v8568_v16 = vld [vmem:[#allocation2 + $0x804] sm:$0xf] }
 0x7b1   :  { %v4306_v33 = vpop.f32.mrf.mxu0 }
 0x7b2   :  { %v4257_v36 = vpop.f32.mrf.mxu3 }
 0x7b3   :  { %v4387_v50 = vpop.f32.mrf.mxu2 }
 0x7b4   :  { %v4388_v37 = vadd.f32 %v4387_v50, %v4339_v18  ;;  %v4355_v10 = vpop.f32.mrf.mxu1 }
 0x7b9   :  { %v4309_v18 = vpop.f32.mrf.mxu0 }
 0x7bb   :  { %v4389_v2 = vpop.f32.mrf.mxu2 }
 0x7bc   :  { %v4390_v55 = vadd.f32 %v4389_v2, %v4341_v12  ;;  %v4260_v12 = vpop.f32.mrf.mxu3  ;;  %v4307_v2 = vadd.f32 %v4306_v33, %v4257_v36 }
 0x7be   :  { %v4419_v57 = vpack.c.bf16 %v4390_v55, %v4388_v37  ;;  %v4354_v37 = vadd.f32 %v4353_v15, %v4305_v34  ;;  %v4358_v55 = vpop.f32.mrf.mxu1  ;;  %v4356_v6 = vadd.f32 %v4355_v10, %v4307_v2  ;;  %v7722_v34 = vld [vmem:[#allocation2 + $0x828] sm:$0xf]  ;;  %v8575_v2 = vld [vmem:[#allocation2 + $0x834] sm:$0xf0] }
 0x7c0   :  { %4508 = vmatmul.bf16.gmra.mxu3 %v4419_v57 }
 0x7c1   :  { %v4311_v20 = vpop.f32.mrf.mxu0 }
 0x7c3   :  { %v4392_v32 = vpop.f32.mrf.mxu2 }
 0x7c4   :  { %v4393_v59 = vadd.f32 %v4392_v32, %v4344_v24  ;;  %v4262_v22 = vpop.f32.mrf.mxu3  ;;  %v7698_v24 = vld [vmem:[#allocation2 + $0x800] sm:$0xf] }
 0x7c5   :  { %v4312_v54 = vadd.f32 %v4311_v20, %v4262_v22 }
 0x7c6   :  { %v4360_v38 = vpop.f32.mrf.mxu1 }
 0x7c9   :  { %v4314_v41 = vpop.f32.mrf.mxu0 }
 0x7cb   :  { %v4394_v29 = vpop.f32.mrf.mxu2 }
 0x7cc   :  { %v4395_v53 = vadd.f32 %v4394_v29, %v4346_v45  ;;  %v7707_v45 = vor.u32 %v8571_v7, %v7706_v11  ;;  %v8570_v29 = vld [vmem:[#allocation2 + $0x80c] sm:$0xf0] }
 0x7ce   :  { %v4420_v21 = vpack.c.bf16 %v4395_v53, %v4393_v59  ;;  %v7700_v59 = vld [vmem:[#allocation2 + $0x810] sm:$0xf0]  ;;  %v7699_v53 = vor.u32 %v8570_v29, %v7698_v24  ;;  %4854 = vmatmul.bf16.vlgmr.msra.gmra.mxu2 %v7707_v45 }
 0x7d0   :  { %4513 = vmatmul.bf16.gmra.mxu3 %v4420_v21  ;;  %v7703_v21 = vor.u32 %v8568_v16, %v7700_v59  ;;  %4756 = vmatmul.bf16.vlgmr.msra.gmra.mxu0 %v7699_v53  ;;  %v7738_v16 = vld [vmem:[#allocation2 + $0x848] sm:$0xf]  ;;  %v8579_v59 = vld [vmem:[#allocation2 + $0x854] sm:$0xf0] }
 0x7d1   :  { %v7739_v53 = vor.u32 %v8579_v59, %v7738_v16  ;;  %v7740_v16 = vld [vmem:[#allocation2 + $0x858] sm:$0xf0] }
 0x7d2   :  { %4805 = vmatmul.bf16.vlgmr.msra.gmra.mxu1 %v7703_v21  ;;  %v7730_v21 = vld [vmem:[#allocation2 + $0x840] sm:$0xf] }
 0x7d3   :  { %v4397_v46 = vpop.f32.mrf.mxu2 }
 0x7d4   :  { %v4398_v50 = vadd.f32 %v4397_v46, %v4349_v23  ;;  %v4310_v46 = vadd.f32 %v4309_v18, %v4260_v12  ;;  %v4265_v23 = vpop.f32.mrf.mxu3  ;;  %v7723_v18 = vor.u32 %v8575_v2, %v7722_v34  ;;  %v7714_v12 = vld [vmem:[#allocation2 + $0x820] sm:$0xf]  ;;  %v7748_v2 = vld [vmem:[#allocation2 + $0x870] sm:$0xf0] }
 0x7d6   :  { %v4359_v15 = vadd.f32 %v4358_v55, %v4310_v46 }
 0x7db   :  { %v4399_v13 = vpop.f32.mrf.mxu2 }
 0x7dc   :  { %v4400_v14 = vadd.f32 %v4399_v13, %v4351_v62  ;;  %v4361_v62 = vadd.f32 %v4360_v38, %v4312_v54  ;;  %v4267_v10 = vpop.f32.mrf.mxu3  ;;  %v8578_v38 = vld [vmem:[#allocation2 + $0x84c] sm:$0xf0]  ;;  %v7732_v54 = vld [vmem:[#allocation2 + $0x850] sm:$0xf0] }
 0x7dd   :  { %v7731_v46 = vor.u32 %v8578_v38, %v7730_v21  ;;  %v7786_v38 = vld [vmem:[#allocation2 + $0x8a8] sm:$0xf] }
 0x7de   :  { %v4421_v27 = vpack.c.bf16 %v4400_v14, %v4398_v50  ;;  %v4363_v50 = vpop.f32.mrf.mxu1  ;;  %4859 = vmatmul.bf16.gmra.mxu2 %v7723_v18  ;;  %v8573_v18 = vld [vmem:[#allocation2 + $0x82c] sm:$0xf] }
 0x7e0   :  { %4518 = vmatmul.bf16.gmra.mxu3 %v4421_v27  ;;  %v4316_v27 = vpop.f32.mrf.mxu0 }
 0x7e3   :  { %v4402_v25 = vpop.f32.mrf.mxu2 }
 0x7e4   :  { %v4403_v57 = vadd.f32 %v4402_v25, %v4354_v37  ;;  %v4315_v37 = vadd.f32 %v4314_v41, %v4265_v23  ;;  %v8569_v41 = vld [vmem:[#allocation2 + $0x80c] sm:$0xf]  ;;  %v7708_v23 = vld [vmem:[#allocation2 + $0x818] sm:$0xf0] }
 0x7e6   :  { %v4365_v20 = vpop.f32.mrf.mxu1  ;;  %v4364_v22 = vadd.f32 %v4363_v50, %v4315_v37 }
 0x7eb   :  { %v4404_v40 = vpop.f32.mrf.mxu2 }
 0x7ec   :  { %v4405_v48 = vadd.f32 %v4404_v40, %v4356_v6  ;;  %v8574_v6 = vld [vmem:[#allocation2 + $0x82c] sm:$0xf0]  ;;  %v8572_v40 = vld [vmem:[#allocation2 + $0x824] sm:$0xf] }
 0x7ed   :  { %v7715_v55 = vor.u32 %v8574_v6, %v7714_v12  ;;  %v7724_v12 = vld [vmem:[#allocation2 + $0x838] sm:$0xf0] }
 0x7ee   :  { %v4422_v32 = vpack.c.bf16 %v4405_v48, %v4403_v57  ;;  %v7716_v57 = vld [vmem:[#allocation2 + $0x830] sm:$0xf0]  ;;  %v4317_v48 = vadd.f32 %v4316_v27, %v4267_v10  ;;  %4864 = vmatmul.bf16.gmra.mxu2 %v7739_v53  ;;  %v7746_v27 = vld [vmem:[#allocation2 + $0x860] sm:$0xf]  ;;  %v8582_v10 = vld [vmem:[#allocation2 + $0x86c] sm:$0xf0] }
 0x7ef   :  { %4761 = vmatmul.bf16.gmra.mxu0 %v7715_v55  ;;  %v7747_v34 = vor.u32 %v8582_v10, %v7746_v27  ;;  %v7727_v55 = vor.u32 %v8573_v18, %v7724_v12  ;;  %v7794_v18 = vld [vmem:[#allocation2 + $0x8c0] sm:$0xf]  ;;  %v8594_v12 = vld [vmem:[#allocation2 + $0x8cc] sm:$0xf0] }
 0x7f0   :  { %4523 = vmatmul.bf16.gmra.mxu3 %v4422_v32  ;;  %v7719_v32 = vor.u32 %v8572_v40, %v7716_v57  ;;  %v4366_v11 = vadd.f32 %v4365_v20, %v4317_v48  ;;  %v7770_v57 = vld [vmem:[#allocation2 + $0x888] sm:$0xf]  ;;  %v8587_v48 = vld [vmem:[#allocation2 + $0x894] sm:$0xf0] }
 0x7f1   :  { %v7771_v20 = vor.u32 %v8587_v48, %v7770_v57  ;;  %v7772_v48 = vld [vmem:[#allocation2 + $0x898] sm:$0xf0] }
 0x7f2   :  { %4810 = vmatmul.bf16.gmra.mxu1 %v7719_v32 }
 0x7f3   :  { %v4407_v47 = vpop.f32.mrf.mxu2 }
 0x7f4   :  { %v4408_v13 = vadd.f32 %v4407_v47, %v4359_v15  ;;  %v8576_v47 = vld [vmem:[#allocation2 + $0x844] sm:$0xf] }
 0x7f5   :  { %v7735_v15 = vor.u32 %v8576_v47, %v7732_v54  ;;  %v8591_v47 = vld [vmem:[#allocation2 + $0x8b4] sm:$0xf0] }
 0x7f6   :  { %v7787_v54 = vor.u32 %v8591_v47, %v7786_v38  ;;  %v7788_v47 = vld [vmem:[#allocation2 + $0x8b8] sm:$0xf0] }
 0x7fb   :  { %v4409_v33 = vpop.f32.mrf.mxu2 }
 0x7fc   :  { %v4410_v36 = vadd.f32 %v4409_v33, %v4361_v62  ;;  %v7711_v62 = vor.u32 %v8569_v41, %v7708_v23  ;;  %v8590_v41 = vld [vmem:[#allocation2 + $0x8ac] sm:$0xf0]  ;;  %v8588_v23 = vld [vmem:[#allocation2 + $0x8a4] sm:$0xf] }
 0x7fe   :  { %v4423_v14 = vpack.c.bf16 %v4410_v36, %v4408_v13  ;;  %v7754_v13 = vld [vmem:[#allocation2 + $0x868] sm:$0xf]  ;;  %v8583_v36 = vld [vmem:[#allocation2 + $0x874] sm:$0xf0] }
 0x7ff   :  { %4766 = vmatmul.bf16.gmra.mxu0 %v7731_v46 }
 0x800   :  { %4528 = vmatmul.bf16.gmra.mxu3 %v4423_v14  ;;  %v7755_v14 = vor.u32 %v8583_v36, %v7754_v13  ;;  %v7756_v36 = vld [vmem:[#allocation2 + $0x878] sm:$0xf0] }
 0x802   :  { %4815 = vmatmul.bf16.gmra.mxu1 %v7735_v15  ;;  %4869 = vmatmul.bf16.gmra.mxu2 %v7755_v14  ;;  %v7778_v15 = vld [vmem:[#allocation2 + $0x8a0] sm:$0xf] }
 0x803   :  { %v4412_v25 = vpop.f32.mrf.mxu2 }
 0x804   :  { %v4413_v24 = vadd.f32 %v4412_v25, %v4364_v22  ;;  %v8580_v25 = vld [vmem:[#allocation2 + $0x864] sm:$0xf]  ;;  %v7762_v22 = vld [vmem:[#allocation2 + $0x880] sm:$0xf] }
 0x805   :  { %v7751_v37 = vor.u32 %v8580_v25, %v7748_v2  ;;  %v7802_v25 = vld [vmem:[#allocation2 + $0x8c8] sm:$0xf] }
 0x80b   :  { %v4414_v7 = vpop.f32.mrf.mxu2 }
 0x80c   :  { %v4415_v45 = vadd.f32 %v4414_v7, %v4366_v11  ;;  %v8586_v11 = vld [vmem:[#allocation2 + $0x88c] sm:$0xf0]  ;;  %v8584_v7 = vld [vmem:[#allocation2 + $0x884] sm:$0xf] }
 0x80e   :  { %v4424_v29 = vpack.c.bf16 %v4415_v45, %v4413_v24  ;;  %v7763_v24 = vor.u32 %v8586_v11, %v7762_v22  ;;  %v7764_v45 = vld [vmem:[#allocation2 + $0x890] sm:$0xf0] }
 0x80f   :  { %4771 = vmatmul.bf16.gmra.mxu0 %v7747_v34  ;;  %v8595_v34 = vld [vmem:[#allocation2 + $0x8d4] sm:$0xf0] }
 0x810   :  { %4533 = vmatmul.bf16.gmra.mxu3 %v4424_v29  ;;  %v7767_v29 = vor.u32 %v8584_v7, %v7764_v45  ;;  %v7818_v7 = vld [vmem:[#allocation2 + $0x8e8] sm:$0xf] }
 0x812   :  { %4820 = vmatmul.bf16.gmra.mxu1 %v7751_v37  ;;  %4874 = vmatmul.bf16.gmra.mxu2 %v7771_v20  ;;  %v7803_v37 = vor.u32 %v8595_v34, %v7802_v25  ;;  %v8603_v34 = vld [vmem:[#allocation5 + $0x218] sm:$0xff] }
 0x81f   :  { %4776 = vmatmul.bf16.gmra.mxu0 %v7763_v24  ;;  %v8599_v24 = vld [vmem:[#allocation2 + $0x8f4] sm:$0xf0] }
 0x820   :  { %4903 = vmatmul.bf16.vlgmr.msra.gmra.mxu3 %v7711_v62  ;;  %v7779_v62 = vor.u32 %v8590_v41, %v7778_v15  ;;  %v8607_v41 = vld [vmem:[#allocation5 + $0x238] sm:$0xff] }
 0x821   :  { %5017 = vmatpush.bf16.msrb.mxu0 %v8607_v41 }
 0x822   :  { %4825 = vmatmul.bf16.gmra.mxu1 %v7767_v29  ;;  %4879 = vmatmul.bf16.gmra.mxu2 %v7787_v54  ;;  %v7819_v29 = vor.u32 %v8599_v24, %v7818_v7 }
 0x823   :  { %v4499_v33 = vpop.f32.mrf.mxu3 }
 0x824   :  { %v10320_v50 = vadd.f32 %v4499_v33, %v10268_v0  ;;  %v7780_v33 = vld [vmem:[#allocation2 + $0x8b0] sm:$0xf0] }
 0x825   :  { %v7783_v13 = vor.u32 %v8588_v23, %v7780_v33  ;;  %v8606_v23 = vld [vmem:[#allocation5 + $0x230] sm:$0xff]  ;;  %v8605_v33 = vld [vmem:[#allocation5 + $0x228] sm:$0xff] }
 0x826   :  { %5018 = vmatpush.bf16.msrb.mxu0 %v8606_v23 }
 0x82a   :  { %5019 = vmatpush.bf16.msrb.mxu0 %v8605_v33 }
 0x82b   :  { %v4501_v6 = vpop.f32.mrf.mxu3 }
 0x82c   :  { %v10323_v40 = vadd.f32 %v4501_v6, %v10271_v63  ;;  %v8577_v63 = vld [vmem:[#allocation2 + $0x84c] sm:$0xf]  ;;  %v8592_v6 = vld [vmem:[#allocation2 + $0x8c4] sm:$0xf] }
 0x82d   :  { %v7743_v21 = vor.u32 %v8577_v63, %v7740_v16  ;;  %v7810_v63 = vld [vmem:[#allocation2 + $0x8e0] sm:$0xf]  ;;  %v8598_v16 = vld [vmem:[#allocation2 + $0x8ec] sm:$0xf0] }
 0x82f   :  { %4781 = vmatmul.bf16.gmra.mxu0 %v7779_v62 }
 0x830   :  { %4908 = vmatmul.bf16.gmra.mxu3 %v7727_v55  ;;  %v7795_v55 = vor.u32 %v8594_v12, %v7794_v18  ;;  %v8602_v12 = vld [vmem:[#allocation5 + $0x210] sm:$0xff] }
 0x832   :  { %4830 = vmatmul.bf16.gmra.mxu1 %v7783_v13  ;;  %4884 = vmatmul.bf16.gmra.mxu2 %v7803_v37  ;;  %v8593_v13 = vld [vmem:[#allocation2 + $0x8cc] sm:$0xf] }
 0x833   :  { %v4504_v0 = vpop.f32.mrf.mxu3 }
 0x834   :  { %v10326_v32 = vadd.f32 %v4504_v0, %v10274_v19  ;;  %v7796_v0 = vld [vmem:[#allocation2 + $0x8d0] sm:$0xf0] }
 0x835   :  { %v7799_v57 = vor.u32 %v8592_v6, %v7796_v0  ;;  %v8601_v6 = vld [vmem:[#allocation5 + $0x208] sm:$0xff] }
 0x83b   :  { %v4506_v59 = vpop.f32.mrf.mxu3 }
 0x83c   :  { %v10329_v53 = vadd.f32 %v4506_v59, %v10277_v39  ;;  %v8581_v39 = vld [vmem:[#allocation2 + $0x86c] sm:$0xf]  ;;  %v8596_v59 = vld [vmem:[#allocation2 + $0x8e4] sm:$0xf] }
 0x83d   :  { %v7759_v10 = vor.u32 %v8581_v39, %v7756_v36  ;;  %v7804_v39 = vld [vmem:[#allocation2 + $0x8d8] sm:$0xf0] }
 0x83f   :  { %4786 = vmatmul.bf16.gmra.mxu0 %v7795_v55 }
 0x840   :  { %4913 = vmatmul.bf16.gmra.mxu3 %v7743_v21  ;;  %v7811_v21 = vor.u32 %v8598_v16, %v7810_v63 }
 0x842   :  { %4835 = vmatmul.bf16.gmra.mxu1 %v7799_v57  ;;  %4889 = vmatmul.bf16.gmra.mxu2 %v7819_v29  ;;  %v8597_v57 = vld [vmem:[#allocation2 + $0x8ec] sm:$0xf] }
 0x843   :  { %v4509_v19 = vpop.f32.mrf.mxu3 }
 0x844   :  { %v10332_v46 = vadd.f32 %v4509_v19, %v10280_v61  ;;  %v7812_v19 = vld [vmem:[#allocation2 + $0x8f0] sm:$0xf0] }
 0x845   :  { %v7815_v38 = vor.u32 %v8596_v59, %v7812_v19 }
 0x84b   :  { %v4511_v14 = vpop.f32.mrf.mxu3 }
 0x84c   :  { %v10335_v27 = vadd.f32 %v4511_v14, %v10283_v60  ;;  %v8585_v60 = vld [vmem:[#allocation2 + $0x88c] sm:$0xf]  ;;  %v8604_v14 = vld [vmem:[#allocation5 + $0x220] sm:$0xff] }
 0x84d   :  { %v7775_v11 = vor.u32 %v8585_v60, %v7772_v48  ;;  %5020 = vmatpush.bf16.msrb.mxu0 %v8604_v14  ;;  %v7820_v60 = vld [vmem:[#allocation2 + $0x8f8] sm:$0xf0] }
 0x84f   :  { %4791 = vmatmul.bf16.gmra.mxu0 %v7811_v21  ;;  %v4806_v25 = vpop.f32.mrf.mxu1 }
 0x850   :  { %4918 = vmatmul.bf16.gmra.mxu3 %v7759_v10  ;;  %v7807_v10 = vor.u32 %v8593_v13, %v7804_v39 }
 0x851   :  { %v4855_v37 = vpop.f32.mrf.mxu2  ;;  %5021 = vmatpush.bf16.msrb.mxu0 %v8603_v34 }
 0x852   :  { %4840 = vmatmul.bf16.gmra.mxu1 %v7815_v38 }
 0x853   :  { %v4514_v61 = vpop.f32.mrf.mxu3 }
 0x854   :  { %v10338_v2 = vadd.f32 %v4514_v61, %v10286_v35  ;;  %v4757_v61 = vpop.f32.mrf.mxu0 }
 0x855   :  { %5022 = vmatpush.bf16.msrb.mxu0 %v8602_v12 }
 0x857   :  { %v4808_v0 = vpop.f32.mrf.mxu1 }
 0x859   :  { %5023 = vmatpush.bf16.msrb.mxu0 %v8601_v6 }
 0x85b   :  { %v4516_v20 = vpop.f32.mrf.mxu3 }
 0x85c   :  { %v10341_v22 = vadd.f32 %v4516_v20, %v10289_v58  ;;  %v8589_v58 = vld [vmem:[#allocation2 + $0x8ac] sm:$0xf]  ;;  %v4759_v55 = vpop.f32.mrf.mxu0  ;;  %v4857_v20 = vpop.f32.mrf.mxu2 }
 0x85d   :  { %v7791_v15 = vor.u32 %v8589_v58, %v7788_v47  ;;  %v4807_v58 = vadd.f32 %v4806_v25, %v4757_v61  ;;  %v4809_v41 = vadd.f32 %v4808_v0, %v4759_v55 }
 0x85f   :  { %v4858_v33 = vadd.f32 %v4857_v20, %v4809_v41 }
 0x860   :  { %4923 = vmatmul.bf16.gmra.mxu3 %v7775_v11  ;;  %v8600_v11 = vld [vmem:[#allocation5 + $0x200] sm:$0xff] }
 0x861   :  { %5024 = vmatpush.bf16.msrb.mxu0 %v8600_v11 }
 0x863   :  { %v4519_v35 = vpop.f32.mrf.mxu3 }
 0x864   :  { %v10344_v45 = vadd.f32 %v4519_v35, %v10292_v43  ;;  %v7823_v35 = vor.u32 %v8597_v57, %v7820_v60  ;;  %v4860_v63 = vpop.f32.mrf.mxu2 }
 0x86b   :  { %v10346_v54 = vpop.f32.mrf.mxu3 }
 0x86c   :  { %v4762_v7 = vpop.f32.mrf.mxu0  ;;  %v4862_v19 = vpop.f32.mrf.mxu2 }
 0x86f   :  { %v4811_v24 = vpop.f32.mrf.mxu1 }
 0x870   :  { %4928 = vmatmul.bf16.gmra.mxu3 %v7791_v15  ;;  %v4812_v6 = vadd.f32 %v4811_v24, %v4762_v7 }
 0x872   :  { %v4861_v60 = vadd.f32 %v4860_v63, %v4812_v6 }
 0x873   :  { %v4524_v43 = vpop.f32.mrf.mxu3 }
 0x874   :  { %v10349_v62 = vadd.f32 %v4524_v43, %v10297_v52  ;;  %v4764_v16 = vpop.f32.mrf.mxu0  ;;  %v4856_v43 = vadd.f32 %v4855_v37, %v4807_v58  ;;  %v4865_v23 = vpop.f32.mrf.mxu2 }
 0x877   :  { %v4813_v21 = vpop.f32.mrf.mxu1 }
 0x878   :  { %v4814_v57 = vadd.f32 %v4813_v21, %v4764_v16 }
 0x87a   :  { %v4863_v25 = vadd.f32 %v4862_v19, %v4814_v57 }
 0x87b   :  { %v10351_v36 = vpop.f32.mrf.mxu3 }
 0x87c   :  { %v4767_v47 = vpop.f32.mrf.mxu0  ;;  %v4867_v12 = vpop.f32.mrf.mxu2 }
 0x87f   :  { %v4816_v15 = vpop.f32.mrf.mxu1 }
 0x880   :  { %4933 = vmatmul.bf16.gmra.mxu3 %v7807_v10  ;;  %v4817_v41 = vadd.f32 %v4816_v15, %v4767_v47 }
 0x883   :  { %v4529_v18 = vpop.f32.mrf.mxu3 }
 0x884   :  { %v10354_v52 = vadd.f32 %v4529_v18, %v10302_v26 }
 0x885   :  { %v4870_v0 = vpop.f32.mrf.mxu2 }
 0x887   :  { %v4818_v34 = vpop.f32.mrf.mxu1 }
 0x88b   :  { %v10356_v48 = vpop.f32.mrf.mxu3 }
 0x88f   :  { %v4821_v61 = vpop.f32.mrf.mxu1 }
 0x890   :  { %4938 = vmatmul.bf16.gmra.mxu3 %v7823_v35 }
 0x893   :  { %v4534_v29 = vpop.f32.mrf.mxu3 }
 0x894   :  { %v10359_v26 = vadd.f32 %v4534_v29, %v10309_v30  ;;  %v4769_v30 = vpop.f32.mrf.mxu0 }
 0x897   :  { %v4823_v58 = vpop.f32.mrf.mxu1 }
 0x89b   :  { %v10361_v59 = vpop.f32.mrf.mxu3 }
 0x89c   :  { %v4772_v11 = vpop.f32.mrf.mxu0 }
 0x89f   :  { %v4826_v21 = vpop.f32.mrf.mxu1 }
 0x8a3   :  { %v4904_v38 = vpop.f32.mrf.mxu3 }
 0x8a4   :  { %v4905_v39 = vadd.f32 %v4904_v38, %v4856_v43  ;;  %v4774_v29 = vpop.f32.mrf.mxu0  ;;  %v4819_v43 = vadd.f32 %v4818_v34, %v4769_v30 }
 0x8a5   :  { %v4824_v6 = vadd.f32 %v4823_v58, %v4774_v29 }
 0x8ab   :  { %v4906_v13 = vpop.f32.mrf.mxu3 }
 0x8ac   :  { %v4907_v14 = vadd.f32 %v4906_v13, %v4858_v33  ;;  %v4872_v33 = vpop.f32.mrf.mxu2  ;;  %v4866_v13 = vadd.f32 %v4865_v23, %v4817_v41  ;;  %v4777_v16 = vpop.f32.mrf.mxu0 }
 0x8ae   :  { %v4944_v10 = vpack.c.bf16 %v4907_v14, %v4905_v39  ;;  %v4868_v39 = vadd.f32 %v4867_v12, %v4819_v43 }
 0x8b0   :  { %5025 = vmatmul.bf16.vlgmr.msrb.gmra.mxu0 %v4944_v10 }
 0x8b3   :  { %v4909_v18 = vpop.f32.mrf.mxu3 }
 0x8b4   :  { %v4910_v55 = vadd.f32 %v4909_v18, %v4861_v60  ;;  %v4875_v14 = vpop.f32.mrf.mxu2  ;;  %v4822_v18 = vadd.f32 %v4821_v61, %v4772_v11  ;;  %v4779_v57 = vpop.f32.mrf.mxu0 }
 0x8b5   :  { %v4828_v60 = vpop.f32.mrf.mxu1 }
 0x8b6   :  { %v4829_v41 = vadd.f32 %v4828_v60, %v4779_v57 }
 0x8bb   :  { %v4911_v35 = vpop.f32.mrf.mxu3 }
 0x8bc   :  { %v4912_v37 = vadd.f32 %v4911_v35, %v4863_v25  ;;  %v4871_v25 = vadd.f32 %v4870_v0, %v4822_v18  ;;  %v4873_v35 = vadd.f32 %v4872_v33, %v4824_v6  ;;  %v4877_v15 = vpop.f32.mrf.mxu2  ;;  %v4782_v12 = vpop.f32.mrf.mxu0 }
 0x8be   :  { %v4945_v20 = vpack.c.bf16 %v4912_v37, %v4910_v55  ;;  %v4831_v55 = vpop.f32.mrf.mxu1 }
 0x8c0   :  { %5030 = vmatmul.bf16.gmra.mxu0 %v4945_v20  ;;  %v4827_v20 = vadd.f32 %v4826_v21, %v4777_v16 }
 0x8c2   :  { %v4876_v43 = vadd.f32 %v4875_v14, %v4827_v20 }
 0x8c3   :  { %v4914_v38 = vpop.f32.mrf.mxu3 }
 0x8c4   :  { %v4915_v24 = vadd.f32 %v4914_v38, %v4866_v13  ;;  %v4880_v38 = vpop.f32.mrf.mxu2  ;;  %v4878_v13 = vadd.f32 %v4877_v15, %v4829_v41  ;;  %v4784_v11 = vpop.f32.mrf.mxu0 }
 0x8c6   :  { %v4833_v29 = vpop.f32.mrf.mxu1 }
 0x8cb   :  { %v4916_v7 = vpop.f32.mrf.mxu3 }
 0x8cc   :  { %v4917_v63 = vadd.f32 %v4916_v7, %v4868_v39  ;;  %v4882_v39 = vpop.f32.mrf.mxu2 }
 0x8ce   :  { %v4946_v19 = vpack.c.bf16 %v4917_v63, %v4915_v24  ;;  %v4832_v24 = vadd.f32 %v4831_v55, %v4782_v12  ;;  %v4787_v63 = vpop.f32.mrf.mxu0 }
 0x8d0   :  { %5035 = vmatmul.bf16.gmra.mxu0 %v4946_v19  ;;  %v4836_v19 = vpop.f32.mrf.mxu1  ;;  %v4881_v18 = vadd.f32 %v4880_v38, %v4832_v24 }
 0x8d3   :  { %v4919_v10 = vpop.f32.mrf.mxu3 }
 0x8d4   :  { %v4920_v30 = vadd.f32 %v4919_v10, %v4871_v25  ;;  %v4834_v10 = vadd.f32 %v4833_v29, %v4784_v11  ;;  %v4885_v6 = vpop.f32.mrf.mxu2 }
 0x8d6   :  { %v4883_v16 = vadd.f32 %v4882_v39, %v4834_v10  ;;  %v4789_v25 = vpop.f32.mrf.mxu0 }
 0x8db   :  { %v4921_v47 = vpop.f32.mrf.mxu3 }
 0x8dc   :  { %v4922_v23 = vadd.f32 %v4921_v47, %v4873_v35  ;;  %v4838_v35 = vpop.f32.mrf.mxu1  ;;  %v4887_v47 = vpop.f32.mrf.mxu2 }
 0x8de   :  { %v4947_v34 = vpack.c.bf16 %v4922_v23, %v4920_v30  ;;  %v4837_v30 = vadd.f32 %v4836_v19, %v4787_v63  ;;  %v4839_v23 = vadd.f32 %v4838_v35, %v4789_v25 }
 0x8e0   :  { %5040 = vmatmul.bf16.gmra.mxu0 %v4947_v34  ;;  %v4886_v34 = vadd.f32 %v4885_v6, %v4837_v30  ;;  %v4888_v55 = vadd.f32 %v4887_v47, %v4839_v23 }
 0x8e3   :  { %v4924_v37 = vpop.f32.mrf.mxu3 }
 0x8e4   :  { %v4925_v58 = vadd.f32 %v4924_v37, %v4876_v43  ;;  %v4792_v37 = vpop.f32.mrf.mxu0  ;;  %v4841_v12 = vpop.f32.mrf.mxu1 }
 0x8e5   :  { %v4890_v43 = vpop.f32.mrf.mxu2 }
 0x8eb   :  { %v4926_v61 = vpop.f32.mrf.mxu3 }
 0x8ec   :  { %v4927_v0 = vadd.f32 %v4926_v61, %v4878_v13  ;;  %v4794_v11 = vpop.f32.mrf.mxu0  ;;  %v4843_v61 = vpop.f32.mrf.mxu1 }
 0x8ee   :  { %v4948_v33 = vpack.c.bf16 %v4927_v0, %v4925_v58  ;;  %v4842_v58 = vadd.f32 %v4841_v12, %v4792_v37  ;;  %v4844_v0 = vadd.f32 %v4843_v61, %v4794_v11 }
 0x8f0   :  { %5045 = vmatmul.bf16.gmra.mxu0 %v4948_v33  ;;  %v4892_v33 = vpop.f32.mrf.mxu2  ;;  %v4891_v39 = vadd.f32 %v4890_v43, %v4842_v58 }
 0x8f3   :  { %v4929_v7 = vpop.f32.mrf.mxu3 }
 0x8f4   :  { %v4930_v57 = vadd.f32 %v4929_v7, %v4881_v18  ;;  %v4893_v7 = vadd.f32 %v4892_v33, %v4844_v0 }
 0x8fb   :  { %v4931_v21 = vpop.f32.mrf.mxu3 }
 0x8fc   :  { %v4932_v14 = vadd.f32 %v4931_v21, %v4883_v16  ;;  %v10364_v16 = vld [vmem:[#allocation7] ss:$0 sm:$0xff] }
 0x8fe   :  { %v4949_v60 = vpack.c.bf16 %v4932_v14, %v4930_v57 }
 0x900   :  { %5050 = vmatmul.bf16.gmra.mxu0 %v4949_v60 }
 0x903   :  { %v4934_v15 = vpop.f32.mrf.mxu3 }
 0x904   :  { %v4935_v41 = vadd.f32 %v4934_v15, %v4886_v34 }
 0x90b   :  { %v4936_v20 = vpop.f32.mrf.mxu3 }
 0x90c   :  { %v4937_v38 = vadd.f32 %v4936_v20, %v4888_v55 }
 0x90e   :  { %v4950_v13 = vpack.c.bf16 %v4937_v38, %v4935_v41 }
 0x910   :  { %5055 = vmatmul.bf16.gmra.mxu0 %v4950_v13 }
 0x913   :  { %v4939_v29 = vpop.f32.mrf.mxu3 }
 0x914   :  { %v4940_v63 = vadd.f32 %v4939_v29, %v4891_v39 }
 0x91b   :  { %v4941_v24 = vpop.f32.mrf.mxu3 }
 0x91c   :  { %v4942_v19 = vadd.f32 %v4941_v24, %v4893_v7 }
 0x91e   :  { %v4951_v10 = vpack.c.bf16 %v4942_v19, %v4940_v63 }
 0x920   :  { %5060 = vmatmul.bf16.gmra.mxu0 %v4951_v10 }
 0x92d   :  { %v5026_v18 = vpop.f32.mrf.mxu0 }
 0x92e   :  { %v5066_v6 = vadd.f32 %v5026_v18, %v10320_v50 }
 0x930   :  { %v5086_v57 = vadd.f32 %v10364_v16, %v5066_v6 }
 0x932   :  { %v5102_v25 = vmax.f32 %v5086_v57, 0.0 }
 0x935   :  { %v5028_v21 = vpop.f32.mrf.mxu0 }
 0x936   :  { %v5067_v14 = vadd.f32 %v5028_v21, %v10323_v40 }
 0x938   :  { %v5087_v60 = vadd.f32 %v10364_v16, %v5067_v14  ;;  %v10564_v14 = vld [vmem:[#allocation24_spill] sm:$0xff] }
 0x93a   :  { %v5103_v35 = vmax.f32 %v5087_v60, 0.0  ;;  %v10565_v60 = vld [vmem:[#allocation23_spill] sm:$0xff] }
 0x93c   :  { %v10369_v47 = vpack.c.bf16 %v5103_v35, %v5102_v25  ;;  %v10566_v25 = vld [vmem:[#allocation27_spill] sm:$0xff] }
 0x93d   :  { %v5031_v15 = vpop.f32.mrf.mxu0 }
 0x93e   :  { %v5068_v30 = vadd.f32 %v5031_v15, %v10326_v32  ;;  %v10567_v15 = vld [vmem:[#allocation22_spill] sm:$0xff] }
 0x940   :  { %v5088_v34 = vadd.f32 %v10364_v16, %v5068_v30  ;;  %v10568_v30 = vld [vmem:[#allocation20_spill] sm:$0xff] }
 0x942   :  { %v5104_v12 = vmax.f32 %v5088_v34, 0.0  ;;  %v10569_v34 = vld [vmem:[#allocation28_spill] sm:$0xff] }
 0x945   :  { %v5033_v23 = vpop.f32.mrf.mxu0 }
 0x946   :  { %v5069_v50 = vadd.f32 %v5033_v23, %v10329_v53  ;;  %v1381_v23 = vadd.f32 %v10568_v30, %v10567_v15 }
 0x948   :  { %v5089_v37 = vadd.f32 %v10364_v16, %v5069_v50 }
 0x94a   :  { %v5105_v55 = vmax.f32 %v5089_v37, 0.0  ;;  %v10570_v37 = vld [vmem:[#allocation31_spill] sm:$0xff] }
 0x94c   :  { %v10375_v20 = vpack.c.bf16 %v5105_v55, %v5104_v12  ;;  %v10571_v12 = vld [vmem:[#allocation26_spill] sm:$0xff] }
 0x94d   :  { %v5036_v40 = vpop.f32.mrf.mxu0  ;;  %v1915_v55 = vadd.f32 %v10571_v12, %v1381_v23  ;;  %v8618_v12 = vld [vmem:[#allocation8 + $0x10] sm:$0xff] }
 0x94e   :  { %v5070_v41 = vadd.f32 %v5036_v40, %v10332_v46  ;;  %v10572_v40 = vld [vmem:[#allocation32_spill] sm:$0xff] }
 0x950   :  { %v5090_v43 = vadd.f32 %v10364_v16, %v5070_v41 }
 0x952   :  { %v5106_v11 = vmax.f32 %v5090_v43, 0.0  ;;  %v10573_v43 = vld [vmem:[#allocation21_spill] sm:$0xff] }
 0x955   :  { %v5038_v38 = vpop.f32.mrf.mxu0 }
 0x956   :  { %v5071_v13 = vadd.f32 %v5038_v38, %v10335_v27 }
 0x958   :  { %v5091_v32 = vadd.f32 %v10364_v16, %v5071_v13 }
 0x95a   :  { %v5107_v61 = vmax.f32 %v5091_v32, 0.0  ;;  %v10575_v32 = vld [vmem:[#allocation30_spill] sm:$0xff] }
 0x95c   :  { %v10381_v29 = vpack.c.bf16 %v5107_v61, %v5106_v11  ;;  %v2442_v11 = vadd.f32 %v10575_v32, %v1915_v55  ;;  %v8616_v55 = vld [vmem:[#allocation10 + $0x30] sm:$0xff]  ;;  %v8610_v32 = vld [vmem:[#allocation10] sm:$0xff] }
 0x95d   :  { %v5041_v53 = vpop.f32.mrf.mxu0 }
 0x95e   :  { %v5072_v58 = vadd.f32 %v5041_v53, %v10338_v2  ;;  %v1386_v2 = vadd.f32 %v9597_v44, %v9605_v5  ;;  %v10574_v44 = vld [vmem:[#allocation19_spill] sm:$0xff] }
 0x95f   :  { %v1376_v5 = vadd.f32 %v10574_v44, %v10573_v43  ;;  %v8609_v43 = vld [vmem:[#allocation8 + $0x8] sm:$0xff]  ;;  %v8619_v44 = vld [vmem:[#allocation8 + $0x18] sm:$0xff] }
 0x960   :  { %v5092_v33 = vadd.f32 %v10364_v16, %v5072_v58  ;;  %v1917_v35 = vadd.f32 %v10566_v25, %v1386_v2  ;;  %v10576_v58 = vld [vmem:[#allocation25_spill] sm:$0xff] }
 0x962   :  { %v5108_v7 = vmax.f32 %v5092_v33, 0.0  ;;  %v2969_v33 = vadd.f32 %v10067_v49, %v2442_v11  ;;  %v8647_v11 = vld [vmem:[#allocation10 + $0xf8] sm:$0xff] }
 0x965   :  { %v5043_v0 = vpop.f32.mrf.mxu0 }
 0x966   :  { %v5073_v39 = vadd.f32 %v5043_v0, %v10341_v22  ;;  %v1391_v22 = vadd.f32 %v10565_v60, %v10564_v14  ;;  %v1913_v0 = vadd.f32 %v10576_v58, %v1376_v5  ;;  %v8612_v5 = vld [vmem:[#allocation10 + $0x10] sm:$0xff]  ;;  %v8645_v58 = vld [vmem:[#allocation10 + $0xe8] sm:$0xff] }
 0x968   :  { %v5093_v46 = vadd.f32 %v10364_v16, %v5073_v39  ;;  %v1919_v50 = vadd.f32 %v10569_v34, %v1391_v22 }
 0x96a   :  { %v5109_v24 = vmax.f32 %v5093_v46, 0.0  ;;  %v2446_v41 = vadd.f32 %v10572_v40, %v1919_v50  ;;  %v8615_v40 = vld [vmem:[#allocation10 + $0x28] sm:$0xff] }
 0x96c   :  { %v10387_v63 = vpack.c.bf16 %v5109_v24, %v5108_v7  ;;  %v2973_v61 = vadd.f32 %v10081_v56, %v2446_v41  ;;  %v10577_v7 = vld [vmem:[#allocation29_spill] sm:$0xff]  ;;  %v3496_v24 = vadd.f32 %v10199_v8, %v2969_v33  ;;  %v8614_v41 = vld [vmem:[#allocation10 + $0x20] sm:$0xff] }
 0x96d   :  { %v5046_v27 = vpop.f32.mrf.mxu0  ;;  %v8643_v33 = vld [vmem:[#allocation10 + $0xd8] sm:$0xff] }
 0x96e   :  { %v5074_v19 = vadd.f32 %v5046_v27, %v10344_v45  ;;  %v2444_v45 = vadd.f32 %v10570_v37, %v1917_v35  ;;  %v3500_v39 = vadd.f32 %v10233_v1, %v2973_v61  ;;  %v4023_v14 = vadd.f32 %v10299_v9, %v3496_v24  ;;  %v8646_v61 = vld [vmem:[#allocation10 + $0xf0] sm:$0xff]  ;;  %v8640_v24 = vld [vmem:[#allocation10 + $0xc0] sm:$0xff] }
 0x970   :  { %v2971_v38 = vadd.f32 %v10072_v51, %v2444_v45  ;;  %v2440_v51 = vadd.f32 %v10577_v7, %v1913_v0  ;;  %v4027_v27 = vadd.f32 %v10313_v17, %v3500_v39  ;;  %v4550_v22 = vadd.f32 %v10351_v36, %v4023_v14  ;;  %v8644_v0 = vld [vmem:[#allocation10 + $0xe0] sm:$0xff]  ;;  %v8642_v39 = vld [vmem:[#allocation10 + $0xd0] sm:$0xff]  ;;  %v8641_v7 = vld [vmem:[#allocation10 + $0xc8] sm:$0xff] }
 0x971   :  { %v8622_v14 = vld [vmem:[#allocation10 + $0x50] sm:$0xff] }
 0x972   :  { %v3498_v53 = vadd.f32 %v10204_v3, %v2971_v38  ;;  %v2967_v3 = vadd.f32 %v10062_v4, %v2440_v51  ;;  %v4554_v49 = vadd.f32 %v10361_v59, %v4027_v27  ;;  %v8613_v38 = vld [vmem:[#allocation10 + $0x18] sm:$0xff]  ;;  %v8626_v27 = vld [vmem:[#allocation10 + $0x70] sm:$0xff] }
 0x973   :  { %v8627_v51 = vld [vmem:[#allocation10 + $0x78] sm:$0xff] }
 0x974   :  { %v4025_v46 = vadd.f32 %v10304_v31, %v3498_v53  ;;  %v3494_v1 = vadd.f32 %v10194_v28, %v2967_v3  ;;  %v8628_v53 = vld [vmem:[#allocation8 + $0x20] sm:$0xff]  ;;  %5282 = vmatpush.bf16.msrb.mxu3 %v8627_v51  ;;  %v8623_v3 = vld [vmem:[#allocation10 + $0x58] sm:$0xff] }
 0x975   :  { %v5048_v10 = vpop.f32.mrf.mxu0  ;;  %v8653_v51 = vld [vmem:[#allocation10 + $0x118] sm:$0xff] }
 0x976   :  { %v4552_v2 = vadd.f32 %v10356_v48, %v4025_v46  ;;  %v4021_v48 = vadd.f32 %v10294_v42, %v3494_v1  ;;  %v8629_v46 = vld [vmem:[#allocation8 + $0x28] sm:$0xff] }
 0x977   :  { %v8637_v1 = vld [vmem:[#allocation10 + $0xb8] sm:$0xff] }
 0x978   :  { %v4548_v59 = vadd.f32 %v10346_v54, %v4021_v48  ;;  %5283 = vmatpush.bf16.msrb.mxu3 %v8626_v27  ;;  %v8631_v48 = vld [vmem:[#allocation10 + $0x88] sm:$0xff] }
 0x97a   :  { %v5075_v15 = vadd.f32 %v5048_v10, %v4548_v59  ;;  %v5094_v10 = vadd.f32 %v10364_v16, %v5074_v19  ;;  %v8608_v19 = vld [vmem:[#allocation8] sm:$0xff] }
 0x97c   :  { %v5095_v54 = vadd.f32 %v10364_v16, %v5075_v15  ;;  %v5110_v37 = vmax.f32 %v5094_v10, 0.0 }
 0x97d   :  { %v5051_v18 = vpop.f32.mrf.mxu0 }
 0x97e   :  { %v5111_v34 = vmax.f32 %v5095_v54, 0.0 }
 0x980   :  { %v10448_v45 = vpack.c.bf16 %v5111_v34, %v5110_v37  ;;  %v8639_v37 = vld [vmem:[#allocation8 + $0x38] sm:$0xff] }
 0x985   :  { %v5053_v6 = vpop.f32.mrf.mxu0 }
 0x98d   :  { %v5056_v21 = vpop.f32.mrf.mxu0 }
 0x98e   :  { %v5078_v8 = vadd.f32 %v5056_v21, %v10354_v52 }
 0x990   :  { %v5098_v28 = vadd.f32 %v10364_v16, %v5078_v8  ;;  %v8634_v8 = vld [vmem:[#allocation10 + $0xa0] sm:$0xff] }
 0x995   :  { %v5058_v57 = vpop.f32.mrf.mxu0 }
 0x996   :  { %v5079_v60 = vadd.f32 %v5058_v57, %v4552_v2  ;;  %v5076_v57 = vadd.f32 %v5051_v18, %v10349_v62  ;;  %v8625_v2 = vld [vmem:[#allocation10 + $0x68] sm:$0xff] }
 0x997   :  { %5284 = vmatpush.bf16.msrb.mxu3 %v8625_v2  ;;  %v8652_v2 = vld [vmem:[#allocation10 + $0x110] sm:$0xff] }
 0x998   :  { %v5099_v4 = vadd.f32 %v10364_v16, %v5079_v60  ;;  %v5096_v42 = vadd.f32 %v10364_v16, %v5076_v57  ;;  %v8620_v60 = vld [vmem:[#allocation10 + $0x40] sm:$0xff] }
 0x99a   :  { %v5115_v21 = vmax.f32 %v5099_v4, 0.0  ;;  %v5112_v23 = vmax.f32 %v5096_v42, 0.0 }
 0x99d   :  { %v5061_v13 = vpop.f32.mrf.mxu0 }
 0x99e   :  { %v5080_v56 = vadd.f32 %v5061_v13, %v10359_v26  ;;  %v5077_v26 = vadd.f32 %v5053_v6, %v4550_v22  ;;  %v5114_v6 = vmax.f32 %v5098_v28, 0.0  ;;  %v8611_v13 = vld [vmem:[#allocation10 + $0x8] sm:$0xff] }
 0x99f   :  { %v8635_v22 = vld [vmem:[#allocation10 + $0xa8] sm:$0xff] }
 0x9a0   :  { %v5100_v17 = vadd.f32 %v10364_v16, %v5080_v56  ;;  %v5097_v52 = vadd.f32 %v10364_v16, %v5077_v26  ;;  %v10437_v18 = vpack.c.bf16 %v5115_v21, %v5114_v6  ;;  %v8624_v56 = vld [vmem:[#allocation10 + $0x60] sm:$0xff] }
 0x9a1   :  { %5285 = vmatpush.bf16.msrb.mxu3 %v8624_v56  ;;  %v8630_v26 = vld [vmem:[#allocation10 + $0x80] sm:$0xff] }
 0x9a2   :  { %v5116_v35 = vmax.f32 %v5100_v17, 0.0  ;;  %v5113_v62 = vmax.f32 %v5097_v52, 0.0  ;;  %v8633_v17 = vld [vmem:[#allocation10 + $0x98] sm:$0xff] }
 0x9a4   :  { %v10443_v50 = vpack.c.bf16 %v5113_v62, %v5112_v23  ;;  %v8638_v62 = vld [vmem:[#allocation8 + $0x30] sm:$0xff] }
 0x9a5   :  { %v5063_v31 = vpop.f32.mrf.mxu0  ;;  %5286 = vmatpush.bf16.msrb.mxu3 %v8623_v3 }
 0x9a6   :  { %v5081_v25 = vadd.f32 %v5063_v31, %v4554_v49  ;;  %v8621_v49 = vld [vmem:[#allocation10 + $0x48] sm:$0xff]  ;;  %v8636_v31 = vld [vmem:[#allocation10 + $0xb0] sm:$0xff] }
 0x9a8   :  { %v5101_v9 = vadd.f32 %v10364_v16, %v5081_v25  ;;  %v8617_v16 = vld [vmem:[#allocation10 + $0x38] sm:$0xff]  ;;  %v8632_v25 = vld [vmem:[#allocation10 + $0x90] sm:$0xff] }
 0x9a9   :  { %5287 = vmatpush.bf16.msrb.mxu3 %v8622_v14  ;;  %v8651_v14 = vld [vmem:[#allocation10 + $0x108] sm:$0xff] }
 0x9aa   :  { %v5117_v36 = vmax.f32 %v5101_v9, 0.0 }
 0x9ac   :  { %v10430_v30 = vpack.c.bf16 %v5117_v36, %v5116_v35 }
 0x9ad   :  { %5288 = vmatpush.bf16.msrb.mxu3 %v8621_v49 }
 0x9ae   :  { %5142 = vmatpush.bf16.msrb.mxu1 %v10430_v30  ;;  %5196 = vmatpush.bf16.msrb.mxu2 %v10430_v30 }
 0x9af   :  { %5889 = vmatpush.bf16.msra.mxu0 %v10430_v30 }
 0x9b1   :  { %5289 = vmatpush.bf16.msrb.mxu3 %v8620_v60  ;;  %v8650_v60 = vld [vmem:[#allocation10 + $0x100] sm:$0xff] }
 0x9b2   :  { %5143 = vmatpush.bf16.msrb.mxu1 %v10437_v18  ;;  %5197 = vmatpush.bf16.msrb.mxu2 %v10437_v18 }
 0x9b3   :  { %5890 = vmatpush.bf16.msra.mxu0 %v10437_v18 }
 0x9b5   :  { %5471 = vmatpush.bf16.msra.mxu3 %v8637_v1 }
 0x9b6   :  { %5144 = vmatpush.bf16.msrb.mxu1 %v10443_v50  ;;  %5198 = vmatpush.bf16.msrb.mxu2 %v10443_v50 }
 0x9b7   :  { %5891 = vmatpush.bf16.msra.mxu0 %v10443_v50 }
 0x9b9   :  { %5472 = vmatpush.bf16.msra.mxu3 %v8636_v31 }
 0x9ba   :  { %5145 = vmatpush.bf16.msrb.mxu1 %v10448_v45  ;;  %5199 = vmatpush.bf16.msrb.mxu2 %v10448_v45 }
 0x9bb   :  { %5892 = vmatpush.bf16.msra.mxu0 %v10448_v45 }
 0x9bd   :  { %5473 = vmatpush.bf16.msra.mxu3 %v8635_v22 }
 0x9be   :  { %5146 = vmatpush.bf16.msrb.mxu1 %v10387_v63  ;;  %5200 = vmatpush.bf16.msrb.mxu2 %v10387_v63 }
 0x9bf   :  { %5893 = vmatpush.bf16.msra.mxu0 %v10387_v63 }
 0x9c1   :  { %5474 = vmatpush.bf16.msra.mxu3 %v8634_v8  ;;  %v8668_v8 = vld [vmem:[#allocation8 + $0x60] sm:$0xff] }
 0x9c2   :  { %5147 = vmatpush.bf16.msrb.mxu1 %v10381_v29  ;;  %5201 = vmatpush.bf16.msrb.mxu2 %v10381_v29 }
 0x9c3   :  { %5894 = vmatpush.bf16.msra.mxu0 %v10381_v29 }
 0x9c5   :  { %5475 = vmatpush.bf16.msra.mxu3 %v8633_v17 }
 0x9c6   :  { %5148 = vmatpush.bf16.msrb.mxu1 %v10375_v20  ;;  %5202 = vmatpush.bf16.msrb.mxu2 %v10375_v20 }
 0x9c7   :  { %5895 = vmatpush.bf16.msra.mxu0 %v10375_v20 }
 0x9c9   :  { %5476 = vmatpush.bf16.msra.mxu3 %v8632_v25 }
 0x9ca   :  { %5149 = vmatpush.bf16.msrb.mxu1 %v10369_v47  ;;  %5203 = vmatpush.bf16.msrb.mxu2 %v10369_v47 }
 0x9cb   :  { %5896 = vmatpush.bf16.msra.mxu0 %v10369_v47 }
 0x9cd   :  { %5150 = vmatmul.bf16.vlgmr.msrb.gmra.mxu1 %v8608_v19  ;;  %5204 = vmatmul.bf16.vlgmr.msrb.gmra.mxu2 %v8618_v12  ;;  %v8648_v12 = vld [vmem:[#allocation8 + $0x40] sm:$0xff] }
 0x9ce   :  { %5349 = vmatpush.bf16.msra.mxu1 %v8617_v16  ;;  %5385 = vmatpush.bf16.msra.mxu2 %v10430_v30 }
 0x9cf   :  { %6141 = vmatpush.bf16.msrb.mxu0 %v10430_v30  ;;  %5477 = vmatpush.bf16.msra.mxu3 %v8631_v48 }
 0x9d0   :  { %5897 = vmatmul.bf16.vlgmr.msra.gmra.mxu0 %v8668_v8  ;;  %v8692_v8 = vld [vmem:[#allocation10 + $0x210] sm:$0xff] }
 0x9d2   :  { %5350 = vmatpush.bf16.msra.mxu1 %v8616_v55  ;;  %5386 = vmatpush.bf16.msra.mxu2 %v10437_v18  ;;  %v8649_v55 = vld [vmem:[#allocation8 + $0x48] sm:$0xff] }
 0x9d3   :  { %6142 = vmatpush.bf16.msrb.mxu0 %v10437_v18  ;;  %5478 = vmatpush.bf16.msra.mxu3 %v8630_v26 }
 0x9d6   :  { %5351 = vmatpush.bf16.msra.mxu1 %v8615_v40  ;;  %5387 = vmatpush.bf16.msra.mxu2 %v10443_v50 }
 0x9d7   :  { %6143 = vmatpush.bf16.msrb.mxu0 %v10443_v50 }
 0x9da   :  { %5352 = vmatpush.bf16.msra.mxu1 %v8614_v41  ;;  %5388 = vmatpush.bf16.msra.mxu2 %v10448_v45 }
 0x9db   :  { %6144 = vmatpush.bf16.msrb.mxu0 %v10448_v45 }
 0x9dd   :  { %5155 = vmatmul.bf16.gmra.mxu1 %v8609_v43  ;;  %5209 = vmatmul.bf16.gmra.mxu2 %v8619_v44 }
 0x9de   :  { %5353 = vmatpush.bf16.msra.mxu1 %v8613_v38  ;;  %5389 = vmatpush.bf16.msra.mxu2 %v10387_v63 }
 0x9df   :  { %6145 = vmatpush.bf16.msrb.mxu0 %v10387_v63 }
 0x9e2   :  { %5354 = vmatpush.bf16.msra.mxu1 %v8612_v5  ;;  %5390 = vmatpush.bf16.msra.mxu2 %v10381_v29 }
 0x9e3   :  { %6146 = vmatpush.bf16.msrb.mxu0 %v10381_v29 }
 0x9e6   :  { %5355 = vmatpush.bf16.msra.mxu1 %v8611_v13  ;;  %5391 = vmatpush.bf16.msra.mxu2 %v10375_v20 }
 0x9e7   :  { %6147 = vmatpush.bf16.msrb.mxu0 %v10375_v20 }
 0x9ea   :  { %5356 = vmatpush.bf16.msra.mxu1 %v8610_v32  ;;  %5392 = vmatpush.bf16.msra.mxu2 %v10369_v47  ;;  %v8657_v32 = vld [vmem:[#allocation10 + $0x138] sm:$0xff] }
 0x9eb   :  { %6148 = vmatpush.bf16.msrb.mxu0 %v10369_v47 }
 0x9ed   :  { %5393 = vmatmul.bf16.vlgmr.msra.gmra.mxu2 %v8628_v53 }
 0x9ee   :  { %5511 = vmatpush.bf16.msrb.mxu1 %v10430_v30  ;;  %5597 = vmatpush.bf16.msrb.mxu2 %v8647_v11 }
 0x9f2   :  { %5512 = vmatpush.bf16.msrb.mxu1 %v10437_v18  ;;  %5598 = vmatpush.bf16.msrb.mxu2 %v8646_v61  ;;  %v8656_v61 = vld [vmem:[#allocation10 + $0x130] sm:$0xff] }
 0x9f6   :  { %5513 = vmatpush.bf16.msrb.mxu1 %v10443_v50  ;;  %5599 = vmatpush.bf16.msrb.mxu2 %v8645_v58 }
 0x9fa   :  { %5514 = vmatpush.bf16.msrb.mxu1 %v10448_v45  ;;  %5600 = vmatpush.bf16.msrb.mxu2 %v8644_v0  ;;  %v8655_v0 = vld [vmem:[#allocation10 + $0x128] sm:$0xff] }
 0x9fd   :  { %5398 = vmatmul.bf16.gmra.mxu2 %v8629_v46 }
 0x9fe   :  { %5515 = vmatpush.bf16.msrb.mxu1 %v10387_v63  ;;  %5601 = vmatpush.bf16.msrb.mxu2 %v8643_v33 }
 0xa02   :  { %5516 = vmatpush.bf16.msrb.mxu1 %v10381_v29  ;;  %5602 = vmatpush.bf16.msrb.mxu2 %v8642_v39  ;;  %v8654_v39 = vld [vmem:[#allocation10 + $0x120] sm:$0xff] }
 0xa06   :  { %5517 = vmatpush.bf16.msrb.mxu1 %v10375_v20  ;;  %5603 = vmatpush.bf16.msrb.mxu2 %v8641_v7 }
 0xa0a   :  { %5518 = vmatpush.bf16.msrb.mxu1 %v10369_v47  ;;  %5604 = vmatpush.bf16.msrb.mxu2 %v8640_v24 }
 0xa0e   :  { %5763 = vmatpush.bf16.msra.mxu2 %v10430_v30 }
 0xa12   :  { %5764 = vmatpush.bf16.msra.mxu2 %v10437_v18 }
 0xa16   :  { %5765 = vmatpush.bf16.msra.mxu2 %v10443_v50 }
 0xa1a   :  { %5766 = vmatpush.bf16.msra.mxu2 %v10448_v45 }
 0xa1e   :  { %5767 = vmatpush.bf16.msra.mxu2 %v10387_v63 }
 0xa22   :  { %5768 = vmatpush.bf16.msra.mxu2 %v10381_v29 }
 0xa26   :  { %5769 = vmatpush.bf16.msra.mxu2 %v10375_v20 }
 0xa2a   :  { %5770 = vmatpush.bf16.msra.mxu2 %v10369_v47 }
 0xa4a   :  { %v5151_v4 = vpop.f32.mrf.mxu1 }
 0xa50   :  { %v5205_v9 = vpop.f32.mrf.mxu2 }
 0xa52   :  { %v5153_v59 = vpop.f32.mrf.mxu1 }
 0xa53   :  { %v5161_v57 = vpack.c.bf16 %v5153_v59, %v5151_v4  ;;  %v8669_v59 = vld [vmem:[#allocation8 + $0x68] sm:$0xff] }
 0xa54   :  { %5902 = vmatmul.bf16.gmra.mxu0 %v8669_v59 }
 0xa55   :  { %5357 = vmatmul.bf16.vlgmr.msra.gmra.mxu1 %v5161_v57 }
 0xa56   :  { %5723 = vmatpush.bf16.msra.mxu1 %v8657_v32 }
 0xa58   :  { %v5207_v28 = vpop.f32.mrf.mxu2 }
 0xa59   :  { %v5215_v35 = vpack.c.bf16 %v5207_v28, %v5205_v9  ;;  %v8658_v9 = vld [vmem:[#allocation8 + $0x50] sm:$0xff] }
 0xa5a   :  { %v5156_v36 = vpop.f32.mrf.mxu1  ;;  %5724 = vmatpush.bf16.msra.mxu1 %v8656_v61 }
 0xa5b   :  { %5290 = vmatmul.bf16.vlgmr.msrb.gmra.mxu3 %v5215_v35 }
 0xa5c   :  { %5637 = vmatpush.bf16.msrb.mxu3 %v10430_v30 }
 0xa5e   :  { %5725 = vmatpush.bf16.msra.mxu1 %v8655_v0 }
 0xa60   :  { %5638 = vmatpush.bf16.msrb.mxu3 %v10437_v18  ;;  %v5210_v15 = vpop.f32.mrf.mxu2 }
 0xa62   :  { %v5158_v52 = vpop.f32.mrf.mxu1  ;;  %5726 = vmatpush.bf16.msra.mxu1 %v8654_v39  ;;  %v8696_v39 = vld [vmem:[#allocation10 + $0x230] sm:$0xff] }
 0xa63   :  { %v5162_v21 = vpack.c.bf16 %v5158_v52, %v5156_v36  ;;  %v8688_v36 = vld [vmem:[#allocation8 + $0x80] sm:$0xff] }
 0xa64   :  { %5639 = vmatpush.bf16.msrb.mxu3 %v10443_v50  ;;  %6149 = vmatmul.bf16.vlgmr.msrb.gmra.mxu0 %v8688_v36 }
 0xa65   :  { %5362 = vmatmul.bf16.gmra.mxu1 %v5162_v21  ;;  %v8678_v21 = vld [vmem:[#allocation8 + $0x70] sm:$0xff] }
 0xa66   :  { %5727 = vmatpush.bf16.msra.mxu1 %v8653_v51 }
 0xa68   :  { %5640 = vmatpush.bf16.msrb.mxu3 %v10448_v45  ;;  %v5212_v42 = vpop.f32.mrf.mxu2 }
 0xa69   :  { %v5216_v6 = vpack.c.bf16 %v5212_v42, %v5210_v15  ;;  %v8659_v15 = vld [vmem:[#allocation8 + $0x58] sm:$0xff]  ;;  %v8689_v42 = vld [vmem:[#allocation8 + $0x88] sm:$0xff] }
 0xa6a   :  { %5728 = vmatpush.bf16.msra.mxu1 %v8652_v2  ;;  %v8682_v2 = vld [vmem:[#allocation10 + $0x1d0] sm:$0xff] }
 0xa6b   :  { %5295 = vmatmul.bf16.gmra.mxu3 %v5216_v6  ;;  %v8666_v6 = vld [vmem:[#allocation10 + $0x170] sm:$0xff] }
 0xa6c   :  { %5641 = vmatpush.bf16.msrb.mxu3 %v10387_v63 }
 0xa6e   :  { %5729 = vmatpush.bf16.msra.mxu1 %v8651_v14 }
 0xa70   :  { %5642 = vmatpush.bf16.msrb.mxu3 %v10381_v29  ;;  %v5394_v54 = vpop.f32.mrf.mxu2 }
 0xa72   :  { %5730 = vmatpush.bf16.msra.mxu1 %v8650_v60  ;;  %v8693_v60 = vld [vmem:[#allocation10 + $0x218] sm:$0xff] }
 0xa74   :  { %5643 = vmatpush.bf16.msrb.mxu3 %v10375_v20 }
 0xa75   :  { %5519 = vmatmul.bf16.vlgmr.msrb.gmra.mxu1 %v8638_v62  ;;  %v8663_v62 = vld [vmem:[#allocation10 + $0x158] sm:$0xff] }
 0xa78   :  { %5644 = vmatpush.bf16.msrb.mxu3 %v10369_v47  ;;  %v5396_v10 = vpop.f32.mrf.mxu2 }
 0xa79   :  { %v5404_v23 = vpack.c.bf16 %v5396_v10, %v5394_v54  ;;  %v8677_v54 = vld [vmem:[#allocation10 + $0x1b8] sm:$0xff]  ;;  %v8675_v10 = vld [vmem:[#allocation10 + $0x1a8] sm:$0xff] }
 0xa7a   :  { %5975 = vmatpush.bf16.msrb.mxu1 %v8677_v54 }
 0xa7b   :  { %5479 = vmatmul.bf16.vlgmr.msra.gmra.mxu3 %v5404_v23  ;;  %v8674_v23 = vld [vmem:[#allocation10 + $0x1a0] sm:$0xff] }
 0xa80   :  { %v5399_v34 = vpop.f32.mrf.mxu2 }
 0xa85   :  { %5524 = vmatmul.bf16.gmra.mxu1 %v8639_v37 }
 0xa88   :  { %v5401_v16 = vpop.f32.mrf.mxu2 }
 0xa89   :  { %v5405_v19 = vpack.c.bf16 %v5401_v16, %v5399_v34  ;;  %v8661_v16 = vld [vmem:[#allocation10 + $0x148] sm:$0xff] }
 0xa8b   :  { %5484 = vmatmul.bf16.gmra.mxu3 %v5405_v19  ;;  %v8673_v19 = vld [vmem:[#allocation10 + $0x198] sm:$0xff] }
 0xa9b   :  { %5645 = vmatmul.bf16.vlgmr.msrb.gmra.mxu3 %v8648_v12  ;;  %v8660_v12 = vld [vmem:[#allocation10 + $0x140] sm:$0xff] }
 0xaab   :  { %5650 = vmatmul.bf16.gmra.mxu3 %v8649_v55  ;;  %v8672_v55 = vld [vmem:[#allocation10 + $0x190] sm:$0xff] }
 0xad2   :  { %v5358_v40 = vpop.f32.mrf.mxu1 }
 0xada   :  { %v5360_v41 = vpop.f32.mrf.mxu1 }
 0xade   :  { %v5291_v38 = vpop.f32.mrf.mxu3 }
 0xadf   :  { %v5359_v43 = vadd.f32 %v5358_v40, %v5291_v38  ;;  %v5898_v38 = vpop.f32.mrf.mxu0 }
 0xae2   :  { %v5363_v44 = vpop.f32.mrf.mxu1 }
 0xae6   :  { %v5293_v5 = vpop.f32.mrf.mxu3 }
 0xae7   :  { %v5361_v13 = vadd.f32 %v5360_v41, %v5293_v5  ;;  %v8670_v5 = vld [vmem:[#allocation10 + $0x180] sm:$0xff] }
 0xaea   :  { %v5365_v11 = vpop.f32.mrf.mxu1 }
 0xaee   :  { %v5296_v53 = vpop.f32.mrf.mxu3 }
 0xaef   :  { %v5364_v58 = vadd.f32 %v5363_v44, %v5296_v53  ;;  %v8687_v44 = vld [vmem:[#allocation10 + $0x1f8] sm:$0xff]  ;;  %v5900_v53 = vpop.f32.mrf.mxu0 }
 0xaf0   :  { %v5908_v0 = vpack.c.bf16 %v5900_v53, %v5898_v38 }
 0xaf2   :  { %v5520_v33 = vpop.f32.mrf.mxu1 }
 0xaf6   :  { %v5298_v46 = vpop.f32.mrf.mxu3 }
 0xaf7   :  { %v5366_v7 = vadd.f32 %v5365_v11, %v5298_v46  ;;  %v8697_v11 = vld [vmem:[#allocation10 + $0x238] sm:$0xff]  ;;  %v5903_v51 = vpop.f32.mrf.mxu0 }
 0xafa   :  { %v5522_v24 = vpop.f32.mrf.mxu1 }
 0xafb   :  { %v5530_v27 = vpack.c.bf16 %v5522_v24, %v5520_v33  ;;  %v8684_v33 = vld [vmem:[#allocation10 + $0x1e0] sm:$0xff]  ;;  %v8683_v24 = vld [vmem:[#allocation10 + $0x1d8] sm:$0xff] }
 0xafd   :  { %5605 = vmatmul.bf16.vlgmr.msrb.gmra.mxu2 %v5530_v27  ;;  %v8695_v27 = vld [vmem:[#allocation10 + $0x228] sm:$0xff] }
 0xafe   :  { %6015 = vmatpush.bf16.msrb.mxu2 %v10430_v30  ;;  %v5480_v56 = vpop.f32.mrf.mxu3 }
 0xaff   :  { %v10506_v3 = vadd.f32 %v5480_v56, %v5359_v43  ;;  %v8671_v43 = vld [vmem:[#allocation10 + $0x188] sm:$0xff]  ;;  %v8694_v56 = vld [vmem:[#allocation10 + $0x220] sm:$0xff]  ;;  %v5905_v14 = vpop.f32.mrf.mxu0 }
 0xb02   :  { %6016 = vmatpush.bf16.msrb.mxu2 %v10437_v18  ;;  %v5525_v49 = vpop.f32.mrf.mxu1 }
 0xb06   :  { %6017 = vmatpush.bf16.msrb.mxu2 %v10443_v50  ;;  %v5482_v1 = vpop.f32.mrf.mxu3 }
 0xb07   :  { %v10510_v31 = vadd.f32 %v5482_v1, %v5361_v13  ;;  %v8686_v13 = vld [vmem:[#allocation10 + $0x1f0] sm:$0xff]  ;;  %v5909_v1 = vpack.c.bf16 %v5905_v14, %v5903_v51 }
 0xb0a   :  { %6018 = vmatpush.bf16.msrb.mxu2 %v10448_v45  ;;  %v5527_v22 = vpop.f32.mrf.mxu1 }
 0xb0b   :  { %v5531_v17 = vpack.c.bf16 %v5527_v22, %v5525_v49  ;;  %v8681_v49 = vld [vmem:[#allocation10 + $0x1c8] sm:$0xff]  ;;  %v8680_v22 = vld [vmem:[#allocation10 + $0x1c0] sm:$0xff] }
 0xb0d   :  { %5610 = vmatmul.bf16.gmra.mxu2 %v5531_v17 }
 0xb0e   :  { %6019 = vmatpush.bf16.msrb.mxu2 %v10387_v63  ;;  %v5485_v25 = vpop.f32.mrf.mxu3 }
 0xb0f   :  { %v10514_v48 = vadd.f32 %v5485_v25, %v5364_v58  ;;  %v8685_v58 = vld [vmem:[#allocation10 + $0x1e8] sm:$0xff] }
 0xb12   :  { %6020 = vmatpush.bf16.msrb.mxu2 %v10381_v29 }
 0xb16   :  { %6021 = vmatpush.bf16.msrb.mxu2 %v10375_v20  ;;  %v5487_v26 = vpop.f32.mrf.mxu3 }
 0xb17   :  { %v10518_v4 = vadd.f32 %v5487_v26, %v5366_v7  ;;  %v8691_v26 = vld [vmem:[#allocation10 + $0x208] sm:$0xff] }
 0xb1a   :  { %6022 = vmatpush.bf16.msrb.mxu2 %v10369_v47 }
 0xb1d   :  { %5771 = vmatmul.bf16.vlgmr.msra.gmra.mxu2 %v8658_v9  ;;  %v8690_v9 = vld [vmem:[#allocation10 + $0x200] sm:$0xff] }
 0xb1e   :  { %8698 = vmatpush.bf16.msra.mxu2 %v10430_v30  ;;  %v5646_v57 = vpop.f32.mrf.mxu3 }
 0xb22   :  { %8699 = vmatpush.bf16.msra.mxu2 %v10437_v18 }
 0xb26   :  { %8700 = vmatpush.bf16.msra.mxu2 %v10443_v50  ;;  %v5648_v28 = vpop.f32.mrf.mxu3  ;;  %v8679_v50 = vld [vmem:[#allocation8 + $0x78] sm:$0xff] }
 0xb27   :  { %v5656_v35 = vpack.c.bf16 %v5648_v28, %v5646_v57 }
 0xb29   :  { %5731 = vmatmul.bf16.vlgmr.msra.gmra.mxu1 %v5656_v35 }
 0xb2a   :  { %8701 = vmatpush.bf16.msra.mxu2 %v10448_v45  ;;  %v8667_v45 = vld [vmem:[#allocation10 + $0x178] sm:$0xff] }
 0xb2b   :  { %5849 = vmatpush.bf16.msra.mxu3 %v8667_v45 }
 0xb2d   :  { %5776 = vmatmul.bf16.gmra.mxu2 %v8659_v15 }
 0xb2e   :  { %8702 = vmatpush.bf16.msra.mxu2 %v10387_v63  ;;  %v5651_v52 = vpop.f32.mrf.mxu3  ;;  %v8665_v63 = vld [vmem:[#allocation10 + $0x168] sm:$0xff] }
 0xb2f   :  { %5850 = vmatpush.bf16.msra.mxu3 %v8666_v6 }
 0xb32   :  { %8703 = vmatpush.bf16.msra.mxu2 %v10381_v29  ;;  %v8676_v29 = vld [vmem:[#allocation10 + $0x1b0] sm:$0xff] }
 0xb33   :  { %5851 = vmatpush.bf16.msra.mxu3 %v8665_v63  ;;  %5976 = vmatpush.bf16.msrb.mxu1 %v8676_v29 }
 0xb36   :  { %8704 = vmatpush.bf16.msra.mxu2 %v10375_v20  ;;  %v5653_v30 = vpop.f32.mrf.mxu3  ;;  %v8664_v20 = vld [vmem:[#allocation10 + $0x160] sm:$0xff] }
 0xb37   :  { %v5657_v18 = vpack.c.bf16 %v5653_v30, %v5651_v52  ;;  %5852 = vmatpush.bf16.msra.mxu3 %v8664_v20  ;;  %5977 = vmatpush.bf16.msrb.mxu1 %v8675_v10 }
 0xb39   :  { %5736 = vmatmul.bf16.gmra.mxu1 %v5657_v18 }
 0xb3a   :  { %8705 = vmatpush.bf16.msra.mxu2 %v10369_v47  ;;  %v8662_v47 = vld [vmem:[#allocation10 + $0x150] sm:$0xff] }
 0xb3b   :  { %5853 = vmatpush.bf16.msra.mxu3 %v8663_v62  ;;  %5978 = vmatpush.bf16.msrb.mxu1 %v8674_v23 }
 0xb3d   :  { %6023 = vmatmul.bf16.vlgmr.msrb.gmra.mxu2 %v8678_v21 }
 0xb3f   :  { %5854 = vmatpush.bf16.msra.mxu3 %v8662_v47  ;;  %5979 = vmatpush.bf16.msrb.mxu1 %v8673_v19 }
 0xb43   :  { %5855 = vmatpush.bf16.msra.mxu3 %v8661_v16  ;;  %5980 = vmatpush.bf16.msrb.mxu1 %v8672_v55 }
 0xb47   :  { %5856 = vmatpush.bf16.msra.mxu3 %v8660_v12  ;;  %5981 = vmatpush.bf16.msrb.mxu1 %v8671_v43 }
 0xb4b   :  { %6101 = vmatpush.bf16.msrb.mxu3 %v8687_v44  ;;  %5982 = vmatpush.bf16.msrb.mxu1 %v8670_v5 }
 0xb4d   :  { %6028 = vmatmul.bf16.gmra.mxu2 %v8679_v50 }
 0xb4e   :  { %5983 = vmatmul.bf16.vlgmr.msrb.gmra.mxu1 %v5908_v0 }
 0xb4f   :  { %6102 = vmatpush.bf16.msrb.mxu3 %v8686_v13  ;;  %6227 = vmatpush.bf16.msra.mxu1 %v8697_v11 }
 0xb53   :  { %6103 = vmatpush.bf16.msrb.mxu3 %v8685_v58  ;;  %6228 = vmatpush.bf16.msra.mxu1 %v8696_v39 }
 0xb57   :  { %6104 = vmatpush.bf16.msrb.mxu3 %v8684_v33  ;;  %6229 = vmatpush.bf16.msra.mxu1 %v8695_v27 }
 0xb5b   :  { %6105 = vmatpush.bf16.msrb.mxu3 %v8683_v24  ;;  %6230 = vmatpush.bf16.msra.mxu1 %v8694_v56 }
 0xb5d   :  { %6154 = vmatmul.bf16.vlgmr.msra.gmra.mxu2 %v8689_v42 }
 0xb5e   :  { %5988 = vmatmul.bf16.gmra.mxu1 %v5909_v1 }
 0xb5f   :  { %6106 = vmatpush.bf16.msrb.mxu3 %v8682_v2  ;;  %6231 = vmatpush.bf16.msra.mxu1 %v8693_v60 }
 0xb63   :  { %6107 = vmatpush.bf16.msrb.mxu3 %v8681_v49  ;;  %6232 = vmatpush.bf16.msra.mxu1 %v8692_v8 }
 0xb67   :  { %6108 = vmatpush.bf16.msrb.mxu3 %v8680_v22  ;;  %6233 = vmatpush.bf16.msra.mxu1 %v8691_v26 }
 0xb6b   :  { %6234 = vmatpush.bf16.msra.mxu1 %v8690_v9 }
 0xb80   :  { %v5606_v34 = vpop.f32.mrf.mxu2 }
 0xb81   :  { %v10530_v37 = vadd.f32 %v5606_v34, %v10506_v3 }
 0xb88   :  { %v5608_v40 = vpop.f32.mrf.mxu2 }
 0xb89   :  { %v10533_v41 = vadd.f32 %v5608_v40, %v10510_v31 }
 0xb90   :  { %v5611_v32 = vpop.f32.mrf.mxu2 }
 0xb91   :  { %v5618_v61 = vadd.f32 %v5611_v32, %v10514_v48  ;;  %v6150_v48 = vpop.f32.mrf.mxu0  ;;  %v8728_v32 = vld [vmem:[#allocation11] ss:$0 sm:$0xff] }
 0xb98   :  { %v5613_v46 = vpop.f32.mrf.mxu2 }
 0xb99   :  { %v5619_v7 = vadd.f32 %v5613_v46, %v10518_v4  ;;  %v6152_v57 = vpop.f32.mrf.mxu0 }
 0xb9a   :  { %v6160_v28 = vpack.c.bf16 %v6152_v57, %v6150_v48 }
 0xb9c   :  { %6235 = vmatmul.bf16.vlgmr.msra.gmra.mxu1 %v6160_v28 }
 0xba0   :  { %v5772_v3 = vpop.f32.mrf.mxu2 }
 0xba6   :  { %v5732_v31 = vpop.f32.mrf.mxu1 }
 0xba7   :  { %v5742_v55 = vadd.f32 %v5732_v31, %v10530_v37 }
 0xba8   :  { %v5774_v17 = vpop.f32.mrf.mxu2 }
 0xba9   :  { %v5782_v25 = vpack.c.bf16 %v5774_v17, %v5772_v3 }
 0xbab   :  { %5857 = vmatmul.bf16.vlgmr.msra.gmra.mxu3 %v5782_v25 }
 0xbac   :  { %8706 = vmatpush.bf16.msra.mxu3 %v8697_v11 }
 0xbae   :  { %v5734_v4 = vpop.f32.mrf.mxu1 }
 0xbaf   :  { %v5743_v5 = vadd.f32 %v5734_v4, %v10533_v41 }
 0xbb0   :  { %v5777_v59 = vpop.f32.mrf.mxu2  ;;  %8707 = vmatpush.bf16.msra.mxu3 %v8696_v39 }
 0xbb4   :  { %8708 = vmatpush.bf16.msra.mxu3 %v8695_v27 }
 0xbb6   :  { %v5737_v35 = vpop.f32.mrf.mxu1 }
 0xbb7   :  { %v5744_v36 = vadd.f32 %v5737_v35, %v5618_v61 }
 0xbb8   :  { %v5779_v15 = vpop.f32.mrf.mxu2  ;;  %8709 = vmatpush.bf16.msra.mxu3 %v8694_v56 }
 0xbb9   :  { %v5783_v52 = vpack.c.bf16 %v5779_v15, %v5777_v59 }
 0xbbb   :  { %5862 = vmatmul.bf16.gmra.mxu3 %v5783_v52 }
 0xbbc   :  { %8710 = vmatpush.bf16.msra.mxu3 %v8693_v60 }
 0xbbe   :  { %v5739_v30 = vpop.f32.mrf.mxu1 }
 0xbbf   :  { %v5745_v18 = vadd.f32 %v5739_v30, %v5619_v7 }
 0xbc0   :  { %v6024_v21 = vpop.f32.mrf.mxu2  ;;  %8711 = vmatpush.bf16.msra.mxu3 %v8692_v8 }
 0xbc4   :  { %8712 = vmatpush.bf16.msra.mxu3 %v8691_v26 }
 0xbc8   :  { %v6026_v50 = vpop.f32.mrf.mxu2  ;;  %8713 = vmatpush.bf16.msra.mxu3 %v8690_v9 }
 0xbc9   :  { %v6034_v42 = vpack.c.bf16 %v6026_v50, %v6024_v21 }
 0xbcb   :  { %6109 = vmatmul.bf16.vlgmr.msrb.gmra.mxu3 %v6034_v42  ;;  %v5984_v62 = vpop.f32.mrf.mxu1 }
 0xbd0   :  { %v6029_v45 = vpop.f32.mrf.mxu2 }
 0xbd3   :  { %v5986_v47 = vpop.f32.mrf.mxu1 }
 0xbd8   :  { %v6031_v6 = vpop.f32.mrf.mxu2 }
 0xbd9   :  { %v6035_v63 = vpack.c.bf16 %v6031_v6, %v6029_v45 }
 0xbdb   :  { %6114 = vmatmul.bf16.gmra.mxu3 %v6035_v63  ;;  %v5989_v34 = vpop.f32.mrf.mxu1 }
 0xbe0   :  { %v6155_v54 = vpop.f32.mrf.mxu2 }
 0xbe3   :  { %v5991_v19 = vpop.f32.mrf.mxu1 }
 0xbe8   :  { %v6157_v20 = vpop.f32.mrf.mxu2 }
 0xbe9   :  { %v6161_v29 = vpack.c.bf16 %v6157_v20, %v6155_v54 }
 0xbeb   :  { %6240 = vmatmul.bf16.vlgmr.msra.gmra.mxu3 %v6161_v29 }
 0xc19   :  { %v6236_v38 = vpop.f32.mrf.mxu1 }
 0xc21   :  { %v6238_v39 = vpop.f32.mrf.mxu1 }
 0xc2e   :  { %v5858_v10 = vpop.f32.mrf.mxu3 }
 0xc2f   :  { %v5868_v40 = vadd.f32 %v5858_v10, %v5742_v55 }
 0xc31   :  { %v5994_v43 = vadd.f32 %v5984_v62, %v5868_v40 }
 0xc36   :  { %v5860_v23 = vpop.f32.mrf.mxu3 }
 0xc37   :  { %v5869_v11 = vadd.f32 %v5860_v23, %v5743_v5 }
 0xc39   :  { %v5995_v58 = vadd.f32 %v5986_v47, %v5869_v11 }
 0xc3e   :  { %v5863_v16 = vpop.f32.mrf.mxu3 }
 0xc3f   :  { %v5870_v2 = vadd.f32 %v5863_v16, %v5744_v36 }
 0xc41   :  { %v5996_v56 = vadd.f32 %v5989_v34, %v5870_v2 }
 0xc46   :  { %v5865_v12 = vpop.f32.mrf.mxu3 }
 0xc47   :  { %v5871_v14 = vadd.f32 %v5865_v12, %v5745_v18 }
 0xc49   :  { %v5997_v1 = vadd.f32 %v5991_v19, %v5871_v14 }
 0xc4e   :  { %v6110_v44 = vpop.f32.mrf.mxu3 }
 0xc4f   :  { %v6120_v13 = vadd.f32 %v6110_v44, %v5994_v43 }
 0xc51   :  { %v6246_v61 = vadd.f32 %v6236_v38, %v6120_v13 }
 0xc53   :  { %v6254_v53 = vadd.f32 %v8728_v32, %v6246_v61 }
 0xc55   :  { %v6258_v0 = vmax.f32 %v6254_v53, 0.0 }
 0xc56   :  { %v6112_v33 = vpop.f32.mrf.mxu3 }
 0xc57   :  { %6262 = vst [vmem:[#allocation13] sm:$0xff] %v6258_v0  ;;  %v6121_v46 = vadd.f32 %v6112_v33, %v5995_v58 }
 0xc59   :  { %v6247_v7 = vadd.f32 %v6238_v39, %v6121_v46 }
 0xc5b   :  { %v6255_v51 = vadd.f32 %v8728_v32, %v6247_v7 }
 0xc5d   :  { %v6259_v37 = vmax.f32 %v6255_v51, 0.0 }
 0xc5e   :  { %v6115_v24 = vpop.f32.mrf.mxu3 }
 0xc5f   :  { %6263 = vst [vmem:[#allocation13 + $0x8] sm:$0xff] %v6259_v37  ;;  %v6122_v41 = vadd.f32 %v6115_v24, %v5996_v56 }
 0xc66   :  { %v6117_v27 = vpop.f32.mrf.mxu3 }
 0xc67   :  { %v6123_v22 = vadd.f32 %v6117_v27, %v5997_v1 }
 0xc6e   :  { %v6241_v3 = vpop.f32.mrf.mxu3 }
 0xc6f   :  { %v6248_v49 = vadd.f32 %v6241_v3, %v6122_v41 }
 0xc71   :  { %v6256_v60 = vadd.f32 %v8728_v32, %v6248_v49 }
 0xc73   :  { %v6260_v31 = vmax.f32 %v6256_v60, 0.0 }
 0xc75   :  { %6264 = vst [vmem:[#allocation13 + $0x10] sm:$0xff] %v6260_v31 }
 0xc76   :  { %v6243_v8 = vpop.f32.mrf.mxu3 }
 0xc77   :  { %v6249_v17 = vadd.f32 %v6243_v8, %v6123_v22 }
 0xc79   :  { %v6257_v25 = vadd.f32 %v8728_v32, %v6249_v17 }
 0xc7b   :  { %v6261_v48 = vmax.f32 %v6257_v25, 0.0 }
 0xc7d   :  { %6265 = vst [vmem:[#allocation13 + $0x18] sm:$0xff] %v6261_v48 }
 0xc7e   :  { %6278 = dma.vmem_to_hbm [thread:$0]  %s6271_s27, 512, %s6273_s3, [#allocation4], %s9014_s30, %s9014_s30, %s9015_s5  }
 0xc7f   :  { %9001 = dma.done.wait [#allocation4], 512  }
 0xc80   :  { %9002 = vsyncadd [#allocation4], 4294966784 }
 0xc81   :  { %6283 = vsyncpa [#allocation3], 1 }
 0xc82   :  { %6284 = vsyncpa [#allocation6], 1 }
 0xc83   :  { %6285 = vsyncpa [#allocation9], 1 }
 0xc84   :  { %6286 = vsyncpa [#allocation12], 1 }
 0xc85   :  { %6287 = vsyncpa [#allocation4], 1 }

</bundles_post_ra>
